<compile_context>
chip_gen: v7x
topology: tpu7x:2x2x1
jax: 0.10.0
libtpu: 0.0.40
codegen_flags: <defaults>
</compile_context>

<pallas_src>
import functools

import numpy as np
import jax
import jax.numpy as jnp
from jax.experimental import pallas as pl
from jax.experimental.pallas import tpu as pltpu


def _round_up(a, m):
    return ((a + m - 1) // m) * m


# ----------------------------------------------------------------------------
# Static replica of AdaPKC2D_Thre._get_uni_prf_grid (pure NumPy, trace-time).
# ----------------------------------------------------------------------------
def _uni_prf_offsets(rb, gb_h, gb_w):
    h_t, h_d = -(rb + gb_h), rb + gb_h
    w_l, w_r = -(rb + gb_w), rb + gb_w
    w_prf = (rb + gb_w) * 2 + 1
    h_prf = (rb + gb_h) * 2 + 1
    xs = np.arange(h_t, h_d + 1)
    ys = np.arange(w_l, w_r + 1)
    prf_x_idx = np.broadcast_to(xs[:, None], (h_prf, w_prf))
    prf_y_idx = np.broadcast_to(ys[None, :], (h_prf, w_prf))
    index_td = np.round(np.linspace(0, (rb + gb_w) * 2, 5)).astype(np.int64)
    index_lr = np.round(np.linspace(0, (rb + gb_h) * 2, 5)).astype(np.int64)[1:-1]

    def ring(idx):
        t = idx[0:rb, :][:, index_td]
        r = idx[index_lr, :][:, w_prf - rb:w_prf]
        d = idx[h_prf - rb:h_prf, :][:, index_td]
        l = idx[index_lr, :][:, 0:rb]
        return np.concatenate([t.ravel(), r.ravel(), d.ravel(), l.ravel()])

    return ring(prf_x_idx), ring(prf_y_idx)


# ----------------------------------------------------------------------------
# Pallas kernel: one (batch, spatial-tile) per grid step.
# ----------------------------------------------------------------------------
def _adapkc_kernel(x_ref, w_ref, b_ref, out_ref, xg_ref, *,
                   C, N, G, Ltile, K_used, K_pad, base_c, starts,
                   threshold, init_index, dot_dtype):
    # x_ref  : (1, 1, C, Lw)    VMEM  -- halo tile of the flattened padded img
    # w_ref  : (out_ch, K_pad)  VMEM  -- [ sum_n w | -w(n,c) | 0-pad ], dot_dtype
    # b_ref  : (out_ch, 1)      VMEM  f32
    # out_ref: (1, out_ch, Ltile) VMEM f32 (lane-dense)
    # xg_ref : (K_pad, Ltile)   VMEM scratch, dot_dtype, rows = [x_c ; X_sel ; 0]
    def window(s0):                                     # static lane slice
        return x_ref[0, 0, :, s0:s0 + Ltile]            # (C, Ltile) f32

    xc = window(base_c)
    inv_c = jnp.float32(1.0 / C)
    inv_n = jnp.float32(1.0 / N)
    thr = jnp.float32(threshold)

    # ---- pass 1: similarity maps (f32) ---------------------------------
    sims = []
    for g in range(G):
        acc = jnp.zeros((1, Ltile), jnp.float32)
        for n in range(N):
            row = window(starts[g][n])
            acc = acc + jax.nn.sigmoid(
                jnp.sum(row * xc, axis=0, keepdims=True) * inv_c)
        sims.append(acc * inv_n)

    # ---- per-pixel selection: sort, max consecutive gap, threshold ------
    vals = list(sims)
    idxs = [jnp.full((1, Ltile), g, jnp.int32) for g in range(G)]
    for i in range(G):
        for j in range(i + 1, G):
            swap = vals[j] < vals[i]
            vi = jnp.where(swap, vals[j], vals[i])
            vj = jnp.where(swap, vals[i], vals[j])
            ii = jnp.where(swap, idxs[j], idxs[i])
            ij = jnp.where(swap, idxs[i], idxs[j])
            vals[i], vals[j], idxs[i], idxs[j] = vi, vj, ii, ij

    best_diff = vals[1] - vals[0]
    best_k = jnp.zeros((1, Ltile), jnp.int32)
    for k in range(1, G - 1):
        d = vals[k + 1] - vals[k]
        upd = d > best_diff
        best_diff = jnp.where(upd, d, best_diff)
        best_k = jnp.where(upd, jnp.int32(k), best_k)

    ori = idxs[0]
    for k in range(1, G - 1):
        ori = jnp.where(best_k == k, idxs[k], ori)
    ori = jnp.where(best_diff >= thr, ori, jnp.int32(init_index))

    # ---- pass 2: stage [x_c ; X_sel] (dot_dtype) and one fused MXU dot ---
    xg_ref[0:C, :] = xc.astype(dot_dtype)
    for n in range(N):
        row_sel = window(starts[0][n])
        for g in range(1, G):
            row_sel = jnp.where(ori == g, window(starts[g][n]), row_sel)
        xg_ref[C + n * C:C + (n + 1) * C, :] = row_sel.astype(dot_dtype)
    if K_pad > K_used:
        # keep: 0 * (uninitialized VMEM junk) could be NaN through the MXU.
        xg_ref[K_used:K_pad, :] = jnp.zeros((K_pad - K_used, Ltile), dot_dtype)

    # (out_ch, K) @ (K, Ltile) on the MXU  ==  W_sum @ x_c - W @ X_sel
    y = jnp.dot(w_ref[...], xg_ref[...], preferred_element_type=jnp.float32)
    out_ref[0, :, :] = (y + b_ref[...]).astype(out_ref.dtype)


# ----------------------------------------------------------------------------
# Wrapper: layout plumbing (pad / flatten / halo tiles / weight folding).
# ----------------------------------------------------------------------------
def adapkc2d_thre_forward(x, weight, bias, *, refer_band, guard_bands_h,
                          guard_bands_w, threshold, init_gb,
                          ltile=None, dot_dtype=jnp.bfloat16):
    B, C, H, W = x.shape
    out_ch = weight.shape[0]
    kH, kW = 4, 4
    N = kH * kW
    rb = refer_band
    pad_h = guard_bands_h[-1] + rb
    pad_w = guard_bands_w[-1] + rb
    Hp, Wp = H + 2 * pad_h, W + 2 * pad_w

    if jnp.dtype(dot_dtype).itemsize < 4 and (C % 2) != 0:
        dot_dtype = jnp.float32     # avoid sub-word sublane-store granularity

    # guard-band ring offsets (static, trace-time)
    dx, dy = [], []
    init_index = 0
    for gbh in guard_bands_h:
        for gbw in guard_bands_w:
            if gbh == init_gb[0] and gbw == init_gb[1]:
                init_index = len(dx)
            ox, oy = _uni_prf_offsets(rb, gbh, gbw)
            assert ox.shape[0] == N, "refer_band must yield a 16-sample ring (rb=1)"
            dx.append(ox)
            dy.append(oy)
    G = len(dx)
    assert G >= 2

    # Lane-dense flattened layout: a shifted (H, W) window is a contiguous run
    # of Ltile lanes starting at starts[g][n] = base_c + dx*Wp + dy inside the
    # per-tile halo block (tile t covers flat positions [t*Ltile, t*Ltile+Lw)).
    base_c = pad_h * Wp + pad_w
    L_valid = (H - 1) * Wp + W
    starts = [[int(base_c + int(dx[g][n]) * Wp + int(dy[g][n]))
               for n in range(N)] for g in range(G)]
    max_start = max(max(s) for s in starts)
    assert min(min(s) for s in starts) >= 0

    if ltile is None:
        # keep (C, Ltile) working rows at a comfortable vreg count
        Ltile = max(256, min(2048, _round_up(8192 // max(C, 1), 128)))
    else:
        Ltile = _round_up(ltile, 128)
    Ltile = min(Ltile, _round_up(L_valid, 128))
    NT = (L_valid + Ltile - 1) // Ltile
    halo_pad = _round_up(max_start, 128)
    Lw = Ltile + halo_pad
    total_len = NT * Ltile + halo_pad
    # bounds proof: in-kernel reads stay within [0, Lw) of each tile block
    assert max_start + Ltile <= Lw
    assert (NT - 1) * Ltile + Lw <= total_len
    assert total_len >= Hp * Wp           # == L_valid + max_start <= total_len

    # padded flattened slab, then per-tile halo blocks (fuse under jit)
    x_pad = jnp.pad(x.astype(jnp.float32),
                    ((0, 0), (0, 0), (pad_h, pad_h), (pad_w, pad_w)))
    x_flat = x_pad.reshape(B, C, Hp * Wp)
    x_flat = jnp.pad(x_flat, ((0, 0), (0, 0), (0, total_len - Hp * Wp)))
    x_tiles = jnp.stack([x_flat[:, :, t * Ltile: t * Ltile + Lw]
                         for t in range(NT)], axis=1)      # (B, NT, C, Lw)

    # Fold the 4x4-stride-4 "peak conv" into one (out_ch, C*(N+1)) matrix:
    #   out = [ sum_n w | -w(n,c) ] @ [ x_c ; X_sel ]  (+ bias)
    w3 = jnp.asarray(weight, jnp.float32).reshape(out_ch, C, N)    # n = 4*kh+kw
    w_sum = jnp.sum(w3, axis=-1)                                   # (out_ch, C)
    w_mat = jnp.transpose(w3, (0, 2, 1)).reshape(out_ch, N * C)    # [oc, n*C+c]
    K_used = C * (N + 1)
    K_pad = _round_up(K_used, 8)
    w_ext = jnp.concatenate([w_sum, -w_mat], axis=1)
    w_ext = jnp.pad(w_ext, ((0, 0), (0, K_pad - K_used))).astype(dot_dtype)
    b_col = jnp.asarray(bias, jnp.float32).reshape(out_ch, 1)

    # explicit scoped-VMEM limit sized from the chosen tiles (headroom, <=48MiB)
    dot_bytes = jnp.dtype(dot_dtype).itemsize
    est = (2 * C * Lw * 4                     # input halo block, double-buffered
           + 2 * out_ch * K_pad * dot_bytes   # weights
           + 2 * out_ch * 4                   # bias
           + 2 * out_ch * Ltile * 4           # output block, double-buffered
           + K_pad * Ltile * dot_bytes        # staging scratch
           + (G + 8) * Ltile * 4              # sims / selection temporaries
           + 4 * C * Ltile * 4)               # live (C, Ltile) rows
    vmem_limit = int(min(max(4 * est, 32 << 20), 48 << 20))

    kernel = functools.partial(
        _adapkc_kernel, C=C, N=N, G=G, Ltile=Ltile, K_used=K_used, K_pad=K_pad,
        base_c=base_c, starts=starts, threshold=float(threshold),
        init_index=int(init_index), dot_dtype=dot_dtype)

    out_flat = pl.pallas_call(
        kernel,
        out_shape=jax.ShapeDtypeStruct((B, out_ch, NT * Ltile), jnp.float32),
        grid=(B, NT),
        in_specs=[
            pl.BlockSpec((1, 1, C, Lw), lambda b, t: (b, t, 0, 0)),
            pl.BlockSpec((out_ch, K_pad), lambda b, t: (0, 0)),
            pl.BlockSpec((out_ch, 1), lambda b, t: (0, 0)),
        ],
        out_specs=pl.BlockSpec((1, out_ch, Ltile), lambda b, t: (b, 0, t)),
        scratch_shapes=[pltpu.VMEM((K_pad, Ltile), dot_dtype)],
        compiler_params=pltpu.CompilerParams(
            dimension_semantics=("parallel", "parallel"),
            vmem_limit_bytes=vmem_limit),
    )(x_tiles, w_ext, b_col)

    # Un-flatten: valid outputs sit at j = h*Wp + w with w < W.
    out = out_flat[:, :, :L_valid]
    out = jnp.pad(out, ((0, 0), (0, 0), (0, H * Wp - L_valid)))
    out = out.reshape(B, out_ch, H, Wp)[:, :, :, :W]
    return out


# ----------------------------------------------------------------------------
# Pure-JAX reference (same semantics) for a sanity check.
# ----------------------------------------------------------------------------
def reference(x, weight, bias, *, refer_band, guard_bands_h, guard_bands_w,
              threshold, init_gb):
    B, C, H, W = x.shape
    out_ch = weight.shape[0]
    N = 16
    rb = refer_band
    pad_h = guard_bands_h[-1] + rb
    pad_w = guard_bands_w[-1] + rb
    dx, dy = [], []
    init_index = 0
    for gbh in guard_bands_h:
        for gbw in guard_bands_w:
            if gbh == init_gb[0] and gbw == init_gb[1]:
                init_index = len(dx)
            ox, oy = _uni_prf_offsets(rb, gbh, gbw)
            dx.append(ox)
            dy.append(oy)
    G = len(dx)
    xp = jnp.pad(x, ((0, 0), (0, 0), (pad_h, pad_h), (pad_w, pad_w)))
    xc = x
    sims = []
    for g in range(G):
        s = jnp.zeros((B, H, W), jnp.float32)
        for n in range(N):
            oh = pad_h + int(dx[g][n]); ow = pad_w + int(dy[g][n])
            xr = xp[:, :, oh:oh + H, ow:ow + W]
            s = s + jax.nn.sigmoid(jnp.mean(xr * xc, axis=1))
        sims.append(s / N)
    sims = jnp.stack(sims, axis=-1)
    svals = jnp.sort(sims, axis=-1)
    sidx = jnp.argsort(sims, axis=-1)
    d = jnp.diff(svals, axis=-1)
    maxd = jnp.max(d, axis=-1)
    maxk = jnp.argmax(d, axis=-1)
    ori = jnp.take_along_axis(sidx, maxk[..., None], axis=-1)[..., 0]
    ori = jnp.where(maxd >= threshold, ori, init_index)
    w_f = jnp.asarray(weight).reshape(out_ch, C, N)
    acc = jnp.zeros((B, out_ch, H, W), jnp.float32)
    for n in range(N):
        xr_sel = jnp.zeros((B, C, H, W), jnp.float32)
        for g in range(G):
            oh = pad_h + int(dx[g][n]); ow = pad_w + int(dy[g][n])
            xr_sel = xr_sel + xp[:, :, oh:oh + H, ow:ow + W] * \
                (ori == g)[:, None, :, :].astype(jnp.float32)
        xprf_n = xc - xr_sel
        acc = acc + jnp.einsum('oc,bchw->bohw', w_f[:, :, n], xprf_n)
    return acc + jnp.asarray(bias)[None, :, None, None]


if __name__ == "__main__":
    # Small config consistent with the module (refer_band=1 -> N=16 ring).
    B, C, out_ch, H, W = 2, 4, 8, 16, 16
    refer_band = 1
    guard_bands_h = [1, 2]
    guard_bands_w = [1, 2]
    threshold = 0.5
    init_gb = (1, 1)

    key = jax.random.PRNGKey(0)
    kx, kw, kb = jax.random.split(key, 3)
    x = jax.random.normal(kx, (B, C, H, W), dtype=jnp.float32)
    weight = 0.1 * jax.random.normal(kw, (out_ch, C, 4, 4), dtype=jnp.float32)
    bias = 0.1 * jax.random.normal(kb, (out_ch,), dtype=jnp.float32)

    def make_fwd(dot_dtype):
        def f(xx, ww, bb):
            # ltile=128 -> several spatial tiles, exercising the L-tiling path.
            return adapkc2d_thre_forward(
                xx, ww, bb, refer_band=refer_band,
                guard_bands_h=guard_bands_h, guard_bands_w=guard_bands_w,
                threshold=threshold, init_gb=init_gb,
                ltile=128, dot_dtype=dot_dtype)
        return jax.jit(f)

    out_f32 = jax.block_until_ready(make_fwd(jnp.float32)(x, weight, bias))
    out_bf16 = jax.block_until_ready(make_fwd(jnp.bfloat16)(x, weight, bias))
    assert out_f32.shape == (B, out_ch, H, W)
    assert out_bf16.shape == (B, out_ch, H, W)
    assert bool(jnp.all(jnp.isfinite(out_f32)))
    assert bool(jnp.all(jnp.isfinite(out_bf16)))

    ref = jax.block_until_ready(reference(
        x, weight, bias, refer_band=refer_band, guard_bands_h=guard_bands_h,
        guard_bands_w=guard_bands_w, threshold=threshold, init_gb=init_gb))

    def frac_within(a, b, atol, rtol):
        ok = jnp.abs(a - b) <= (atol + rtol * jnp.abs(b))
        return float(jnp.mean(ok.astype(jnp.float32)))

    # f32 dot path: tight tolerance; allow <=1% pixels to flip on guard-band
    # selection near-ties (discrete argmax over floats).
    f32_frac = frac_within(out_f32, ref, 1e-4, 1e-4)
    assert f32_frac >= 0.99, f"f32 mismatch fraction too high: {1.0 - f32_frac:.4f}"
    # bf16 dot path: selection stays f32, only the conv values carry bf16
    # rounding -> loose tolerance.
    bf16_frac = frac_within(out_bf16, ref, 3e-2, 3e-2)
    assert bf16_frac >= 0.99, f"bf16 mismatch fraction too high: {1.0 - bf16_frac:.4f}"

    print("KERNEL_OK")
</pallas_src>

<mosaic_0001>
module attributes {stable_mosaic.version = 11 : i64} {
  func.func @_adapkc_kernel(%arg0: i32, %arg1: i32, %arg2: memref<1x1x4x384xf32, #tpu.memory_space<vmem>>, %arg3: memref<8x72xf32, #tpu.memory_space<vmem>>, %arg4: memref<8x1xf32, #tpu.memory_space<vmem>>, %arg5: memref<1x8x128xf32, #tpu.memory_space<vmem>>, %arg6: memref<72x128xf32, #tpu.memory_space<vmem>>) attributes {dimension_semantics = [#tpu.dimension_semantics<parallel>, #tpu.dimension_semantics<parallel>], iteration_bounds = array<i64: 2, 3>, scalar_prefetch = 0 : i64, scratch_operands = 1 : i64, tpu.core_type = #tpu.core_type<tc>, window_params = [{transform_indices = @transform_0, window_bounds = array<i64: 1, 1, 4, 384>}, {pipeline_mode = #tpu.pipeline_mode<synchronous>, transform_indices = @transform_1, window_bounds = array<i64: 8, 72>}, {pipeline_mode = #tpu.pipeline_mode<synchronous>, transform_indices = @transform_2, window_bounds = array<i64: 8, 1>}, {transform_indices = @transform_3, window_bounds = array<i64: 1, 8, 128>}]} {
    %c0 = arith.constant 0 : index
    %c0_0 = arith.constant 0 : index
    %c0_1 = arith.constant 0 : index
    %c69 = arith.constant 69 : index
    %0 = vector.load %arg2[%c0, %c0_0, %c0_1, %c69] : memref<1x1x4x384xf32, #tpu.memory_space<vmem>>, vector<1x1x4x128xf32>
    %1 = vector.shape_cast %0 : vector<1x1x4x128xf32> to vector<4x128xf32>
    %cst = arith.constant 0.000000e+00 : f32
    %2 = vector.broadcast %cst : f32 to vector<1x128xf32>
    %c0_2 = arith.constant 0 : index
    %c0_3 = arith.constant 0 : index
    %c0_4 = arith.constant 0 : index
    %c23 = arith.constant 23 : index
    %3 = vector.load %arg2[%c0_2, %c0_3, %c0_4, %c23] : memref<1x1x4x384xf32, #tpu.memory_space<vmem>>, vector<1x1x4x128xf32>
    %4 = vector.shape_cast %3 : vector<1x1x4x128xf32> to vector<4x128xf32>
    %5 = arith.mulf %4, %1 : vector<4x128xf32>
    %cst_5 = arith.constant dense<0.000000e+00> : vector<128xf32>
    %6 = vector.multi_reduction <add>, %5, %cst_5 [0] : vector<4x128xf32> to vector<128xf32>
    %7 = vector.shape_cast %6 : vector<128xf32> to vector<1x128xf32>
    %cst_6 = arith.constant 2.500000e-01 : f32
    %8 = vector.broadcast %cst_6 : f32 to vector<1x128xf32>
    %9 = arith.mulf %7, %8 : vector<1x128xf32>
    %10 = arith.negf %9 : vector<1x128xf32>
    %11 = math.exp %10 : vector<1x128xf32>
    %cst_7 = arith.constant 1.000000e+00 : f32
    %12 = vector.broadcast %cst_7 : f32 to vector<1x128xf32>
    %13 = arith.addf %12, %11 : vector<1x128xf32>
    %14 = arith.divf %12, %13 : vector<1x128xf32>
    %15 = arith.addf %2, %14 : vector<1x128xf32>
    %c0_8 = arith.constant 0 : index
    %c0_9 = arith.constant 0 : index
    %c0_10 = arith.constant 0 : index
    %c24 = arith.constant 24 : index
    %16 = vector.load %arg2[%c0_8, %c0_9, %c0_10, %c24] : memref<1x1x4x384xf32, #tpu.memory_space<vmem>>, vector<1x1x4x128xf32>
    %17 = vector.shape_cast %16 : vector<1x1x4x128xf32> to vector<4x128xf32>
    %18 = arith.mulf %17, %1 : vector<4x128xf32>
    %cst_11 = arith.constant dense<0.000000e+00> : vector<128xf32>
    %19 = vector.multi_reduction <add>, %18, %cst_11 [0] : vector<4x128xf32> to vector<128xf32>
    %20 = vector.shape_cast %19 : vector<128xf32> to vector<1x128xf32>
    %cst_12 = arith.constant 2.500000e-01 : f32
    %21 = vector.broadcast %cst_12 : f32 to vector<1x128xf32>
    %22 = arith.mulf %20, %21 : vector<1x128xf32>
    %23 = arith.negf %22 : vector<1x128xf32>
    %24 = math.exp %23 : vector<1x128xf32>
    %cst_13 = arith.constant 1.000000e+00 : f32
    %25 = vector.broadcast %cst_13 : f32 to vector<1x128xf32>
    %26 = arith.addf %25, %24 : vector<1x128xf32>
    %27 = arith.divf %25, %26 : vector<1x128xf32>
    %28 = arith.addf %15, %27 : vector<1x128xf32>
    %c0_14 = arith.constant 0 : index
    %c0_15 = arith.constant 0 : index
    %c0_16 = arith.constant 0 : index
    %c25 = arith.constant 25 : index
    %29 = vector.load %arg2[%c0_14, %c0_15, %c0_16, %c25] : memref<1x1x4x384xf32, #tpu.memory_space<vmem>>, vector<1x1x4x128xf32>
    %30 = vector.shape_cast %29 : vector<1x1x4x128xf32> to vector<4x128xf32>
    %31 = arith.mulf %30, %1 : vector<4x128xf32>
    %cst_17 = arith.constant dense<0.000000e+00> : vector<128xf32>
    %32 = vector.multi_reduction <add>, %31, %cst_17 [0] : vector<4x128xf32> to vector<128xf32>
    %33 = vector.shape_cast %32 : vector<128xf32> to vector<1x128xf32>
    %cst_18 = arith.constant 2.500000e-01 : f32
    %34 = vector.broadcast %cst_18 : f32 to vector<1x128xf32>
    %35 = arith.mulf %33, %34 : vector<1x128xf32>
    %36 = arith.negf %35 : vector<1x128xf32>
    %37 = math.exp %36 : vector<1x128xf32>
    %cst_19 = arith.constant 1.000000e+00 : f32
    %38 = vector.broadcast %cst_19 : f32 to vector<1x128xf32>
    %39 = arith.addf %38, %37 : vector<1x128xf32>
    %40 = arith.divf %38, %39 : vector<1x128xf32>
    %41 = arith.addf %28, %40 : vector<1x128xf32>
    %c0_20 = arith.constant 0 : index
    %c0_21 = arith.constant 0 : index
    %c0_22 = arith.constant 0 : index
    %c26 = arith.constant 26 : index
    %42 = vector.load %arg2[%c0_20, %c0_21, %c0_22, %c26] : memref<1x1x4x384xf32, #tpu.memory_space<vmem>>, vector<1x1x4x128xf32>
    %43 = vector.shape_cast %42 : vector<1x1x4x128xf32> to vector<4x128xf32>
    %44 = arith.mulf %43, %1 : vector<4x128xf32>
    %cst_23 = arith.constant dense<0.000000e+00> : vector<128xf32>
    %45 = vector.multi_reduction <add>, %44, %cst_23 [0] : vector<4x128xf32> to vector<128xf32>
    %46 = vector.shape_cast %45 : vector<128xf32> to vector<1x128xf32>
    %cst_24 = arith.constant 2.500000e-01 : f32
    %47 = vector.broadcast %cst_24 : f32 to vector<1x128xf32>
    %48 = arith.mulf %46, %47 : vector<1x128xf32>
    %49 = arith.negf %48 : vector<1x128xf32>
    %50 = math.exp %49 : vector<1x128xf32>
    %cst_25 = arith.constant 1.000000e+00 : f32
    %51 = vector.broadcast %cst_25 : f32 to vector<1x128xf32>
    %52 = arith.addf %51, %50 : vector<1x128xf32>
    %53 = arith.divf %51, %52 : vector<1x128xf32>
    %54 = arith.addf %41, %53 : vector<1x128xf32>
    %c0_26 = arith.constant 0 : index
    %c0_27 = arith.constant 0 : index
    %c0_28 = arith.constant 0 : index
    %c27 = arith.constant 27 : index
    %55 = vector.load %arg2[%c0_26, %c0_27, %c0_28, %c27] : memref<1x1x4x384xf32, #tpu.memory_space<vmem>>, vector<1x1x4x128xf32>
    %56 = vector.shape_cast %55 : vector<1x1x4x128xf32> to vector<4x128xf32>
    %57 = arith.mulf %56, %1 : vector<4x128xf32>
    %cst_29 = arith.constant dense<0.000000e+00> : vector<128xf32>
    %58 = vector.multi_reduction <add>, %57, %cst_29 [0] : vector<4x128xf32> to vector<128xf32>
    %59 = vector.shape_cast %58 : vector<128xf32> to vector<1x128xf32>
    %cst_30 = arith.constant 2.500000e-01 : f32
    %60 = vector.broadcast %cst_30 : f32 to vector<1x128xf32>
    %61 = arith.mulf %59, %60 : vector<1x128xf32>
    %62 = arith.negf %61 : vector<1x128xf32>
    %63 = math.exp %62 : vector<1x128xf32>
    %cst_31 = arith.constant 1.000000e+00 : f32
    %64 = vector.broadcast %cst_31 : f32 to vector<1x128xf32>
    %65 = arith.addf %64, %63 : vector<1x128xf32>
    %66 = arith.divf %64, %65 : vector<1x128xf32>
    %67 = arith.addf %54, %66 : vector<1x128xf32>
    %c0_32 = arith.constant 0 : index
    %c0_33 = arith.constant 0 : index
    %c0_34 = arith.constant 0 : index
    %c49 = arith.constant 49 : index
    %68 = vector.load %arg2[%c0_32, %c0_33, %c0_34, %c49] : memref<1x1x4x384xf32, #tpu.memory_space<vmem>>, vector<1x1x4x128xf32>
    %69 = vector.shape_cast %68 : vector<1x1x4x128xf32> to vector<4x128xf32>
    %70 = arith.mulf %69, %1 : vector<4x128xf32>
    %cst_35 = arith.constant dense<0.000000e+00> : vector<128xf32>
    %71 = vector.multi_reduction <add>, %70, %cst_35 [0] : vector<4x128xf32> to vector<128xf32>
    %72 = vector.shape_cast %71 : vector<128xf32> to vector<1x128xf32>
    %cst_36 = arith.constant 2.500000e-01 : f32
    %73 = vector.broadcast %cst_36 : f32 to vector<1x128xf32>
    %74 = arith.mulf %72, %73 : vector<1x128xf32>
    %75 = arith.negf %74 : vector<1x128xf32>
    %76 = math.exp %75 : vector<1x128xf32>
    %cst_37 = arith.constant 1.000000e+00 : f32
    %77 = vector.broadcast %cst_37 : f32 to vector<1x128xf32>
    %78 = arith.addf %77, %76 : vector<1x128xf32>
    %79 = arith.divf %77, %78 : vector<1x128xf32>
    %80 = arith.addf %67, %79 : vector<1x128xf32>
    %c0_38 = arith.constant 0 : index
    %c0_39 = arith.constant 0 : index
    %c0_40 = arith.constant 0 : index
    %c71 = arith.constant 71 : index
    %81 = vector.load %arg2[%c0_38, %c0_39, %c0_40, %c71] : memref<1x1x4x384xf32, #tpu.memory_space<vmem>>, vector<1x1x4x128xf32>
    %82 = vector.shape_cast %81 : vector<1x1x4x128xf32> to vector<4x128xf32>
    %83 = arith.mulf %82, %1 : vector<4x128xf32>
    %cst_41 = arith.constant dense<0.000000e+00> : vector<128xf32>
    %84 = vector.multi_reduction <add>, %83, %cst_41 [0] : vector<4x128xf32> to vector<128xf32>
    %85 = vector.shape_cast %84 : vector<128xf32> to vector<1x128xf32>
    %cst_42 = arith.constant 2.500000e-01 : f32
    %86 = vector.broadcast %cst_42 : f32 to vector<1x128xf32>
    %87 = arith.mulf %85, %86 : vector<1x128xf32>
    %88 = arith.negf %87 : vector<1x128xf32>
    %89 = math.exp %88 : vector<1x128xf32>
    %cst_43 = arith.constant 1.000000e+00 : f32
    %90 = vector.broadcast %cst_43 : f32 to vector<1x128xf32>
    %91 = arith.addf %90, %89 : vector<1x128xf32>
    %92 = arith.divf %90, %91 : vector<1x128xf32>
    %93 = arith.addf %80, %92 : vector<1x128xf32>
    %c0_44 = arith.constant 0 : index
    %c0_45 = arith.constant 0 : index
    %c0_46 = arith.constant 0 : index
    %c93 = arith.constant 93 : index
    %94 = vector.load %arg2[%c0_44, %c0_45, %c0_46, %c93] : memref<1x1x4x384xf32, #tpu.memory_space<vmem>>, vector<1x1x4x128xf32>
    %95 = vector.shape_cast %94 : vector<1x1x4x128xf32> to vector<4x128xf32>
    %96 = arith.mulf %95, %1 : vector<4x128xf32>
    %cst_47 = arith.constant dense<0.000000e+00> : vector<128xf32>
    %97 = vector.multi_reduction <add>, %96, %cst_47 [0] : vector<4x128xf32> to vector<128xf32>
    %98 = vector.shape_cast %97 : vector<128xf32> to vector<1x128xf32>
    %cst_48 = arith.constant 2.500000e-01 : f32
    %99 = vector.broadcast %cst_48 : f32 to vector<1x128xf32>
    %100 = arith.mulf %98, %99 : vector<1x128xf32>
    %101 = arith.negf %100 : vector<1x128xf32>
    %102 = math.exp %101 : vector<1x128xf32>
    %cst_49 = arith.constant 1.000000e+00 : f32
    %103 = vector.broadcast %cst_49 : f32 to vector<1x128xf32>
    %104 = arith.addf %103, %102 : vector<1x128xf32>
    %105 = arith.divf %103, %104 : vector<1x128xf32>
    %106 = arith.addf %93, %105 : vector<1x128xf32>
    %c0_50 = arith.constant 0 : index
    %c0_51 = arith.constant 0 : index
    %c0_52 = arith.constant 0 : index
    %c111 = arith.constant 111 : index
    %107 = vector.load %arg2[%c0_50, %c0_51, %c0_52, %c111] : memref<1x1x4x384xf32, #tpu.memory_space<vmem>>, vector<1x1x4x128xf32>
    %108 = vector.shape_cast %107 : vector<1x1x4x128xf32> to vector<4x128xf32>
    %109 = arith.mulf %108, %1 : vector<4x128xf32>
    %cst_53 = arith.constant dense<0.000000e+00> : vector<128xf32>
    %110 = vector.multi_reduction <add>, %109, %cst_53 [0] : vector<4x128xf32> to vector<128xf32>
    %111 = vector.shape_cast %110 : vector<128xf32> to vector<1x128xf32>
    %cst_54 = arith.constant 2.500000e-01 : f32
    %112 = vector.broadcast %cst_54 : f32 to vector<1x128xf32>
    %113 = arith.mulf %111, %112 : vector<1x128xf32>
    %114 = arith.negf %113 : vector<1x128xf32>
    %115 = math.exp %114 : vector<1x128xf32>
    %cst_55 = arith.constant 1.000000e+00 : f32
    %116 = vector.broadcast %cst_55 : f32 to vector<1x128xf32>
    %117 = arith.addf %116, %115 : vector<1x128xf32>
    %118 = arith.divf %116, %117 : vector<1x128xf32>
    %119 = arith.addf %106, %118 : vector<1x128xf32>
    %c0_56 = arith.constant 0 : index
    %c0_57 = arith.constant 0 : index
    %c0_58 = arith.constant 0 : index
    %c112 = arith.constant 112 : index
    %120 = vector.load %arg2[%c0_56, %c0_57, %c0_58, %c112] : memref<1x1x4x384xf32, #tpu.memory_space<vmem>>, vector<1x1x4x128xf32>
    %121 = vector.shape_cast %120 : vector<1x1x4x128xf32> to vector<4x128xf32>
    %122 = arith.mulf %121, %1 : vector<4x128xf32>
    %cst_59 = arith.constant dense<0.000000e+00> : vector<128xf32>
    %123 = vector.multi_reduction <add>, %122, %cst_59 [0] : vector<4x128xf32> to vector<128xf32>
    %124 = vector.shape_cast %123 : vector<128xf32> to vector<1x128xf32>
    %cst_60 = arith.constant 2.500000e-01 : f32
    %125 = vector.broadcast %cst_60 : f32 to vector<1x128xf32>
    %126 = arith.mulf %124, %125 : vector<1x128xf32>
    %127 = arith.negf %126 : vector<1x128xf32>
    %128 = math.exp %127 : vector<1x128xf32>
    %cst_61 = arith.constant 1.000000e+00 : f32
    %129 = vector.broadcast %cst_61 : f32 to vector<1x128xf32>
    %130 = arith.addf %129, %128 : vector<1x128xf32>
    %131 = arith.divf %129, %130 : vector<1x128xf32>
    %132 = arith.addf %119, %131 : vector<1x128xf32>
    %c0_62 = arith.constant 0 : index
    %c0_63 = arith.constant 0 : index
    %c0_64 = arith.constant 0 : index
    %c113 = arith.constant 113 : index
    %133 = vector.load %arg2[%c0_62, %c0_63, %c0_64, %c113] : memref<1x1x4x384xf32, #tpu.memory_space<vmem>>, vector<1x1x4x128xf32>
    %134 = vector.shape_cast %133 : vector<1x1x4x128xf32> to vector<4x128xf32>
    %135 = arith.mulf %134, %1 : vector<4x128xf32>
    %cst_65 = arith.constant dense<0.000000e+00> : vector<128xf32>
    %136 = vector.multi_reduction <add>, %135, %cst_65 [0] : vector<4x128xf32> to vector<128xf32>
    %137 = vector.shape_cast %136 : vector<128xf32> to vector<1x128xf32>
    %cst_66 = arith.constant 2.500000e-01 : f32
    %138 = vector.broadcast %cst_66 : f32 to vector<1x128xf32>
    %139 = arith.mulf %137, %138 : vector<1x128xf32>
    %140 = arith.negf %139 : vector<1x128xf32>
    %141 = math.exp %140 : vector<1x128xf32>
    %cst_67 = arith.constant 1.000000e+00 : f32
    %142 = vector.broadcast %cst_67 : f32 to vector<1x128xf32>
    %143 = arith.addf %142, %141 : vector<1x128xf32>
    %144 = arith.divf %142, %143 : vector<1x128xf32>
    %145 = arith.addf %132, %144 : vector<1x128xf32>
    %c0_68 = arith.constant 0 : index
    %c0_69 = arith.constant 0 : index
    %c0_70 = arith.constant 0 : index
    %c114 = arith.constant 114 : index
    %146 = vector.load %arg2[%c0_68, %c0_69, %c0_70, %c114] : memref<1x1x4x384xf32, #tpu.memory_space<vmem>>, vector<1x1x4x128xf32>
    %147 = vector.shape_cast %146 : vector<1x1x4x128xf32> to vector<4x128xf32>
    %148 = arith.mulf %147, %1 : vector<4x128xf32>
    %cst_71 = arith.constant dense<0.000000e+00> : vector<128xf32>
    %149 = vector.multi_reduction <add>, %148, %cst_71 [0] : vector<4x128xf32> to vector<128xf32>
    %150 = vector.shape_cast %149 : vector<128xf32> to vector<1x128xf32>
    %cst_72 = arith.constant 2.500000e-01 : f32
    %151 = vector.broadcast %cst_72 : f32 to vector<1x128xf32>
    %152 = arith.mulf %150, %151 : vector<1x128xf32>
    %153 = arith.negf %152 : vector<1x128xf32>
    %154 = math.exp %153 : vector<1x128xf32>
    %cst_73 = arith.constant 1.000000e+00 : f32
    %155 = vector.broadcast %cst_73 : f32 to vector<1x128xf32>
    %156 = arith.addf %155, %154 : vector<1x128xf32>
    %157 = arith.divf %155, %156 : vector<1x128xf32>
    %158 = arith.addf %145, %157 : vector<1x128xf32>
    %c0_74 = arith.constant 0 : index
    %c0_75 = arith.constant 0 : index
    %c0_76 = arith.constant 0 : index
    %c115 = arith.constant 115 : index
    %159 = vector.load %arg2[%c0_74, %c0_75, %c0_76, %c115] : memref<1x1x4x384xf32, #tpu.memory_space<vmem>>, vector<1x1x4x128xf32>
    %160 = vector.shape_cast %159 : vector<1x1x4x128xf32> to vector<4x128xf32>
    %161 = arith.mulf %160, %1 : vector<4x128xf32>
    %cst_77 = arith.constant dense<0.000000e+00> : vector<128xf32>
    %162 = vector.multi_reduction <add>, %161, %cst_77 [0] : vector<4x128xf32> to vector<128xf32>
    %163 = vector.shape_cast %162 : vector<128xf32> to vector<1x128xf32>
    %cst_78 = arith.constant 2.500000e-01 : f32
    %164 = vector.broadcast %cst_78 : f32 to vector<1x128xf32>
    %165 = arith.mulf %163, %164 : vector<1x128xf32>
    %166 = arith.negf %165 : vector<1x128xf32>
    %167 = math.exp %166 : vector<1x128xf32>
    %cst_79 = arith.constant 1.000000e+00 : f32
    %168 = vector.broadcast %cst_79 : f32 to vector<1x128xf32>
    %169 = arith.addf %168, %167 : vector<1x128xf32>
    %170 = arith.divf %168, %169 : vector<1x128xf32>
    %171 = arith.addf %158, %170 : vector<1x128xf32>
    %c0_80 = arith.constant 0 : index
    %c0_81 = arith.constant 0 : index
    %c0_82 = arith.constant 0 : index
    %c45 = arith.constant 45 : index
    %172 = vector.load %arg2[%c0_80, %c0_81, %c0_82, %c45] : memref<1x1x4x384xf32, #tpu.memory_space<vmem>>, vector<1x1x4x128xf32>
    %173 = vector.shape_cast %172 : vector<1x1x4x128xf32> to vector<4x128xf32>
    %174 = arith.mulf %173, %1 : vector<4x128xf32>
    %cst_83 = arith.constant dense<0.000000e+00> : vector<128xf32>
    %175 = vector.multi_reduction <add>, %174, %cst_83 [0] : vector<4x128xf32> to vector<128xf32>
    %176 = vector.shape_cast %175 : vector<128xf32> to vector<1x128xf32>
    %cst_84 = arith.constant 2.500000e-01 : f32
    %177 = vector.broadcast %cst_84 : f32 to vector<1x128xf32>
    %178 = arith.mulf %176, %177 : vector<1x128xf32>
    %179 = arith.negf %178 : vector<1x128xf32>
    %180 = math.exp %179 : vector<1x128xf32>
    %cst_85 = arith.constant 1.000000e+00 : f32
    %181 = vector.broadcast %cst_85 : f32 to vector<1x128xf32>
    %182 = arith.addf %181, %180 : vector<1x128xf32>
    %183 = arith.divf %181, %182 : vector<1x128xf32>
    %184 = arith.addf %171, %183 : vector<1x128xf32>
    %c0_86 = arith.constant 0 : index
    %c0_87 = arith.constant 0 : index
    %c0_88 = arith.constant 0 : index
    %c67 = arith.constant 67 : index
    %185 = vector.load %arg2[%c0_86, %c0_87, %c0_88, %c67] : memref<1x1x4x384xf32, #tpu.memory_space<vmem>>, vector<1x1x4x128xf32>
    %186 = vector.shape_cast %185 : vector<1x1x4x128xf32> to vector<4x128xf32>
    %187 = arith.mulf %186, %1 : vector<4x128xf32>
    %cst_89 = arith.constant dense<0.000000e+00> : vector<128xf32>
    %188 = vector.multi_reduction <add>, %187, %cst_89 [0] : vector<4x128xf32> to vector<128xf32>
    %189 = vector.shape_cast %188 : vector<128xf32> to vector<1x128xf32>
    %cst_90 = arith.constant 2.500000e-01 : f32
    %190 = vector.broadcast %cst_90 : f32 to vector<1x128xf32>
    %191 = arith.mulf %189, %190 : vector<1x128xf32>
    %192 = arith.negf %191 : vector<1x128xf32>
    %193 = math.exp %192 : vector<1x128xf32>
    %cst_91 = arith.constant 1.000000e+00 : f32
    %194 = vector.broadcast %cst_91 : f32 to vector<1x128xf32>
    %195 = arith.addf %194, %193 : vector<1x128xf32>
    %196 = arith.divf %194, %195 : vector<1x128xf32>
    %197 = arith.addf %184, %196 : vector<1x128xf32>
    %c0_92 = arith.constant 0 : index
    %c0_93 = arith.constant 0 : index
    %c0_94 = arith.constant 0 : index
    %c89 = arith.constant 89 : index
    %198 = vector.load %arg2[%c0_92, %c0_93, %c0_94, %c89] : memref<1x1x4x384xf32, #tpu.memory_space<vmem>>, vector<1x1x4x128xf32>
    %199 = vector.shape_cast %198 : vector<1x1x4x128xf32> to vector<4x128xf32>
    %200 = arith.mulf %199, %1 : vector<4x128xf32>
    %cst_95 = arith.constant dense<0.000000e+00> : vector<128xf32>
    %201 = vector.multi_reduction <add>, %200, %cst_95 [0] : vector<4x128xf32> to vector<128xf32>
    %202 = vector.shape_cast %201 : vector<128xf32> to vector<1x128xf32>
    %cst_96 = arith.constant 2.500000e-01 : f32
    %203 = vector.broadcast %cst_96 : f32 to vector<1x128xf32>
    %204 = arith.mulf %202, %203 : vector<1x128xf32>
    %205 = arith.negf %204 : vector<1x128xf32>
    %206 = math.exp %205 : vector<1x128xf32>
    %cst_97 = arith.constant 1.000000e+00 : f32
    %207 = vector.broadcast %cst_97 : f32 to vector<1x128xf32>
    %208 = arith.addf %207, %206 : vector<1x128xf32>
    %209 = arith.divf %207, %208 : vector<1x128xf32>
    %210 = arith.addf %197, %209 : vector<1x128xf32>
    %cst_98 = arith.constant 6.250000e-02 : f32
    %211 = vector.broadcast %cst_98 : f32 to vector<1x128xf32>
    %212 = arith.mulf %210, %211 : vector<1x128xf32>
    %cst_99 = arith.constant 0.000000e+00 : f32
    %213 = vector.broadcast %cst_99 : f32 to vector<1x128xf32>
    %c0_100 = arith.constant 0 : index
    %c0_101 = arith.constant 0 : index
    %c0_102 = arith.constant 0 : index
    %c22 = arith.constant 22 : index
    %214 = vector.load %arg2[%c0_100, %c0_101, %c0_102, %c22] : memref<1x1x4x384xf32, #tpu.memory_space<vmem>>, vector<1x1x4x128xf32>
    %215 = vector.shape_cast %214 : vector<1x1x4x128xf32> to vector<4x128xf32>
    %216 = arith.mulf %215, %1 : vector<4x128xf32>
    %cst_103 = arith.constant dense<0.000000e+00> : vector<128xf32>
    %217 = vector.multi_reduction <add>, %216, %cst_103 [0] : vector<4x128xf32> to vector<128xf32>
    %218 = vector.shape_cast %217 : vector<128xf32> to vector<1x128xf32>
    %cst_104 = arith.constant 2.500000e-01 : f32
    %219 = vector.broadcast %cst_104 : f32 to vector<1x128xf32>
    %220 = arith.mulf %218, %219 : vector<1x128xf32>
    %221 = arith.negf %220 : vector<1x128xf32>
    %222 = math.exp %221 : vector<1x128xf32>
    %cst_105 = arith.constant 1.000000e+00 : f32
    %223 = vector.broadcast %cst_105 : f32 to vector<1x128xf32>
    %224 = arith.addf %223, %222 : vector<1x128xf32>
    %225 = arith.divf %223, %224 : vector<1x128xf32>
    %226 = arith.addf %213, %225 : vector<1x128xf32>
    %c0_106 = arith.constant 0 : index
    %c0_107 = arith.constant 0 : index
    %c0_108 = arith.constant 0 : index
    %c24_109 = arith.constant 24 : index
    %227 = vector.load %arg2[%c0_106, %c0_107, %c0_108, %c24_109] : memref<1x1x4x384xf32, #tpu.memory_space<vmem>>, vector<1x1x4x128xf32>
    %228 = vector.shape_cast %227 : vector<1x1x4x128xf32> to vector<4x128xf32>
    %229 = arith.mulf %228, %1 : vector<4x128xf32>
    %cst_110 = arith.constant dense<0.000000e+00> : vector<128xf32>
    %230 = vector.multi_reduction <add>, %229, %cst_110 [0] : vector<4x128xf32> to vector<128xf32>
    %231 = vector.shape_cast %230 : vector<128xf32> to vector<1x128xf32>
    %cst_111 = arith.constant 2.500000e-01 : f32
    %232 = vector.broadcast %cst_111 : f32 to vector<1x128xf32>
    %233 = arith.mulf %231, %232 : vector<1x128xf32>
    %234 = arith.negf %233 : vector<1x128xf32>
    %235 = math.exp %234 : vector<1x128xf32>
    %cst_112 = arith.constant 1.000000e+00 : f32
    %236 = vector.broadcast %cst_112 : f32 to vector<1x128xf32>
    %237 = arith.addf %236, %235 : vector<1x128xf32>
    %238 = arith.divf %236, %237 : vector<1x128xf32>
    %239 = arith.addf %226, %238 : vector<1x128xf32>
    %c0_113 = arith.constant 0 : index
    %c0_114 = arith.constant 0 : index
    %c0_115 = arith.constant 0 : index
    %c25_116 = arith.constant 25 : index
    %240 = vector.load %arg2[%c0_113, %c0_114, %c0_115, %c25_116] : memref<1x1x4x384xf32, #tpu.memory_space<vmem>>, vector<1x1x4x128xf32>
    %241 = vector.shape_cast %240 : vector<1x1x4x128xf32> to vector<4x128xf32>
    %242 = arith.mulf %241, %1 : vector<4x128xf32>
    %cst_117 = arith.constant dense<0.000000e+00> : vector<128xf32>
    %243 = vector.multi_reduction <add>, %242, %cst_117 [0] : vector<4x128xf32> to vector<128xf32>
    %244 = vector.shape_cast %243 : vector<128xf32> to vector<1x128xf32>
    %cst_118 = arith.constant 2.500000e-01 : f32
    %245 = vector.broadcast %cst_118 : f32 to vector<1x128xf32>
    %246 = arith.mulf %244, %245 : vector<1x128xf32>
    %247 = arith.negf %246 : vector<1x128xf32>
    %248 = math.exp %247 : vector<1x128xf32>
    %cst_119 = arith.constant 1.000000e+00 : f32
    %249 = vector.broadcast %cst_119 : f32 to vector<1x128xf32>
    %250 = arith.addf %249, %248 : vector<1x128xf32>
    %251 = arith.divf %249, %250 : vector<1x128xf32>
    %252 = arith.addf %239, %251 : vector<1x128xf32>
    %c0_120 = arith.constant 0 : index
    %c0_121 = arith.constant 0 : index
    %c0_122 = arith.constant 0 : index
    %c26_123 = arith.constant 26 : index
    %253 = vector.load %arg2[%c0_120, %c0_121, %c0_122, %c26_123] : memref<1x1x4x384xf32, #tpu.memory_space<vmem>>, vector<1x1x4x128xf32>
    %254 = vector.shape_cast %253 : vector<1x1x4x128xf32> to vector<4x128xf32>
    %255 = arith.mulf %254, %1 : vector<4x128xf32>
    %cst_124 = arith.constant dense<0.000000e+00> : vector<128xf32>
    %256 = vector.multi_reduction <add>, %255, %cst_124 [0] : vector<4x128xf32> to vector<128xf32>
    %257 = vector.shape_cast %256 : vector<128xf32> to vector<1x128xf32>
    %cst_125 = arith.constant 2.500000e-01 : f32
    %258 = vector.broadcast %cst_125 : f32 to vector<1x128xf32>
    %259 = arith.mulf %257, %258 : vector<1x128xf32>
    %260 = arith.negf %259 : vector<1x128xf32>
    %261 = math.exp %260 : vector<1x128xf32>
    %cst_126 = arith.constant 1.000000e+00 : f32
    %262 = vector.broadcast %cst_126 : f32 to vector<1x128xf32>
    %263 = arith.addf %262, %261 : vector<1x128xf32>
    %264 = arith.divf %262, %263 : vector<1x128xf32>
    %265 = arith.addf %252, %264 : vector<1x128xf32>
    %c0_127 = arith.constant 0 : index
    %c0_128 = arith.constant 0 : index
    %c0_129 = arith.constant 0 : index
    %c28 = arith.constant 28 : index
    %266 = vector.load %arg2[%c0_127, %c0_128, %c0_129, %c28] : memref<1x1x4x384xf32, #tpu.memory_space<vmem>>, vector<1x1x4x128xf32>
    %267 = vector.shape_cast %266 : vector<1x1x4x128xf32> to vector<4x128xf32>
    %268 = arith.mulf %267, %1 : vector<4x128xf32>
    %cst_130 = arith.constant dense<0.000000e+00> : vector<128xf32>
    %269 = vector.multi_reduction <add>, %268, %cst_130 [0] : vector<4x128xf32> to vector<128xf32>
    %270 = vector.shape_cast %269 : vector<128xf32> to vector<1x128xf32>
    %cst_131 = arith.constant 2.500000e-01 : f32
    %271 = vector.broadcast %cst_131 : f32 to vector<1x128xf32>
    %272 = arith.mulf %270, %271 : vector<1x128xf32>
    %273 = arith.negf %272 : vector<1x128xf32>
    %274 = math.exp %273 : vector<1x128xf32>
    %cst_132 = arith.constant 1.000000e+00 : f32
    %275 = vector.broadcast %cst_132 : f32 to vector<1x128xf32>
    %276 = arith.addf %275, %274 : vector<1x128xf32>
    %277 = arith.divf %275, %276 : vector<1x128xf32>
    %278 = arith.addf %265, %277 : vector<1x128xf32>
    %c0_133 = arith.constant 0 : index
    %c0_134 = arith.constant 0 : index
    %c0_135 = arith.constant 0 : index
    %c50 = arith.constant 50 : index
    %279 = vector.load %arg2[%c0_133, %c0_134, %c0_135, %c50] : memref<1x1x4x384xf32, #tpu.memory_space<vmem>>, vector<1x1x4x128xf32>
    %280 = vector.shape_cast %279 : vector<1x1x4x128xf32> to vector<4x128xf32>
    %281 = arith.mulf %280, %1 : vector<4x128xf32>
    %cst_136 = arith.constant dense<0.000000e+00> : vector<128xf32>
    %282 = vector.multi_reduction <add>, %281, %cst_136 [0] : vector<4x128xf32> to vector<128xf32>
    %283 = vector.shape_cast %282 : vector<128xf32> to vector<1x128xf32>
    %cst_137 = arith.constant 2.500000e-01 : f32
    %284 = vector.broadcast %cst_137 : f32 to vector<1x128xf32>
    %285 = arith.mulf %283, %284 : vector<1x128xf32>
    %286 = arith.negf %285 : vector<1x128xf32>
    %287 = math.exp %286 : vector<1x128xf32>
    %cst_138 = arith.constant 1.000000e+00 : f32
    %288 = vector.broadcast %cst_138 : f32 to vector<1x128xf32>
    %289 = arith.addf %288, %287 : vector<1x128xf32>
    %290 = arith.divf %288, %289 : vector<1x128xf32>
    %291 = arith.addf %278, %290 : vector<1x128xf32>
    %c0_139 = arith.constant 0 : index
    %c0_140 = arith.constant 0 : index
    %c0_141 = arith.constant 0 : index
    %c72 = arith.constant 72 : index
    %292 = vector.load %arg2[%c0_139, %c0_140, %c0_141, %c72] : memref<1x1x4x384xf32, #tpu.memory_space<vmem>>, vector<1x1x4x128xf32>
    %293 = vector.shape_cast %292 : vector<1x1x4x128xf32> to vector<4x128xf32>
    %294 = arith.mulf %293, %1 : vector<4x128xf32>
    %cst_142 = arith.constant dense<0.000000e+00> : vector<128xf32>
    %295 = vector.multi_reduction <add>, %294, %cst_142 [0] : vector<4x128xf32> to vector<128xf32>
    %296 = vector.shape_cast %295 : vector<128xf32> to vector<1x128xf32>
    %cst_143 = arith.constant 2.500000e-01 : f32
    %297 = vector.broadcast %cst_143 : f32 to vector<1x128xf32>
    %298 = arith.mulf %296, %297 : vector<1x128xf32>
    %299 = arith.negf %298 : vector<1x128xf32>
    %300 = math.exp %299 : vector<1x128xf32>
    %cst_144 = arith.constant 1.000000e+00 : f32
    %301 = vector.broadcast %cst_144 : f32 to vector<1x128xf32>
    %302 = arith.addf %301, %300 : vector<1x128xf32>
    %303 = arith.divf %301, %302 : vector<1x128xf32>
    %304 = arith.addf %291, %303 : vector<1x128xf32>
    %c0_145 = arith.constant 0 : index
    %c0_146 = arith.constant 0 : index
    %c0_147 = arith.constant 0 : index
    %c94 = arith.constant 94 : index
    %305 = vector.load %arg2[%c0_145, %c0_146, %c0_147, %c94] : memref<1x1x4x384xf32, #tpu.memory_space<vmem>>, vector<1x1x4x128xf32>
    %306 = vector.shape_cast %305 : vector<1x1x4x128xf32> to vector<4x128xf32>
    %307 = arith.mulf %306, %1 : vector<4x128xf32>
    %cst_148 = arith.constant dense<0.000000e+00> : vector<128xf32>
    %308 = vector.multi_reduction <add>, %307, %cst_148 [0] : vector<4x128xf32> to vector<128xf32>
    %309 = vector.shape_cast %308 : vector<128xf32> to vector<1x128xf32>
    %cst_149 = arith.constant 2.500000e-01 : f32
    %310 = vector.broadcast %cst_149 : f32 to vector<1x128xf32>
    %311 = arith.mulf %309, %310 : vector<1x128xf32>
    %312 = arith.negf %311 : vector<1x128xf32>
    %313 = math.exp %312 : vector<1x128xf32>
    %cst_150 = arith.constant 1.000000e+00 : f32
    %314 = vector.broadcast %cst_150 : f32 to vector<1x128xf32>
    %315 = arith.addf %314, %313 : vector<1x128xf32>
    %316 = arith.divf %314, %315 : vector<1x128xf32>
    %317 = arith.addf %304, %316 : vector<1x128xf32>
    %c0_151 = arith.constant 0 : index
    %c0_152 = arith.constant 0 : index
    %c0_153 = arith.constant 0 : index
    %c110 = arith.constant 110 : index
    %318 = vector.load %arg2[%c0_151, %c0_152, %c0_153, %c110] : memref<1x1x4x384xf32, #tpu.memory_space<vmem>>, vector<1x1x4x128xf32>
    %319 = vector.shape_cast %318 : vector<1x1x4x128xf32> to vector<4x128xf32>
    %320 = arith.mulf %319, %1 : vector<4x128xf32>
    %cst_154 = arith.constant dense<0.000000e+00> : vector<128xf32>
    %321 = vector.multi_reduction <add>, %320, %cst_154 [0] : vector<4x128xf32> to vector<128xf32>
    %322 = vector.shape_cast %321 : vector<128xf32> to vector<1x128xf32>
    %cst_155 = arith.constant 2.500000e-01 : f32
    %323 = vector.broadcast %cst_155 : f32 to vector<1x128xf32>
    %324 = arith.mulf %322, %323 : vector<1x128xf32>
    %325 = arith.negf %324 : vector<1x128xf32>
    %326 = math.exp %325 : vector<1x128xf32>
    %cst_156 = arith.constant 1.000000e+00 : f32
    %327 = vector.broadcast %cst_156 : f32 to vector<1x128xf32>
    %328 = arith.addf %327, %326 : vector<1x128xf32>
    %329 = arith.divf %327, %328 : vector<1x128xf32>
    %330 = arith.addf %317, %329 : vector<1x128xf32>
    %c0_157 = arith.constant 0 : index
    %c0_158 = arith.constant 0 : index
    %c0_159 = arith.constant 0 : index
    %c112_160 = arith.constant 112 : index
    %331 = vector.load %arg2[%c0_157, %c0_158, %c0_159, %c112_160] : memref<1x1x4x384xf32, #tpu.memory_space<vmem>>, vector<1x1x4x128xf32>
    %332 = vector.shape_cast %331 : vector<1x1x4x128xf32> to vector<4x128xf32>
    %333 = arith.mulf %332, %1 : vector<4x128xf32>
    %cst_161 = arith.constant dense<0.000000e+00> : vector<128xf32>
    %334 = vector.multi_reduction <add>, %333, %cst_161 [0] : vector<4x128xf32> to vector<128xf32>
    %335 = vector.shape_cast %334 : vector<128xf32> to vector<1x128xf32>
    %cst_162 = arith.constant 2.500000e-01 : f32
    %336 = vector.broadcast %cst_162 : f32 to vector<1x128xf32>
    %337 = arith.mulf %335, %336 : vector<1x128xf32>
    %338 = arith.negf %337 : vector<1x128xf32>
    %339 = math.exp %338 : vector<1x128xf32>
    %cst_163 = arith.constant 1.000000e+00 : f32
    %340 = vector.broadcast %cst_163 : f32 to vector<1x128xf32>
    %341 = arith.addf %340, %339 : vector<1x128xf32>
    %342 = arith.divf %340, %341 : vector<1x128xf32>
    %343 = arith.addf %330, %342 : vector<1x128xf32>
    %c0_164 = arith.constant 0 : index
    %c0_165 = arith.constant 0 : index
    %c0_166 = arith.constant 0 : index
    %c113_167 = arith.constant 113 : index
    %344 = vector.load %arg2[%c0_164, %c0_165, %c0_166, %c113_167] : memref<1x1x4x384xf32, #tpu.memory_space<vmem>>, vector<1x1x4x128xf32>
    %345 = vector.shape_cast %344 : vector<1x1x4x128xf32> to vector<4x128xf32>
    %346 = arith.mulf %345, %1 : vector<4x128xf32>
    %cst_168 = arith.constant dense<0.000000e+00> : vector<128xf32>
    %347 = vector.multi_reduction <add>, %346, %cst_168 [0] : vector<4x128xf32> to vector<128xf32>
    %348 = vector.shape_cast %347 : vector<128xf32> to vector<1x128xf32>
    %cst_169 = arith.constant 2.500000e-01 : f32
    %349 = vector.broadcast %cst_169 : f32 to vector<1x128xf32>
    %350 = arith.mulf %348, %349 : vector<1x128xf32>
    %351 = arith.negf %350 : vector<1x128xf32>
    %352 = math.exp %351 : vector<1x128xf32>
    %cst_170 = arith.constant 1.000000e+00 : f32
    %353 = vector.broadcast %cst_170 : f32 to vector<1x128xf32>
    %354 = arith.addf %353, %352 : vector<1x128xf32>
    %355 = arith.divf %353, %354 : vector<1x128xf32>
    %356 = arith.addf %343, %355 : vector<1x128xf32>
    %c0_171 = arith.constant 0 : index
    %c0_172 = arith.constant 0 : index
    %c0_173 = arith.constant 0 : index
    %c114_174 = arith.constant 114 : index
    %357 = vector.load %arg2[%c0_171, %c0_172, %c0_173, %c114_174] : memref<1x1x4x384xf32, #tpu.memory_space<vmem>>, vector<1x1x4x128xf32>
    %358 = vector.shape_cast %357 : vector<1x1x4x128xf32> to vector<4x128xf32>
    %359 = arith.mulf %358, %1 : vector<4x128xf32>
    %cst_175 = arith.constant dense<0.000000e+00> : vector<128xf32>
    %360 = vector.multi_reduction <add>, %359, %cst_175 [0] : vector<4x128xf32> to vector<128xf32>
    %361 = vector.shape_cast %360 : vector<128xf32> to vector<1x128xf32>
    %cst_176 = arith.constant 2.500000e-01 : f32
    %362 = vector.broadcast %cst_176 : f32 to vector<1x128xf32>
    %363 = arith.mulf %361, %362 : vector<1x128xf32>
    %364 = arith.negf %363 : vector<1x128xf32>
    %365 = math.exp %364 : vector<1x128xf32>
    %cst_177 = arith.constant 1.000000e+00 : f32
    %366 = vector.broadcast %cst_177 : f32 to vector<1x128xf32>
    %367 = arith.addf %366, %365 : vector<1x128xf32>
    %368 = arith.divf %366, %367 : vector<1x128xf32>
    %369 = arith.addf %356, %368 : vector<1x128xf32>
    %c0_178 = arith.constant 0 : index
    %c0_179 = arith.constant 0 : index
    %c0_180 = arith.constant 0 : index
    %c116 = arith.constant 116 : index
    %370 = vector.load %arg2[%c0_178, %c0_179, %c0_180, %c116] : memref<1x1x4x384xf32, #tpu.memory_space<vmem>>, vector<1x1x4x128xf32>
    %371 = vector.shape_cast %370 : vector<1x1x4x128xf32> to vector<4x128xf32>
    %372 = arith.mulf %371, %1 : vector<4x128xf32>
    %cst_181 = arith.constant dense<0.000000e+00> : vector<128xf32>
    %373 = vector.multi_reduction <add>, %372, %cst_181 [0] : vector<4x128xf32> to vector<128xf32>
    %374 = vector.shape_cast %373 : vector<128xf32> to vector<1x128xf32>
    %cst_182 = arith.constant 2.500000e-01 : f32
    %375 = vector.broadcast %cst_182 : f32 to vector<1x128xf32>
    %376 = arith.mulf %374, %375 : vector<1x128xf32>
    %377 = arith.negf %376 : vector<1x128xf32>
    %378 = math.exp %377 : vector<1x128xf32>
    %cst_183 = arith.constant 1.000000e+00 : f32
    %379 = vector.broadcast %cst_183 : f32 to vector<1x128xf32>
    %380 = arith.addf %379, %378 : vector<1x128xf32>
    %381 = arith.divf %379, %380 : vector<1x128xf32>
    %382 = arith.addf %369, %381 : vector<1x128xf32>
    %c0_184 = arith.constant 0 : index
    %c0_185 = arith.constant 0 : index
    %c0_186 = arith.constant 0 : index
    %c44 = arith.constant 44 : index
    %383 = vector.load %arg2[%c0_184, %c0_185, %c0_186, %c44] : memref<1x1x4x384xf32, #tpu.memory_space<vmem>>, vector<1x1x4x128xf32>
    %384 = vector.shape_cast %383 : vector<1x1x4x128xf32> to vector<4x128xf32>
    %385 = arith.mulf %384, %1 : vector<4x128xf32>
    %cst_187 = arith.constant dense<0.000000e+00> : vector<128xf32>
    %386 = vector.multi_reduction <add>, %385, %cst_187 [0] : vector<4x128xf32> to vector<128xf32>
    %387 = vector.shape_cast %386 : vector<128xf32> to vector<1x128xf32>
    %cst_188 = arith.constant 2.500000e-01 : f32
    %388 = vector.broadcast %cst_188 : f32 to vector<1x128xf32>
    %389 = arith.mulf %387, %388 : vector<1x128xf32>
    %390 = arith.negf %389 : vector<1x128xf32>
    %391 = math.exp %390 : vector<1x128xf32>
    %cst_189 = arith.constant 1.000000e+00 : f32
    %392 = vector.broadcast %cst_189 : f32 to vector<1x128xf32>
    %393 = arith.addf %392, %391 : vector<1x128xf32>
    %394 = arith.divf %392, %393 : vector<1x128xf32>
    %395 = arith.addf %382, %394 : vector<1x128xf32>
    %c0_190 = arith.constant 0 : index
    %c0_191 = arith.constant 0 : index
    %c0_192 = arith.constant 0 : index
    %c66 = arith.constant 66 : index
    %396 = vector.load %arg2[%c0_190, %c0_191, %c0_192, %c66] : memref<1x1x4x384xf32, #tpu.memory_space<vmem>>, vector<1x1x4x128xf32>
    %397 = vector.shape_cast %396 : vector<1x1x4x128xf32> to vector<4x128xf32>
    %398 = arith.mulf %397, %1 : vector<4x128xf32>
    %cst_193 = arith.constant dense<0.000000e+00> : vector<128xf32>
    %399 = vector.multi_reduction <add>, %398, %cst_193 [0] : vector<4x128xf32> to vector<128xf32>
    %400 = vector.shape_cast %399 : vector<128xf32> to vector<1x128xf32>
    %cst_194 = arith.constant 2.500000e-01 : f32
    %401 = vector.broadcast %cst_194 : f32 to vector<1x128xf32>
    %402 = arith.mulf %400, %401 : vector<1x128xf32>
    %403 = arith.negf %402 : vector<1x128xf32>
    %404 = math.exp %403 : vector<1x128xf32>
    %cst_195 = arith.constant 1.000000e+00 : f32
    %405 = vector.broadcast %cst_195 : f32 to vector<1x128xf32>
    %406 = arith.addf %405, %404 : vector<1x128xf32>
    %407 = arith.divf %405, %406 : vector<1x128xf32>
    %408 = arith.addf %395, %407 : vector<1x128xf32>
    %c0_196 = arith.constant 0 : index
    %c0_197 = arith.constant 0 : index
    %c0_198 = arith.constant 0 : index
    %c88 = arith.constant 88 : index
    %409 = vector.load %arg2[%c0_196, %c0_197, %c0_198, %c88] : memref<1x1x4x384xf32, #tpu.memory_space<vmem>>, vector<1x1x4x128xf32>
    %410 = vector.shape_cast %409 : vector<1x1x4x128xf32> to vector<4x128xf32>
    %411 = arith.mulf %410, %1 : vector<4x128xf32>
    %cst_199 = arith.constant dense<0.000000e+00> : vector<128xf32>
    %412 = vector.multi_reduction <add>, %411, %cst_199 [0] : vector<4x128xf32> to vector<128xf32>
    %413 = vector.shape_cast %412 : vector<128xf32> to vector<1x128xf32>
    %cst_200 = arith.constant 2.500000e-01 : f32
    %414 = vector.broadcast %cst_200 : f32 to vector<1x128xf32>
    %415 = arith.mulf %413, %414 : vector<1x128xf32>
    %416 = arith.negf %415 : vector<1x128xf32>
    %417 = math.exp %416 : vector<1x128xf32>
    %cst_201 = arith.constant 1.000000e+00 : f32
    %418 = vector.broadcast %cst_201 : f32 to vector<1x128xf32>
    %419 = arith.addf %418, %417 : vector<1x128xf32>
    %420 = arith.divf %418, %419 : vector<1x128xf32>
    %421 = arith.addf %408, %420 : vector<1x128xf32>
    %cst_202 = arith.constant 6.250000e-02 : f32
    %422 = vector.broadcast %cst_202 : f32 to vector<1x128xf32>
    %423 = arith.mulf %421, %422 : vector<1x128xf32>
    %cst_203 = arith.constant 0.000000e+00 : f32
    %424 = vector.broadcast %cst_203 : f32 to vector<1x128xf32>
    %c0_204 = arith.constant 0 : index
    %c0_205 = arith.constant 0 : index
    %c0_206 = arith.constant 0 : index
    %c1 = arith.constant 1 : index
    %425 = vector.load %arg2[%c0_204, %c0_205, %c0_206, %c1] : memref<1x1x4x384xf32, #tpu.memory_space<vmem>>, vector<1x1x4x128xf32>
    %426 = vector.shape_cast %425 : vector<1x1x4x128xf32> to vector<4x128xf32>
    %427 = arith.mulf %426, %1 : vector<4x128xf32>
    %cst_207 = arith.constant dense<0.000000e+00> : vector<128xf32>
    %428 = vector.multi_reduction <add>, %427, %cst_207 [0] : vector<4x128xf32> to vector<128xf32>
    %429 = vector.shape_cast %428 : vector<128xf32> to vector<1x128xf32>
    %cst_208 = arith.constant 2.500000e-01 : f32
    %430 = vector.broadcast %cst_208 : f32 to vector<1x128xf32>
    %431 = arith.mulf %429, %430 : vector<1x128xf32>
    %432 = arith.negf %431 : vector<1x128xf32>
    %433 = math.exp %432 : vector<1x128xf32>
    %cst_209 = arith.constant 1.000000e+00 : f32
    %434 = vector.broadcast %cst_209 : f32 to vector<1x128xf32>
    %435 = arith.addf %434, %433 : vector<1x128xf32>
    %436 = arith.divf %434, %435 : vector<1x128xf32>
    %437 = arith.addf %424, %436 : vector<1x128xf32>
    %c0_210 = arith.constant 0 : index
    %c0_211 = arith.constant 0 : index
    %c0_212 = arith.constant 0 : index
    %c2 = arith.constant 2 : index
    %438 = vector.load %arg2[%c0_210, %c0_211, %c0_212, %c2] : memref<1x1x4x384xf32, #tpu.memory_space<vmem>>, vector<1x1x4x128xf32>
    %439 = vector.shape_cast %438 : vector<1x1x4x128xf32> to vector<4x128xf32>
    %440 = arith.mulf %439, %1 : vector<4x128xf32>
    %cst_213 = arith.constant dense<0.000000e+00> : vector<128xf32>
    %441 = vector.multi_reduction <add>, %440, %cst_213 [0] : vector<4x128xf32> to vector<128xf32>
    %442 = vector.shape_cast %441 : vector<128xf32> to vector<1x128xf32>
    %cst_214 = arith.constant 2.500000e-01 : f32
    %443 = vector.broadcast %cst_214 : f32 to vector<1x128xf32>
    %444 = arith.mulf %442, %443 : vector<1x128xf32>
    %445 = arith.negf %444 : vector<1x128xf32>
    %446 = math.exp %445 : vector<1x128xf32>
    %cst_215 = arith.constant 1.000000e+00 : f32
    %447 = vector.broadcast %cst_215 : f32 to vector<1x128xf32>
    %448 = arith.addf %447, %446 : vector<1x128xf32>
    %449 = arith.divf %447, %448 : vector<1x128xf32>
    %450 = arith.addf %437, %449 : vector<1x128xf32>
    %c0_216 = arith.constant 0 : index
    %c0_217 = arith.constant 0 : index
    %c0_218 = arith.constant 0 : index
    %c3 = arith.constant 3 : index
    %451 = vector.load %arg2[%c0_216, %c0_217, %c0_218, %c3] : memref<1x1x4x384xf32, #tpu.memory_space<vmem>>, vector<1x1x4x128xf32>
    %452 = vector.shape_cast %451 : vector<1x1x4x128xf32> to vector<4x128xf32>
    %453 = arith.mulf %452, %1 : vector<4x128xf32>
    %cst_219 = arith.constant dense<0.000000e+00> : vector<128xf32>
    %454 = vector.multi_reduction <add>, %453, %cst_219 [0] : vector<4x128xf32> to vector<128xf32>
    %455 = vector.shape_cast %454 : vector<128xf32> to vector<1x128xf32>
    %cst_220 = arith.constant 2.500000e-01 : f32
    %456 = vector.broadcast %cst_220 : f32 to vector<1x128xf32>
    %457 = arith.mulf %455, %456 : vector<1x128xf32>
    %458 = arith.negf %457 : vector<1x128xf32>
    %459 = math.exp %458 : vector<1x128xf32>
    %cst_221 = arith.constant 1.000000e+00 : f32
    %460 = vector.broadcast %cst_221 : f32 to vector<1x128xf32>
    %461 = arith.addf %460, %459 : vector<1x128xf32>
    %462 = arith.divf %460, %461 : vector<1x128xf32>
    %463 = arith.addf %450, %462 : vector<1x128xf32>
    %c0_222 = arith.constant 0 : index
    %c0_223 = arith.constant 0 : index
    %c0_224 = arith.constant 0 : index
    %c4 = arith.constant 4 : index
    %464 = vector.load %arg2[%c0_222, %c0_223, %c0_224, %c4] : memref<1x1x4x384xf32, #tpu.memory_space<vmem>>, vector<1x1x4x128xf32>
    %465 = vector.shape_cast %464 : vector<1x1x4x128xf32> to vector<4x128xf32>
    %466 = arith.mulf %465, %1 : vector<4x128xf32>
    %cst_225 = arith.constant dense<0.000000e+00> : vector<128xf32>
    %467 = vector.multi_reduction <add>, %466, %cst_225 [0] : vector<4x128xf32> to vector<128xf32>
    %468 = vector.shape_cast %467 : vector<128xf32> to vector<1x128xf32>
    %cst_226 = arith.constant 2.500000e-01 : f32
    %469 = vector.broadcast %cst_226 : f32 to vector<1x128xf32>
    %470 = arith.mulf %468, %469 : vector<1x128xf32>
    %471 = arith.negf %470 : vector<1x128xf32>
    %472 = math.exp %471 : vector<1x128xf32>
    %cst_227 = arith.constant 1.000000e+00 : f32
    %473 = vector.broadcast %cst_227 : f32 to vector<1x128xf32>
    %474 = arith.addf %473, %472 : vector<1x128xf32>
    %475 = arith.divf %473, %474 : vector<1x128xf32>
    %476 = arith.addf %463, %475 : vector<1x128xf32>
    %c0_228 = arith.constant 0 : index
    %c0_229 = arith.constant 0 : index
    %c0_230 = arith.constant 0 : index
    %c5 = arith.constant 5 : index
    %477 = vector.load %arg2[%c0_228, %c0_229, %c0_230, %c5] : memref<1x1x4x384xf32, #tpu.memory_space<vmem>>, vector<1x1x4x128xf32>
    %478 = vector.shape_cast %477 : vector<1x1x4x128xf32> to vector<4x128xf32>
    %479 = arith.mulf %478, %1 : vector<4x128xf32>
    %cst_231 = arith.constant dense<0.000000e+00> : vector<128xf32>
    %480 = vector.multi_reduction <add>, %479, %cst_231 [0] : vector<4x128xf32> to vector<128xf32>
    %481 = vector.shape_cast %480 : vector<128xf32> to vector<1x128xf32>
    %cst_232 = arith.constant 2.500000e-01 : f32
    %482 = vector.broadcast %cst_232 : f32 to vector<1x128xf32>
    %483 = arith.mulf %481, %482 : vector<1x128xf32>
    %484 = arith.negf %483 : vector<1x128xf32>
    %485 = math.exp %484 : vector<1x128xf32>
    %cst_233 = arith.constant 1.000000e+00 : f32
    %486 = vector.broadcast %cst_233 : f32 to vector<1x128xf32>
    %487 = arith.addf %486, %485 : vector<1x128xf32>
    %488 = arith.divf %486, %487 : vector<1x128xf32>
    %489 = arith.addf %476, %488 : vector<1x128xf32>
    %c0_234 = arith.constant 0 : index
    %c0_235 = arith.constant 0 : index
    %c0_236 = arith.constant 0 : index
    %c49_237 = arith.constant 49 : index
    %490 = vector.load %arg2[%c0_234, %c0_235, %c0_236, %c49_237] : memref<1x1x4x384xf32, #tpu.memory_space<vmem>>, vector<1x1x4x128xf32>
    %491 = vector.shape_cast %490 : vector<1x1x4x128xf32> to vector<4x128xf32>
    %492 = arith.mulf %491, %1 : vector<4x128xf32>
    %cst_238 = arith.constant dense<0.000000e+00> : vector<128xf32>
    %493 = vector.multi_reduction <add>, %492, %cst_238 [0] : vector<4x128xf32> to vector<128xf32>
    %494 = vector.shape_cast %493 : vector<128xf32> to vector<1x128xf32>
    %cst_239 = arith.constant 2.500000e-01 : f32
    %495 = vector.broadcast %cst_239 : f32 to vector<1x128xf32>
    %496 = arith.mulf %494, %495 : vector<1x128xf32>
    %497 = arith.negf %496 : vector<1x128xf32>
    %498 = math.exp %497 : vector<1x128xf32>
    %cst_240 = arith.constant 1.000000e+00 : f32
    %499 = vector.broadcast %cst_240 : f32 to vector<1x128xf32>
    %500 = arith.addf %499, %498 : vector<1x128xf32>
    %501 = arith.divf %499, %500 : vector<1x128xf32>
    %502 = arith.addf %489, %501 : vector<1x128xf32>
    %c0_241 = arith.constant 0 : index
    %c0_242 = arith.constant 0 : index
    %c0_243 = arith.constant 0 : index
    %c71_244 = arith.constant 71 : index
    %503 = vector.load %arg2[%c0_241, %c0_242, %c0_243, %c71_244] : memref<1x1x4x384xf32, #tpu.memory_space<vmem>>, vector<1x1x4x128xf32>
    %504 = vector.shape_cast %503 : vector<1x1x4x128xf32> to vector<4x128xf32>
    %505 = arith.mulf %504, %1 : vector<4x128xf32>
    %cst_245 = arith.constant dense<0.000000e+00> : vector<128xf32>
    %506 = vector.multi_reduction <add>, %505, %cst_245 [0] : vector<4x128xf32> to vector<128xf32>
    %507 = vector.shape_cast %506 : vector<128xf32> to vector<1x128xf32>
    %cst_246 = arith.constant 2.500000e-01 : f32
    %508 = vector.broadcast %cst_246 : f32 to vector<1x128xf32>
    %509 = arith.mulf %507, %508 : vector<1x128xf32>
    %510 = arith.negf %509 : vector<1x128xf32>
    %511 = math.exp %510 : vector<1x128xf32>
    %cst_247 = arith.constant 1.000000e+00 : f32
    %512 = vector.broadcast %cst_247 : f32 to vector<1x128xf32>
    %513 = arith.addf %512, %511 : vector<1x128xf32>
    %514 = arith.divf %512, %513 : vector<1x128xf32>
    %515 = arith.addf %502, %514 : vector<1x128xf32>
    %c0_248 = arith.constant 0 : index
    %c0_249 = arith.constant 0 : index
    %c0_250 = arith.constant 0 : index
    %c93_251 = arith.constant 93 : index
    %516 = vector.load %arg2[%c0_248, %c0_249, %c0_250, %c93_251] : memref<1x1x4x384xf32, #tpu.memory_space<vmem>>, vector<1x1x4x128xf32>
    %517 = vector.shape_cast %516 : vector<1x1x4x128xf32> to vector<4x128xf32>
    %518 = arith.mulf %517, %1 : vector<4x128xf32>
    %cst_252 = arith.constant dense<0.000000e+00> : vector<128xf32>
    %519 = vector.multi_reduction <add>, %518, %cst_252 [0] : vector<4x128xf32> to vector<128xf32>
    %520 = vector.shape_cast %519 : vector<128xf32> to vector<1x128xf32>
    %cst_253 = arith.constant 2.500000e-01 : f32
    %521 = vector.broadcast %cst_253 : f32 to vector<1x128xf32>
    %522 = arith.mulf %520, %521 : vector<1x128xf32>
    %523 = arith.negf %522 : vector<1x128xf32>
    %524 = math.exp %523 : vector<1x128xf32>
    %cst_254 = arith.constant 1.000000e+00 : f32
    %525 = vector.broadcast %cst_254 : f32 to vector<1x128xf32>
    %526 = arith.addf %525, %524 : vector<1x128xf32>
    %527 = arith.divf %525, %526 : vector<1x128xf32>
    %528 = arith.addf %515, %527 : vector<1x128xf32>
    %c0_255 = arith.constant 0 : index
    %c0_256 = arith.constant 0 : index
    %c0_257 = arith.constant 0 : index
    %c133 = arith.constant 133 : index
    %529 = vector.load %arg2[%c0_255, %c0_256, %c0_257, %c133] : memref<1x1x4x384xf32, #tpu.memory_space<vmem>>, vector<1x1x4x128xf32>
    %530 = vector.shape_cast %529 : vector<1x1x4x128xf32> to vector<4x128xf32>
    %531 = arith.mulf %530, %1 : vector<4x128xf32>
    %cst_258 = arith.constant dense<0.000000e+00> : vector<128xf32>
    %532 = vector.multi_reduction <add>, %531, %cst_258 [0] : vector<4x128xf32> to vector<128xf32>
    %533 = vector.shape_cast %532 : vector<128xf32> to vector<1x128xf32>
    %cst_259 = arith.constant 2.500000e-01 : f32
    %534 = vector.broadcast %cst_259 : f32 to vector<1x128xf32>
    %535 = arith.mulf %533, %534 : vector<1x128xf32>
    %536 = arith.negf %535 : vector<1x128xf32>
    %537 = math.exp %536 : vector<1x128xf32>
    %cst_260 = arith.constant 1.000000e+00 : f32
    %538 = vector.broadcast %cst_260 : f32 to vector<1x128xf32>
    %539 = arith.addf %538, %537 : vector<1x128xf32>
    %540 = arith.divf %538, %539 : vector<1x128xf32>
    %541 = arith.addf %528, %540 : vector<1x128xf32>
    %c0_261 = arith.constant 0 : index
    %c0_262 = arith.constant 0 : index
    %c0_263 = arith.constant 0 : index
    %c134 = arith.constant 134 : index
    %542 = vector.load %arg2[%c0_261, %c0_262, %c0_263, %c134] : memref<1x1x4x384xf32, #tpu.memory_space<vmem>>, vector<1x1x4x128xf32>
    %543 = vector.shape_cast %542 : vector<1x1x4x128xf32> to vector<4x128xf32>
    %544 = arith.mulf %543, %1 : vector<4x128xf32>
    %cst_264 = arith.constant dense<0.000000e+00> : vector<128xf32>
    %545 = vector.multi_reduction <add>, %544, %cst_264 [0] : vector<4x128xf32> to vector<128xf32>
    %546 = vector.shape_cast %545 : vector<128xf32> to vector<1x128xf32>
    %cst_265 = arith.constant 2.500000e-01 : f32
    %547 = vector.broadcast %cst_265 : f32 to vector<1x128xf32>
    %548 = arith.mulf %546, %547 : vector<1x128xf32>
    %549 = arith.negf %548 : vector<1x128xf32>
    %550 = math.exp %549 : vector<1x128xf32>
    %cst_266 = arith.constant 1.000000e+00 : f32
    %551 = vector.broadcast %cst_266 : f32 to vector<1x128xf32>
    %552 = arith.addf %551, %550 : vector<1x128xf32>
    %553 = arith.divf %551, %552 : vector<1x128xf32>
    %554 = arith.addf %541, %553 : vector<1x128xf32>
    %c0_267 = arith.constant 0 : index
    %c0_268 = arith.constant 0 : index
    %c0_269 = arith.constant 0 : index
    %c135 = arith.constant 135 : index
    %555 = vector.load %arg2[%c0_267, %c0_268, %c0_269, %c135] : memref<1x1x4x384xf32, #tpu.memory_space<vmem>>, vector<1x1x4x128xf32>
    %556 = vector.shape_cast %555 : vector<1x1x4x128xf32> to vector<4x128xf32>
    %557 = arith.mulf %556, %1 : vector<4x128xf32>
    %cst_270 = arith.constant dense<0.000000e+00> : vector<128xf32>
    %558 = vector.multi_reduction <add>, %557, %cst_270 [0] : vector<4x128xf32> to vector<128xf32>
    %559 = vector.shape_cast %558 : vector<128xf32> to vector<1x128xf32>
    %cst_271 = arith.constant 2.500000e-01 : f32
    %560 = vector.broadcast %cst_271 : f32 to vector<1x128xf32>
    %561 = arith.mulf %559, %560 : vector<1x128xf32>
    %562 = arith.negf %561 : vector<1x128xf32>
    %563 = math.exp %562 : vector<1x128xf32>
    %cst_272 = arith.constant 1.000000e+00 : f32
    %564 = vector.broadcast %cst_272 : f32 to vector<1x128xf32>
    %565 = arith.addf %564, %563 : vector<1x128xf32>
    %566 = arith.divf %564, %565 : vector<1x128xf32>
    %567 = arith.addf %554, %566 : vector<1x128xf32>
    %c0_273 = arith.constant 0 : index
    %c0_274 = arith.constant 0 : index
    %c0_275 = arith.constant 0 : index
    %c136 = arith.constant 136 : index
    %568 = vector.load %arg2[%c0_273, %c0_274, %c0_275, %c136] : memref<1x1x4x384xf32, #tpu.memory_space<vmem>>, vector<1x1x4x128xf32>
    %569 = vector.shape_cast %568 : vector<1x1x4x128xf32> to vector<4x128xf32>
    %570 = arith.mulf %569, %1 : vector<4x128xf32>
    %cst_276 = arith.constant dense<0.000000e+00> : vector<128xf32>
    %571 = vector.multi_reduction <add>, %570, %cst_276 [0] : vector<4x128xf32> to vector<128xf32>
    %572 = vector.shape_cast %571 : vector<128xf32> to vector<1x128xf32>
    %cst_277 = arith.constant 2.500000e-01 : f32
    %573 = vector.broadcast %cst_277 : f32 to vector<1x128xf32>
    %574 = arith.mulf %572, %573 : vector<1x128xf32>
    %575 = arith.negf %574 : vector<1x128xf32>
    %576 = math.exp %575 : vector<1x128xf32>
    %cst_278 = arith.constant 1.000000e+00 : f32
    %577 = vector.broadcast %cst_278 : f32 to vector<1x128xf32>
    %578 = arith.addf %577, %576 : vector<1x128xf32>
    %579 = arith.divf %577, %578 : vector<1x128xf32>
    %580 = arith.addf %567, %579 : vector<1x128xf32>
    %c0_279 = arith.constant 0 : index
    %c0_280 = arith.constant 0 : index
    %c0_281 = arith.constant 0 : index
    %c137 = arith.constant 137 : index
    %581 = vector.load %arg2[%c0_279, %c0_280, %c0_281, %c137] : memref<1x1x4x384xf32, #tpu.memory_space<vmem>>, vector<1x1x4x128xf32>
    %582 = vector.shape_cast %581 : vector<1x1x4x128xf32> to vector<4x128xf32>
    %583 = arith.mulf %582, %1 : vector<4x128xf32>
    %cst_282 = arith.constant dense<0.000000e+00> : vector<128xf32>
    %584 = vector.multi_reduction <add>, %583, %cst_282 [0] : vector<4x128xf32> to vector<128xf32>
    %585 = vector.shape_cast %584 : vector<128xf32> to vector<1x128xf32>
    %cst_283 = arith.constant 2.500000e-01 : f32
    %586 = vector.broadcast %cst_283 : f32 to vector<1x128xf32>
    %587 = arith.mulf %585, %586 : vector<1x128xf32>
    %588 = arith.negf %587 : vector<1x128xf32>
    %589 = math.exp %588 : vector<1x128xf32>
    %cst_284 = arith.constant 1.000000e+00 : f32
    %590 = vector.broadcast %cst_284 : f32 to vector<1x128xf32>
    %591 = arith.addf %590, %589 : vector<1x128xf32>
    %592 = arith.divf %590, %591 : vector<1x128xf32>
    %593 = arith.addf %580, %592 : vector<1x128xf32>
    %c0_285 = arith.constant 0 : index
    %c0_286 = arith.constant 0 : index
    %c0_287 = arith.constant 0 : index
    %c45_288 = arith.constant 45 : index
    %594 = vector.load %arg2[%c0_285, %c0_286, %c0_287, %c45_288] : memref<1x1x4x384xf32, #tpu.memory_space<vmem>>, vector<1x1x4x128xf32>
    %595 = vector.shape_cast %594 : vector<1x1x4x128xf32> to vector<4x128xf32>
    %596 = arith.mulf %595, %1 : vector<4x128xf32>
    %cst_289 = arith.constant dense<0.000000e+00> : vector<128xf32>
    %597 = vector.multi_reduction <add>, %596, %cst_289 [0] : vector<4x128xf32> to vector<128xf32>
    %598 = vector.shape_cast %597 : vector<128xf32> to vector<1x128xf32>
    %cst_290 = arith.constant 2.500000e-01 : f32
    %599 = vector.broadcast %cst_290 : f32 to vector<1x128xf32>
    %600 = arith.mulf %598, %599 : vector<1x128xf32>
    %601 = arith.negf %600 : vector<1x128xf32>
    %602 = math.exp %601 : vector<1x128xf32>
    %cst_291 = arith.constant 1.000000e+00 : f32
    %603 = vector.broadcast %cst_291 : f32 to vector<1x128xf32>
    %604 = arith.addf %603, %602 : vector<1x128xf32>
    %605 = arith.divf %603, %604 : vector<1x128xf32>
    %606 = arith.addf %593, %605 : vector<1x128xf32>
    %c0_292 = arith.constant 0 : index
    %c0_293 = arith.constant 0 : index
    %c0_294 = arith.constant 0 : index
    %c67_295 = arith.constant 67 : index
    %607 = vector.load %arg2[%c0_292, %c0_293, %c0_294, %c67_295] : memref<1x1x4x384xf32, #tpu.memory_space<vmem>>, vector<1x1x4x128xf32>
    %608 = vector.shape_cast %607 : vector<1x1x4x128xf32> to vector<4x128xf32>
    %609 = arith.mulf %608, %1 : vector<4x128xf32>
    %cst_296 = arith.constant dense<0.000000e+00> : vector<128xf32>
    %610 = vector.multi_reduction <add>, %609, %cst_296 [0] : vector<4x128xf32> to vector<128xf32>
    %611 = vector.shape_cast %610 : vector<128xf32> to vector<1x128xf32>
    %cst_297 = arith.constant 2.500000e-01 : f32
    %612 = vector.broadcast %cst_297 : f32 to vector<1x128xf32>
    %613 = arith.mulf %611, %612 : vector<1x128xf32>
    %614 = arith.negf %613 : vector<1x128xf32>
    %615 = math.exp %614 : vector<1x128xf32>
    %cst_298 = arith.constant 1.000000e+00 : f32
    %616 = vector.broadcast %cst_298 : f32 to vector<1x128xf32>
    %617 = arith.addf %616, %615 : vector<1x128xf32>
    %618 = arith.divf %616, %617 : vector<1x128xf32>
    %619 = arith.addf %606, %618 : vector<1x128xf32>
    %c0_299 = arith.constant 0 : index
    %c0_300 = arith.constant 0 : index
    %c0_301 = arith.constant 0 : index
    %c89_302 = arith.constant 89 : index
    %620 = vector.load %arg2[%c0_299, %c0_300, %c0_301, %c89_302] : memref<1x1x4x384xf32, #tpu.memory_space<vmem>>, vector<1x1x4x128xf32>
    %621 = vector.shape_cast %620 : vector<1x1x4x128xf32> to vector<4x128xf32>
    %622 = arith.mulf %621, %1 : vector<4x128xf32>
    %cst_303 = arith.constant dense<0.000000e+00> : vector<128xf32>
    %623 = vector.multi_reduction <add>, %622, %cst_303 [0] : vector<4x128xf32> to vector<128xf32>
    %624 = vector.shape_cast %623 : vector<128xf32> to vector<1x128xf32>
    %cst_304 = arith.constant 2.500000e-01 : f32
    %625 = vector.broadcast %cst_304 : f32 to vector<1x128xf32>
    %626 = arith.mulf %624, %625 : vector<1x128xf32>
    %627 = arith.negf %626 : vector<1x128xf32>
    %628 = math.exp %627 : vector<1x128xf32>
    %cst_305 = arith.constant 1.000000e+00 : f32
    %629 = vector.broadcast %cst_305 : f32 to vector<1x128xf32>
    %630 = arith.addf %629, %628 : vector<1x128xf32>
    %631 = arith.divf %629, %630 : vector<1x128xf32>
    %632 = arith.addf %619, %631 : vector<1x128xf32>
    %cst_306 = arith.constant 6.250000e-02 : f32
    %633 = vector.broadcast %cst_306 : f32 to vector<1x128xf32>
    %634 = arith.mulf %632, %633 : vector<1x128xf32>
    %cst_307 = arith.constant 0.000000e+00 : f32
    %635 = vector.broadcast %cst_307 : f32 to vector<1x128xf32>
    %c0_308 = arith.constant 0 : index
    %c0_309 = arith.constant 0 : index
    %c0_310 = arith.constant 0 : index
    %c0_311 = arith.constant 0 : index
    %636 = vector.load %arg2[%c0_308, %c0_309, %c0_310, %c0_311] : memref<1x1x4x384xf32, #tpu.memory_space<vmem>>, vector<1x1x4x128xf32>
    %637 = vector.shape_cast %636 : vector<1x1x4x128xf32> to vector<4x128xf32>
    %638 = arith.mulf %637, %1 : vector<4x128xf32>
    %cst_312 = arith.constant dense<0.000000e+00> : vector<128xf32>
    %639 = vector.multi_reduction <add>, %638, %cst_312 [0] : vector<4x128xf32> to vector<128xf32>
    %640 = vector.shape_cast %639 : vector<128xf32> to vector<1x128xf32>
    %cst_313 = arith.constant 2.500000e-01 : f32
    %641 = vector.broadcast %cst_313 : f32 to vector<1x128xf32>
    %642 = arith.mulf %640, %641 : vector<1x128xf32>
    %643 = arith.negf %642 : vector<1x128xf32>
    %644 = math.exp %643 : vector<1x128xf32>
    %cst_314 = arith.constant 1.000000e+00 : f32
    %645 = vector.broadcast %cst_314 : f32 to vector<1x128xf32>
    %646 = arith.addf %645, %644 : vector<1x128xf32>
    %647 = arith.divf %645, %646 : vector<1x128xf32>
    %648 = arith.addf %635, %647 : vector<1x128xf32>
    %c0_315 = arith.constant 0 : index
    %c0_316 = arith.constant 0 : index
    %c0_317 = arith.constant 0 : index
    %c2_318 = arith.constant 2 : index
    %649 = vector.load %arg2[%c0_315, %c0_316, %c0_317, %c2_318] : memref<1x1x4x384xf32, #tpu.memory_space<vmem>>, vector<1x1x4x128xf32>
    %650 = vector.shape_cast %649 : vector<1x1x4x128xf32> to vector<4x128xf32>
    %651 = arith.mulf %650, %1 : vector<4x128xf32>
    %cst_319 = arith.constant dense<0.000000e+00> : vector<128xf32>
    %652 = vector.multi_reduction <add>, %651, %cst_319 [0] : vector<4x128xf32> to vector<128xf32>
    %653 = vector.shape_cast %652 : vector<128xf32> to vector<1x128xf32>
    %cst_320 = arith.constant 2.500000e-01 : f32
    %654 = vector.broadcast %cst_320 : f32 to vector<1x128xf32>
    %655 = arith.mulf %653, %654 : vector<1x128xf32>
    %656 = arith.negf %655 : vector<1x128xf32>
    %657 = math.exp %656 : vector<1x128xf32>
    %cst_321 = arith.constant 1.000000e+00 : f32
    %658 = vector.broadcast %cst_321 : f32 to vector<1x128xf32>
    %659 = arith.addf %658, %657 : vector<1x128xf32>
    %660 = arith.divf %658, %659 : vector<1x128xf32>
    %661 = arith.addf %648, %660 : vector<1x128xf32>
    %c0_322 = arith.constant 0 : index
    %c0_323 = arith.constant 0 : index
    %c0_324 = arith.constant 0 : index
    %c3_325 = arith.constant 3 : index
    %662 = vector.load %arg2[%c0_322, %c0_323, %c0_324, %c3_325] : memref<1x1x4x384xf32, #tpu.memory_space<vmem>>, vector<1x1x4x128xf32>
    %663 = vector.shape_cast %662 : vector<1x1x4x128xf32> to vector<4x128xf32>
    %664 = arith.mulf %663, %1 : vector<4x128xf32>
    %cst_326 = arith.constant dense<0.000000e+00> : vector<128xf32>
    %665 = vector.multi_reduction <add>, %664, %cst_326 [0] : vector<4x128xf32> to vector<128xf32>
    %666 = vector.shape_cast %665 : vector<128xf32> to vector<1x128xf32>
    %cst_327 = arith.constant 2.500000e-01 : f32
    %667 = vector.broadcast %cst_327 : f32 to vector<1x128xf32>
    %668 = arith.mulf %666, %667 : vector<1x128xf32>
    %669 = arith.negf %668 : vector<1x128xf32>
    %670 = math.exp %669 : vector<1x128xf32>
    %cst_328 = arith.constant 1.000000e+00 : f32
    %671 = vector.broadcast %cst_328 : f32 to vector<1x128xf32>
    %672 = arith.addf %671, %670 : vector<1x128xf32>
    %673 = arith.divf %671, %672 : vector<1x128xf32>
    %674 = arith.addf %661, %673 : vector<1x128xf32>
    %c0_329 = arith.constant 0 : index
    %c0_330 = arith.constant 0 : index
    %c0_331 = arith.constant 0 : index
    %c4_332 = arith.constant 4 : index
    %675 = vector.load %arg2[%c0_329, %c0_330, %c0_331, %c4_332] : memref<1x1x4x384xf32, #tpu.memory_space<vmem>>, vector<1x1x4x128xf32>
    %676 = vector.shape_cast %675 : vector<1x1x4x128xf32> to vector<4x128xf32>
    %677 = arith.mulf %676, %1 : vector<4x128xf32>
    %cst_333 = arith.constant dense<0.000000e+00> : vector<128xf32>
    %678 = vector.multi_reduction <add>, %677, %cst_333 [0] : vector<4x128xf32> to vector<128xf32>
    %679 = vector.shape_cast %678 : vector<128xf32> to vector<1x128xf32>
    %cst_334 = arith.constant 2.500000e-01 : f32
    %680 = vector.broadcast %cst_334 : f32 to vector<1x128xf32>
    %681 = arith.mulf %679, %680 : vector<1x128xf32>
    %682 = arith.negf %681 : vector<1x128xf32>
    %683 = math.exp %682 : vector<1x128xf32>
    %cst_335 = arith.constant 1.000000e+00 : f32
    %684 = vector.broadcast %cst_335 : f32 to vector<1x128xf32>
    %685 = arith.addf %684, %683 : vector<1x128xf32>
    %686 = arith.divf %684, %685 : vector<1x128xf32>
    %687 = arith.addf %674, %686 : vector<1x128xf32>
    %c0_336 = arith.constant 0 : index
    %c0_337 = arith.constant 0 : index
    %c0_338 = arith.constant 0 : index
    %c6 = arith.constant 6 : index
    %688 = vector.load %arg2[%c0_336, %c0_337, %c0_338, %c6] : memref<1x1x4x384xf32, #tpu.memory_space<vmem>>, vector<1x1x4x128xf32>
    %689 = vector.shape_cast %688 : vector<1x1x4x128xf32> to vector<4x128xf32>
    %690 = arith.mulf %689, %1 : vector<4x128xf32>
    %cst_339 = arith.constant dense<0.000000e+00> : vector<128xf32>
    %691 = vector.multi_reduction <add>, %690, %cst_339 [0] : vector<4x128xf32> to vector<128xf32>
    %692 = vector.shape_cast %691 : vector<128xf32> to vector<1x128xf32>
    %cst_340 = arith.constant 2.500000e-01 : f32
    %693 = vector.broadcast %cst_340 : f32 to vector<1x128xf32>
    %694 = arith.mulf %692, %693 : vector<1x128xf32>
    %695 = arith.negf %694 : vector<1x128xf32>
    %696 = math.exp %695 : vector<1x128xf32>
    %cst_341 = arith.constant 1.000000e+00 : f32
    %697 = vector.broadcast %cst_341 : f32 to vector<1x128xf32>
    %698 = arith.addf %697, %696 : vector<1x128xf32>
    %699 = arith.divf %697, %698 : vector<1x128xf32>
    %700 = arith.addf %687, %699 : vector<1x128xf32>
    %c0_342 = arith.constant 0 : index
    %c0_343 = arith.constant 0 : index
    %c0_344 = arith.constant 0 : index
    %c50_345 = arith.constant 50 : index
    %701 = vector.load %arg2[%c0_342, %c0_343, %c0_344, %c50_345] : memref<1x1x4x384xf32, #tpu.memory_space<vmem>>, vector<1x1x4x128xf32>
    %702 = vector.shape_cast %701 : vector<1x1x4x128xf32> to vector<4x128xf32>
    %703 = arith.mulf %702, %1 : vector<4x128xf32>
    %cst_346 = arith.constant dense<0.000000e+00> : vector<128xf32>
    %704 = vector.multi_reduction <add>, %703, %cst_346 [0] : vector<4x128xf32> to vector<128xf32>
    %705 = vector.shape_cast %704 : vector<128xf32> to vector<1x128xf32>
    %cst_347 = arith.constant 2.500000e-01 : f32
    %706 = vector.broadcast %cst_347 : f32 to vector<1x128xf32>
    %707 = arith.mulf %705, %706 : vector<1x128xf32>
    %708 = arith.negf %707 : vector<1x128xf32>
    %709 = math.exp %708 : vector<1x128xf32>
    %cst_348 = arith.constant 1.000000e+00 : f32
    %710 = vector.broadcast %cst_348 : f32 to vector<1x128xf32>
    %711 = arith.addf %710, %709 : vector<1x128xf32>
    %712 = arith.divf %710, %711 : vector<1x128xf32>
    %713 = arith.addf %700, %712 : vector<1x128xf32>
    %c0_349 = arith.constant 0 : index
    %c0_350 = arith.constant 0 : index
    %c0_351 = arith.constant 0 : index
    %c72_352 = arith.constant 72 : index
    %714 = vector.load %arg2[%c0_349, %c0_350, %c0_351, %c72_352] : memref<1x1x4x384xf32, #tpu.memory_space<vmem>>, vector<1x1x4x128xf32>
    %715 = vector.shape_cast %714 : vector<1x1x4x128xf32> to vector<4x128xf32>
    %716 = arith.mulf %715, %1 : vector<4x128xf32>
    %cst_353 = arith.constant dense<0.000000e+00> : vector<128xf32>
    %717 = vector.multi_reduction <add>, %716, %cst_353 [0] : vector<4x128xf32> to vector<128xf32>
    %718 = vector.shape_cast %717 : vector<128xf32> to vector<1x128xf32>
    %cst_354 = arith.constant 2.500000e-01 : f32
    %719 = vector.broadcast %cst_354 : f32 to vector<1x128xf32>
    %720 = arith.mulf %718, %719 : vector<1x128xf32>
    %721 = arith.negf %720 : vector<1x128xf32>
    %722 = math.exp %721 : vector<1x128xf32>
    %cst_355 = arith.constant 1.000000e+00 : f32
    %723 = vector.broadcast %cst_355 : f32 to vector<1x128xf32>
    %724 = arith.addf %723, %722 : vector<1x128xf32>
    %725 = arith.divf %723, %724 : vector<1x128xf32>
    %726 = arith.addf %713, %725 : vector<1x128xf32>
    %c0_356 = arith.constant 0 : index
    %c0_357 = arith.constant 0 : index
    %c0_358 = arith.constant 0 : index
    %c94_359 = arith.constant 94 : index
    %727 = vector.load %arg2[%c0_356, %c0_357, %c0_358, %c94_359] : memref<1x1x4x384xf32, #tpu.memory_space<vmem>>, vector<1x1x4x128xf32>
    %728 = vector.shape_cast %727 : vector<1x1x4x128xf32> to vector<4x128xf32>
    %729 = arith.mulf %728, %1 : vector<4x128xf32>
    %cst_360 = arith.constant dense<0.000000e+00> : vector<128xf32>
    %730 = vector.multi_reduction <add>, %729, %cst_360 [0] : vector<4x128xf32> to vector<128xf32>
    %731 = vector.shape_cast %730 : vector<128xf32> to vector<1x128xf32>
    %cst_361 = arith.constant 2.500000e-01 : f32
    %732 = vector.broadcast %cst_361 : f32 to vector<1x128xf32>
    %733 = arith.mulf %731, %732 : vector<1x128xf32>
    %734 = arith.negf %733 : vector<1x128xf32>
    %735 = math.exp %734 : vector<1x128xf32>
    %cst_362 = arith.constant 1.000000e+00 : f32
    %736 = vector.broadcast %cst_362 : f32 to vector<1x128xf32>
    %737 = arith.addf %736, %735 : vector<1x128xf32>
    %738 = arith.divf %736, %737 : vector<1x128xf32>
    %739 = arith.addf %726, %738 : vector<1x128xf32>
    %c0_363 = arith.constant 0 : index
    %c0_364 = arith.constant 0 : index
    %c0_365 = arith.constant 0 : index
    %c132 = arith.constant 132 : index
    %740 = vector.load %arg2[%c0_363, %c0_364, %c0_365, %c132] : memref<1x1x4x384xf32, #tpu.memory_space<vmem>>, vector<1x1x4x128xf32>
    %741 = vector.shape_cast %740 : vector<1x1x4x128xf32> to vector<4x128xf32>
    %742 = arith.mulf %741, %1 : vector<4x128xf32>
    %cst_366 = arith.constant dense<0.000000e+00> : vector<128xf32>
    %743 = vector.multi_reduction <add>, %742, %cst_366 [0] : vector<4x128xf32> to vector<128xf32>
    %744 = vector.shape_cast %743 : vector<128xf32> to vector<1x128xf32>
    %cst_367 = arith.constant 2.500000e-01 : f32
    %745 = vector.broadcast %cst_367 : f32 to vector<1x128xf32>
    %746 = arith.mulf %744, %745 : vector<1x128xf32>
    %747 = arith.negf %746 : vector<1x128xf32>
    %748 = math.exp %747 : vector<1x128xf32>
    %cst_368 = arith.constant 1.000000e+00 : f32
    %749 = vector.broadcast %cst_368 : f32 to vector<1x128xf32>
    %750 = arith.addf %749, %748 : vector<1x128xf32>
    %751 = arith.divf %749, %750 : vector<1x128xf32>
    %752 = arith.addf %739, %751 : vector<1x128xf32>
    %c0_369 = arith.constant 0 : index
    %c0_370 = arith.constant 0 : index
    %c0_371 = arith.constant 0 : index
    %c134_372 = arith.constant 134 : index
    %753 = vector.load %arg2[%c0_369, %c0_370, %c0_371, %c134_372] : memref<1x1x4x384xf32, #tpu.memory_space<vmem>>, vector<1x1x4x128xf32>
    %754 = vector.shape_cast %753 : vector<1x1x4x128xf32> to vector<4x128xf32>
    %755 = arith.mulf %754, %1 : vector<4x128xf32>
    %cst_373 = arith.constant dense<0.000000e+00> : vector<128xf32>
    %756 = vector.multi_reduction <add>, %755, %cst_373 [0] : vector<4x128xf32> to vector<128xf32>
    %757 = vector.shape_cast %756 : vector<128xf32> to vector<1x128xf32>
    %cst_374 = arith.constant 2.500000e-01 : f32
    %758 = vector.broadcast %cst_374 : f32 to vector<1x128xf32>
    %759 = arith.mulf %757, %758 : vector<1x128xf32>
    %760 = arith.negf %759 : vector<1x128xf32>
    %761 = math.exp %760 : vector<1x128xf32>
    %cst_375 = arith.constant 1.000000e+00 : f32
    %762 = vector.broadcast %cst_375 : f32 to vector<1x128xf32>
    %763 = arith.addf %762, %761 : vector<1x128xf32>
    %764 = arith.divf %762, %763 : vector<1x128xf32>
    %765 = arith.addf %752, %764 : vector<1x128xf32>
    %c0_376 = arith.constant 0 : index
    %c0_377 = arith.constant 0 : index
    %c0_378 = arith.constant 0 : index
    %c135_379 = arith.constant 135 : index
    %766 = vector.load %arg2[%c0_376, %c0_377, %c0_378, %c135_379] : memref<1x1x4x384xf32, #tpu.memory_space<vmem>>, vector<1x1x4x128xf32>
    %767 = vector.shape_cast %766 : vector<1x1x4x128xf32> to vector<4x128xf32>
    %768 = arith.mulf %767, %1 : vector<4x128xf32>
    %cst_380 = arith.constant dense<0.000000e+00> : vector<128xf32>
    %769 = vector.multi_reduction <add>, %768, %cst_380 [0] : vector<4x128xf32> to vector<128xf32>
    %770 = vector.shape_cast %769 : vector<128xf32> to vector<1x128xf32>
    %cst_381 = arith.constant 2.500000e-01 : f32
    %771 = vector.broadcast %cst_381 : f32 to vector<1x128xf32>
    %772 = arith.mulf %770, %771 : vector<1x128xf32>
    %773 = arith.negf %772 : vector<1x128xf32>
    %774 = math.exp %773 : vector<1x128xf32>
    %cst_382 = arith.constant 1.000000e+00 : f32
    %775 = vector.broadcast %cst_382 : f32 to vector<1x128xf32>
    %776 = arith.addf %775, %774 : vector<1x128xf32>
    %777 = arith.divf %775, %776 : vector<1x128xf32>
    %778 = arith.addf %765, %777 : vector<1x128xf32>
    %c0_383 = arith.constant 0 : index
    %c0_384 = arith.constant 0 : index
    %c0_385 = arith.constant 0 : index
    %c136_386 = arith.constant 136 : index
    %779 = vector.load %arg2[%c0_383, %c0_384, %c0_385, %c136_386] : memref<1x1x4x384xf32, #tpu.memory_space<vmem>>, vector<1x1x4x128xf32>
    %780 = vector.shape_cast %779 : vector<1x1x4x128xf32> to vector<4x128xf32>
    %781 = arith.mulf %780, %1 : vector<4x128xf32>
    %cst_387 = arith.constant dense<0.000000e+00> : vector<128xf32>
    %782 = vector.multi_reduction <add>, %781, %cst_387 [0] : vector<4x128xf32> to vector<128xf32>
    %783 = vector.shape_cast %782 : vector<128xf32> to vector<1x128xf32>
    %cst_388 = arith.constant 2.500000e-01 : f32
    %784 = vector.broadcast %cst_388 : f32 to vector<1x128xf32>
    %785 = arith.mulf %783, %784 : vector<1x128xf32>
    %786 = arith.negf %785 : vector<1x128xf32>
    %787 = math.exp %786 : vector<1x128xf32>
    %cst_389 = arith.constant 1.000000e+00 : f32
    %788 = vector.broadcast %cst_389 : f32 to vector<1x128xf32>
    %789 = arith.addf %788, %787 : vector<1x128xf32>
    %790 = arith.divf %788, %789 : vector<1x128xf32>
    %791 = arith.addf %778, %790 : vector<1x128xf32>
    %c0_390 = arith.constant 0 : index
    %c0_391 = arith.constant 0 : index
    %c0_392 = arith.constant 0 : index
    %c138 = arith.constant 138 : index
    %792 = vector.load %arg2[%c0_390, %c0_391, %c0_392, %c138] : memref<1x1x4x384xf32, #tpu.memory_space<vmem>>, vector<1x1x4x128xf32>
    %793 = vector.shape_cast %792 : vector<1x1x4x128xf32> to vector<4x128xf32>
    %794 = arith.mulf %793, %1 : vector<4x128xf32>
    %cst_393 = arith.constant dense<0.000000e+00> : vector<128xf32>
    %795 = vector.multi_reduction <add>, %794, %cst_393 [0] : vector<4x128xf32> to vector<128xf32>
    %796 = vector.shape_cast %795 : vector<128xf32> to vector<1x128xf32>
    %cst_394 = arith.constant 2.500000e-01 : f32
    %797 = vector.broadcast %cst_394 : f32 to vector<1x128xf32>
    %798 = arith.mulf %796, %797 : vector<1x128xf32>
    %799 = arith.negf %798 : vector<1x128xf32>
    %800 = math.exp %799 : vector<1x128xf32>
    %cst_395 = arith.constant 1.000000e+00 : f32
    %801 = vector.broadcast %cst_395 : f32 to vector<1x128xf32>
    %802 = arith.addf %801, %800 : vector<1x128xf32>
    %803 = arith.divf %801, %802 : vector<1x128xf32>
    %804 = arith.addf %791, %803 : vector<1x128xf32>
    %c0_396 = arith.constant 0 : index
    %c0_397 = arith.constant 0 : index
    %c0_398 = arith.constant 0 : index
    %c44_399 = arith.constant 44 : index
    %805 = vector.load %arg2[%c0_396, %c0_397, %c0_398, %c44_399] : memref<1x1x4x384xf32, #tpu.memory_space<vmem>>, vector<1x1x4x128xf32>
    %806 = vector.shape_cast %805 : vector<1x1x4x128xf32> to vector<4x128xf32>
    %807 = arith.mulf %806, %1 : vector<4x128xf32>
    %cst_400 = arith.constant dense<0.000000e+00> : vector<128xf32>
    %808 = vector.multi_reduction <add>, %807, %cst_400 [0] : vector<4x128xf32> to vector<128xf32>
    %809 = vector.shape_cast %808 : vector<128xf32> to vector<1x128xf32>
    %cst_401 = arith.constant 2.500000e-01 : f32
    %810 = vector.broadcast %cst_401 : f32 to vector<1x128xf32>
    %811 = arith.mulf %809, %810 : vector<1x128xf32>
    %812 = arith.negf %811 : vector<1x128xf32>
    %813 = math.exp %812 : vector<1x128xf32>
    %cst_402 = arith.constant 1.000000e+00 : f32
    %814 = vector.broadcast %cst_402 : f32 to vector<1x128xf32>
    %815 = arith.addf %814, %813 : vector<1x128xf32>
    %816 = arith.divf %814, %815 : vector<1x128xf32>
    %817 = arith.addf %804, %816 : vector<1x128xf32>
    %c0_403 = arith.constant 0 : index
    %c0_404 = arith.constant 0 : index
    %c0_405 = arith.constant 0 : index
    %c66_406 = arith.constant 66 : index
    %818 = vector.load %arg2[%c0_403, %c0_404, %c0_405, %c66_406] : memref<1x1x4x384xf32, #tpu.memory_space<vmem>>, vector<1x1x4x128xf32>
    %819 = vector.shape_cast %818 : vector<1x1x4x128xf32> to vector<4x128xf32>
    %820 = arith.mulf %819, %1 : vector<4x128xf32>
    %cst_407 = arith.constant dense<0.000000e+00> : vector<128xf32>
    %821 = vector.multi_reduction <add>, %820, %cst_407 [0] : vector<4x128xf32> to vector<128xf32>
    %822 = vector.shape_cast %821 : vector<128xf32> to vector<1x128xf32>
    %cst_408 = arith.constant 2.500000e-01 : f32
    %823 = vector.broadcast %cst_408 : f32 to vector<1x128xf32>
    %824 = arith.mulf %822, %823 : vector<1x128xf32>
    %825 = arith.negf %824 : vector<1x128xf32>
    %826 = math.exp %825 : vector<1x128xf32>
    %cst_409 = arith.constant 1.000000e+00 : f32
    %827 = vector.broadcast %cst_409 : f32 to vector<1x128xf32>
    %828 = arith.addf %827, %826 : vector<1x128xf32>
    %829 = arith.divf %827, %828 : vector<1x128xf32>
    %830 = arith.addf %817, %829 : vector<1x128xf32>
    %c0_410 = arith.constant 0 : index
    %c0_411 = arith.constant 0 : index
    %c0_412 = arith.constant 0 : index
    %c88_413 = arith.constant 88 : index
    %831 = vector.load %arg2[%c0_410, %c0_411, %c0_412, %c88_413] : memref<1x1x4x384xf32, #tpu.memory_space<vmem>>, vector<1x1x4x128xf32>
    %832 = vector.shape_cast %831 : vector<1x1x4x128xf32> to vector<4x128xf32>
    %833 = arith.mulf %832, %1 : vector<4x128xf32>
    %cst_414 = arith.constant dense<0.000000e+00> : vector<128xf32>
    %834 = vector.multi_reduction <add>, %833, %cst_414 [0] : vector<4x128xf32> to vector<128xf32>
    %835 = vector.shape_cast %834 : vector<128xf32> to vector<1x128xf32>
    %cst_415 = arith.constant 2.500000e-01 : f32
    %836 = vector.broadcast %cst_415 : f32 to vector<1x128xf32>
    %837 = arith.mulf %835, %836 : vector<1x128xf32>
    %838 = arith.negf %837 : vector<1x128xf32>
    %839 = math.exp %838 : vector<1x128xf32>
    %cst_416 = arith.constant 1.000000e+00 : f32
    %840 = vector.broadcast %cst_416 : f32 to vector<1x128xf32>
    %841 = arith.addf %840, %839 : vector<1x128xf32>
    %842 = arith.divf %840, %841 : vector<1x128xf32>
    %843 = arith.addf %830, %842 : vector<1x128xf32>
    %cst_417 = arith.constant 6.250000e-02 : f32
    %844 = vector.broadcast %cst_417 : f32 to vector<1x128xf32>
    %845 = arith.mulf %843, %844 : vector<1x128xf32>
    %c0_i32 = arith.constant 0 : i32
    %846 = vector.broadcast %c0_i32 : i32 to vector<1x128xi32>
    %c1_i32 = arith.constant 1 : i32
    %847 = vector.broadcast %c1_i32 : i32 to vector<1x128xi32>
    %c2_i32 = arith.constant 2 : i32
    %848 = vector.broadcast %c2_i32 : i32 to vector<1x128xi32>
    %c3_i32 = arith.constant 3 : i32
    %849 = vector.broadcast %c3_i32 : i32 to vector<1x128xi32>
    %850 = arith.cmpf olt, %423, %212 : vector<1x128xf32>
    %851 = arith.select %850, %423, %212 : vector<1x128xi1>, vector<1x128xf32>
    %852 = arith.select %850, %212, %423 : vector<1x128xi1>, vector<1x128xf32>
    %853 = arith.select %850, %847, %846 : vector<1x128xi1>, vector<1x128xi32>
    %854 = arith.select %850, %846, %847 : vector<1x128xi1>, vector<1x128xi32>
    %855 = arith.cmpf olt, %634, %851 : vector<1x128xf32>
    %856 = arith.select %855, %634, %851 : vector<1x128xi1>, vector<1x128xf32>
    %857 = arith.select %855, %851, %634 : vector<1x128xi1>, vector<1x128xf32>
    %858 = arith.select %855, %848, %853 : vector<1x128xi1>, vector<1x128xi32>
    %859 = arith.select %855, %853, %848 : vector<1x128xi1>, vector<1x128xi32>
    %860 = arith.cmpf olt, %845, %856 : vector<1x128xf32>
    %861 = arith.select %860, %845, %856 : vector<1x128xi1>, vector<1x128xf32>
    %862 = arith.select %860, %856, %845 : vector<1x128xi1>, vector<1x128xf32>
    %863 = arith.select %860, %849, %858 : vector<1x128xi1>, vector<1x128xi32>
    %864 = arith.select %860, %858, %849 : vector<1x128xi1>, vector<1x128xi32>
    %865 = arith.cmpf olt, %857, %852 : vector<1x128xf32>
    %866 = arith.select %865, %857, %852 : vector<1x128xi1>, vector<1x128xf32>
    %867 = arith.select %865, %852, %857 : vector<1x128xi1>, vector<1x128xf32>
    %868 = arith.select %865, %859, %854 : vector<1x128xi1>, vector<1x128xi32>
    %869 = arith.select %865, %854, %859 : vector<1x128xi1>, vector<1x128xi32>
    %870 = arith.cmpf olt, %862, %866 : vector<1x128xf32>
    %871 = arith.select %870, %862, %866 : vector<1x128xi1>, vector<1x128xf32>
    %872 = arith.select %870, %866, %862 : vector<1x128xi1>, vector<1x128xf32>
    %873 = arith.select %870, %864, %868 : vector<1x128xi1>, vector<1x128xi32>
    %874 = arith.select %870, %868, %864 : vector<1x128xi1>, vector<1x128xi32>
    %875 = arith.cmpf olt, %872, %867 : vector<1x128xf32>
    %876 = arith.select %875, %872, %867 : vector<1x128xi1>, vector<1x128xf32>
    %877 = arith.select %875, %867, %872 : vector<1x128xi1>, vector<1x128xf32>
    %878 = arith.select %875, %874, %869 : vector<1x128xi1>, vector<1x128xi32>
    %879 = arith.subf %871, %861 : vector<1x128xf32>
    %c0_i32_418 = arith.constant 0 : i32
    %880 = vector.broadcast %c0_i32_418 : i32 to vector<1x128xi32>
    %881 = arith.subf %876, %871 : vector<1x128xf32>
    %882 = arith.cmpf ogt, %881, %879 : vector<1x128xf32>
    %883 = arith.select %882, %881, %879 : vector<1x128xi1>, vector<1x128xf32>
    %c1_i32_419 = arith.constant 1 : i32
    %884 = vector.broadcast %c1_i32_419 : i32 to vector<1x128xi32>
    %885 = arith.select %882, %884, %880 : vector<1x128xi1>, vector<1x128xi32>
    %886 = arith.subf %877, %876 : vector<1x128xf32>
    %887 = arith.cmpf ogt, %886, %883 : vector<1x128xf32>
    %888 = arith.select %887, %886, %883 : vector<1x128xi1>, vector<1x128xf32>
    %c2_i32_420 = arith.constant 2 : i32
    %889 = vector.broadcast %c2_i32_420 : i32 to vector<1x128xi32>
    %890 = arith.select %887, %889, %885 : vector<1x128xi1>, vector<1x128xi32>
    %c1_i32_421 = arith.constant 1 : i32
    %891 = vector.broadcast %c1_i32_421 : i32 to vector<1x128xi32>
    %892 = arith.cmpi eq, %890, %891 : vector<1x128xi32>
    %893 = arith.select %892, %873, %863 : vector<1x128xi1>, vector<1x128xi32>
    %c2_i32_422 = arith.constant 2 : i32
    %894 = vector.broadcast %c2_i32_422 : i32 to vector<1x128xi32>
    %895 = arith.cmpi eq, %890, %894 : vector<1x128xi32>
    %896 = arith.select %895, %878, %893 : vector<1x128xi1>, vector<1x128xi32>
    %cst_423 = arith.constant 5.000000e-01 : f32
    %897 = vector.broadcast %cst_423 : f32 to vector<1x128xf32>
    %898 = arith.cmpf oge, %888, %897 : vector<1x128xf32>
    %c0_i32_424 = arith.constant 0 : i32
    %899 = vector.broadcast %c0_i32_424 : i32 to vector<1x128xi32>
    %900 = arith.select %898, %896, %899 : vector<1x128xi1>, vector<1x128xi32>
    %c0_425 = arith.constant 0 : index
    %c0_426 = arith.constant 0 : index
    %901 = vector.load %arg6[%c0_425, %c0_426] : memref<72x128xf32, #tpu.memory_space<vmem>>, vector<4x128xf32>
    tpu.vector_store %arg6[%c0_425, %c0_426], %1 {strides = array<i32>} : memref<72x128xf32, #tpu.memory_space<vmem>>, vector<4x128xf32>,
    %c0_427 = arith.constant 0 : index
    %c0_428 = arith.constant 0 : index
    %c0_429 = arith.constant 0 : index
    %c23_430 = arith.constant 23 : index
    %902 = vector.load %arg2[%c0_427, %c0_428, %c0_429, %c23_430] : memref<1x1x4x384xf32, #tpu.memory_space<vmem>>, vector<1x1x4x128xf32>
    %903 = vector.shape_cast %902 : vector<1x1x4x128xf32> to vector<4x128xf32>
    %c1_i32_431 = arith.constant 1 : i32
    %904 = vector.broadcast %c1_i32_431 : i32 to vector<1x128xi32>
    %905 = arith.cmpi eq, %900, %904 : vector<1x128xi32>
    %c0_432 = arith.constant 0 : index
    %c0_433 = arith.constant 0 : index
    %c0_434 = arith.constant 0 : index
    %c22_435 = arith.constant 22 : index
    %906 = vector.load %arg2[%c0_432, %c0_433, %c0_434, %c22_435] : memref<1x1x4x384xf32, #tpu.memory_space<vmem>>, vector<1x1x4x128xf32>
    %907 = vector.shape_cast %906 : vector<1x1x4x128xf32> to vector<4x128xf32>
    %908 = vector.shape_cast %905 : vector<1x128xi1> to vector<1x128xi1>
    %909 = vector.broadcast %908 : vector<1x128xi1> to vector<4x128xi1>
    %910 = arith.select %909, %907, %903 : vector<4x128xi1>, vector<4x128xf32>
    %c2_i32_436 = arith.constant 2 : i32
    %911 = vector.broadcast %c2_i32_436 : i32 to vector<1x128xi32>
    %912 = arith.cmpi eq, %900, %911 : vector<1x128xi32>
    %c0_437 = arith.constant 0 : index
    %c0_438 = arith.constant 0 : index
    %c0_439 = arith.constant 0 : index
    %c1_440 = arith.constant 1 : index
    %913 = vector.load %arg2[%c0_437, %c0_438, %c0_439, %c1_440] : memref<1x1x4x384xf32, #tpu.memory_space<vmem>>, vector<1x1x4x128xf32>
    %914 = vector.shape_cast %913 : vector<1x1x4x128xf32> to vector<4x128xf32>
    %915 = vector.shape_cast %912 : vector<1x128xi1> to vector<1x128xi1>
    %916 = vector.broadcast %915 : vector<1x128xi1> to vector<4x128xi1>
    %917 = arith.select %916, %914, %910 : vector<4x128xi1>, vector<4x128xf32>
    %c3_i32_441 = arith.constant 3 : i32
    %918 = vector.broadcast %c3_i32_441 : i32 to vector<1x128xi32>
    %919 = arith.cmpi eq, %900, %918 : vector<1x128xi32>
    %c0_442 = arith.constant 0 : index
    %c0_443 = arith.constant 0 : index
    %c0_444 = arith.constant 0 : index
    %c0_445 = arith.constant 0 : index
    %920 = vector.load %arg2[%c0_442, %c0_443, %c0_444, %c0_445] : memref<1x1x4x384xf32, #tpu.memory_space<vmem>>, vector<1x1x4x128xf32>
    %921 = vector.shape_cast %920 : vector<1x1x4x128xf32> to vector<4x128xf32>
    %922 = vector.shape_cast %919 : vector<1x128xi1> to vector<1x128xi1>
    %923 = vector.broadcast %922 : vector<1x128xi1> to vector<4x128xi1>
    %924 = arith.select %923, %921, %917 : vector<4x128xi1>, vector<4x128xf32>
    %c4_446 = arith.constant 4 : index
    %c0_447 = arith.constant 0 : index
    %925 = vector.load %arg6[%c4_446, %c0_447] : memref<72x128xf32, #tpu.memory_space<vmem>>, vector<4x128xf32>
    tpu.vector_store %arg6[%c4_446, %c0_447], %924 {strides = array<i32>} : memref<72x128xf32, #tpu.memory_space<vmem>>, vector<4x128xf32>,
    %c0_448 = arith.constant 0 : index
    %c0_449 = arith.constant 0 : index
    %c0_450 = arith.constant 0 : index
    %c24_451 = arith.constant 24 : index
    %926 = vector.load %arg2[%c0_448, %c0_449, %c0_450, %c24_451] : memref<1x1x4x384xf32, #tpu.memory_space<vmem>>, vector<1x1x4x128xf32>
    %927 = vector.shape_cast %926 : vector<1x1x4x128xf32> to vector<4x128xf32>
    %c1_i32_452 = arith.constant 1 : i32
    %928 = vector.broadcast %c1_i32_452 : i32 to vector<1x128xi32>
    %929 = arith.cmpi eq, %900, %928 : vector<1x128xi32>
    %c0_453 = arith.constant 0 : index
    %c0_454 = arith.constant 0 : index
    %c0_455 = arith.constant 0 : index
    %c24_456 = arith.constant 24 : index
    %930 = vector.load %arg2[%c0_453, %c0_454, %c0_455, %c24_456] : memref<1x1x4x384xf32, #tpu.memory_space<vmem>>, vector<1x1x4x128xf32>
    %931 = vector.shape_cast %930 : vector<1x1x4x128xf32> to vector<4x128xf32>
    %932 = vector.shape_cast %929 : vector<1x128xi1> to vector<1x128xi1>
    %933 = vector.broadcast %932 : vector<1x128xi1> to vector<4x128xi1>
    %934 = arith.select %933, %931, %927 : vector<4x128xi1>, vector<4x128xf32>
    %c2_i32_457 = arith.constant 2 : i32
    %935 = vector.broadcast %c2_i32_457 : i32 to vector<1x128xi32>
    %936 = arith.cmpi eq, %900, %935 : vector<1x128xi32>
    %c0_458 = arith.constant 0 : index
    %c0_459 = arith.constant 0 : index
    %c0_460 = arith.constant 0 : index
    %c2_461 = arith.constant 2 : index
    %937 = vector.load %arg2[%c0_458, %c0_459, %c0_460, %c2_461] : memref<1x1x4x384xf32, #tpu.memory_space<vmem>>, vector<1x1x4x128xf32>
    %938 = vector.shape_cast %937 : vector<1x1x4x128xf32> to vector<4x128xf32>
    %939 = vector.shape_cast %936 : vector<1x128xi1> to vector<1x128xi1>
    %940 = vector.broadcast %939 : vector<1x128xi1> to vector<4x128xi1>
    %941 = arith.select %940, %938, %934 : vector<4x128xi1>, vector<4x128xf32>
    %c3_i32_462 = arith.constant 3 : i32
    %942 = vector.broadcast %c3_i32_462 : i32 to vector<1x128xi32>
    %943 = arith.cmpi eq, %900, %942 : vector<1x128xi32>
    %c0_463 = arith.constant 0 : index
    %c0_464 = arith.constant 0 : index
    %c0_465 = arith.constant 0 : index
    %c2_466 = arith.constant 2 : index
    %944 = vector.load %arg2[%c0_463, %c0_464, %c0_465, %c2_466] : memref<1x1x4x384xf32, #tpu.memory_space<vmem>>, vector<1x1x4x128xf32>
    %945 = vector.shape_cast %944 : vector<1x1x4x128xf32> to vector<4x128xf32>
    %946 = vector.shape_cast %943 : vector<1x128xi1> to vector<1x128xi1>
    %947 = vector.broadcast %946 : vector<1x128xi1> to vector<4x128xi1>
    %948 = arith.select %947, %945, %941 : vector<4x128xi1>, vector<4x128xf32>
    %c8 = arith.constant 8 : index
    %c0_467 = arith.constant 0 : index
    %949 = vector.load %arg6[%c8, %c0_467] : memref<72x128xf32, #tpu.memory_space<vmem>>, vector<4x128xf32>
    tpu.vector_store %arg6[%c8, %c0_467], %948 {strides = array<i32>} : memref<72x128xf32, #tpu.memory_space<vmem>>, vector<4x128xf32>,
    %c0_468 = arith.constant 0 : index
    %c0_469 = arith.constant 0 : index
    %c0_470 = arith.constant 0 : index
    %c25_471 = arith.constant 25 : index
    %950 = vector.load %arg2[%c0_468, %c0_469, %c0_470, %c25_471] : memref<1x1x4x384xf32, #tpu.memory_space<vmem>>, vector<1x1x4x128xf32>
    %951 = vector.shape_cast %950 : vector<1x1x4x128xf32> to vector<4x128xf32>
    %c1_i32_472 = arith.constant 1 : i32
    %952 = vector.broadcast %c1_i32_472 : i32 to vector<1x128xi32>
    %953 = arith.cmpi eq, %900, %952 : vector<1x128xi32>
    %c0_473 = arith.constant 0 : index
    %c0_474 = arith.constant 0 : index
    %c0_475 = arith.constant 0 : index
    %c25_476 = arith.constant 25 : index
    %954 = vector.load %arg2[%c0_473, %c0_474, %c0_475, %c25_476] : memref<1x1x4x384xf32, #tpu.memory_space<vmem>>, vector<1x1x4x128xf32>
    %955 = vector.shape_cast %954 : vector<1x1x4x128xf32> to vector<4x128xf32>
    %956 = vector.shape_cast %953 : vector<1x128xi1> to vector<1x128xi1>
    %957 = vector.broadcast %956 : vector<1x128xi1> to vector<4x128xi1>
    %958 = arith.select %957, %955, %951 : vector<4x128xi1>, vector<4x128xf32>
    %c2_i32_477 = arith.constant 2 : i32
    %959 = vector.broadcast %c2_i32_477 : i32 to vector<1x128xi32>
    %960 = arith.cmpi eq, %900, %959 : vector<1x128xi32>
    %c0_478 = arith.constant 0 : index
    %c0_479 = arith.constant 0 : index
    %c0_480 = arith.constant 0 : index
    %c3_481 = arith.constant 3 : index
    %961 = vector.load %arg2[%c0_478, %c0_479, %c0_480, %c3_481] : memref<1x1x4x384xf32, #tpu.memory_space<vmem>>, vector<1x1x4x128xf32>
    %962 = vector.shape_cast %961 : vector<1x1x4x128xf32> to vector<4x128xf32>
    %963 = vector.shape_cast %960 : vector<1x128xi1> to vector<1x128xi1>
    %964 = vector.broadcast %963 : vector<1x128xi1> to vector<4x128xi1>
    %965 = arith.select %964, %962, %958 : vector<4x128xi1>, vector<4x128xf32>
    %c3_i32_482 = arith.constant 3 : i32
    %966 = vector.broadcast %c3_i32_482 : i32 to vector<1x128xi32>
    %967 = arith.cmpi eq, %900, %966 : vector<1x128xi32>
    %c0_483 = arith.constant 0 : index
    %c0_484 = arith.constant 0 : index
    %c0_485 = arith.constant 0 : index
    %c3_486 = arith.constant 3 : index
    %968 = vector.load %arg2[%c0_483, %c0_484, %c0_485, %c3_486] : memref<1x1x4x384xf32, #tpu.memory_space<vmem>>, vector<1x1x4x128xf32>
    %969 = vector.shape_cast %968 : vector<1x1x4x128xf32> to vector<4x128xf32>
    %970 = vector.shape_cast %967 : vector<1x128xi1> to vector<1x128xi1>
    %971 = vector.broadcast %970 : vector<1x128xi1> to vector<4x128xi1>
    %972 = arith.select %971, %969, %965 : vector<4x128xi1>, vector<4x128xf32>
    %c12 = arith.constant 12 : index
    %c0_487 = arith.constant 0 : index
    %973 = vector.load %arg6[%c12, %c0_487] : memref<72x128xf32, #tpu.memory_space<vmem>>, vector<4x128xf32>
    tpu.vector_store %arg6[%c12, %c0_487], %972 {strides = array<i32>} : memref<72x128xf32, #tpu.memory_space<vmem>>, vector<4x128xf32>,
    %c0_488 = arith.constant 0 : index
    %c0_489 = arith.constant 0 : index
    %c0_490 = arith.constant 0 : index
    %c26_491 = arith.constant 26 : index
    %974 = vector.load %arg2[%c0_488, %c0_489, %c0_490, %c26_491] : memref<1x1x4x384xf32, #tpu.memory_space<vmem>>, vector<1x1x4x128xf32>
    %975 = vector.shape_cast %974 : vector<1x1x4x128xf32> to vector<4x128xf32>
    %c1_i32_492 = arith.constant 1 : i32
    %976 = vector.broadcast %c1_i32_492 : i32 to vector<1x128xi32>
    %977 = arith.cmpi eq, %900, %976 : vector<1x128xi32>
    %c0_493 = arith.constant 0 : index
    %c0_494 = arith.constant 0 : index
    %c0_495 = arith.constant 0 : index
    %c26_496 = arith.constant 26 : index
    %978 = vector.load %arg2[%c0_493, %c0_494, %c0_495, %c26_496] : memref<1x1x4x384xf32, #tpu.memory_space<vmem>>, vector<1x1x4x128xf32>
    %979 = vector.shape_cast %978 : vector<1x1x4x128xf32> to vector<4x128xf32>
    %980 = vector.shape_cast %977 : vector<1x128xi1> to vector<1x128xi1>
    %981 = vector.broadcast %980 : vector<1x128xi1> to vector<4x128xi1>
    %982 = arith.select %981, %979, %975 : vector<4x128xi1>, vector<4x128xf32>
    %c2_i32_497 = arith.constant 2 : i32
    %983 = vector.broadcast %c2_i32_497 : i32 to vector<1x128xi32>
    %984 = arith.cmpi eq, %900, %983 : vector<1x128xi32>
    %c0_498 = arith.constant 0 : index
    %c0_499 = arith.constant 0 : index
    %c0_500 = arith.constant 0 : index
    %c4_501 = arith.constant 4 : index
    %985 = vector.load %arg2[%c0_498, %c0_499, %c0_500, %c4_501] : memref<1x1x4x384xf32, #tpu.memory_space<vmem>>, vector<1x1x4x128xf32>
    %986 = vector.shape_cast %985 : vector<1x1x4x128xf32> to vector<4x128xf32>
    %987 = vector.shape_cast %984 : vector<1x128xi1> to vector<1x128xi1>
    %988 = vector.broadcast %987 : vector<1x128xi1> to vector<4x128xi1>
    %989 = arith.select %988, %986, %982 : vector<4x128xi1>, vector<4x128xf32>
    %c3_i32_502 = arith.constant 3 : i32
    %990 = vector.broadcast %c3_i32_502 : i32 to vector<1x128xi32>
    %991 = arith.cmpi eq, %900, %990 : vector<1x128xi32>
    %c0_503 = arith.constant 0 : index
    %c0_504 = arith.constant 0 : index
    %c0_505 = arith.constant 0 : index
    %c4_506 = arith.constant 4 : index
    %992 = vector.load %arg2[%c0_503, %c0_504, %c0_505, %c4_506] : memref<1x1x4x384xf32, #tpu.memory_space<vmem>>, vector<1x1x4x128xf32>
    %993 = vector.shape_cast %992 : vector<1x1x4x128xf32> to vector<4x128xf32>
    %994 = vector.shape_cast %991 : vector<1x128xi1> to vector<1x128xi1>
    %995 = vector.broadcast %994 : vector<1x128xi1> to vector<4x128xi1>
    %996 = arith.select %995, %993, %989 : vector<4x128xi1>, vector<4x128xf32>
    %c16 = arith.constant 16 : index
    %c0_507 = arith.constant 0 : index
    %997 = vector.load %arg6[%c16, %c0_507] : memref<72x128xf32, #tpu.memory_space<vmem>>, vector<4x128xf32>
    tpu.vector_store %arg6[%c16, %c0_507], %996 {strides = array<i32>} : memref<72x128xf32, #tpu.memory_space<vmem>>, vector<4x128xf32>,
    %c0_508 = arith.constant 0 : index
    %c0_509 = arith.constant 0 : index
    %c0_510 = arith.constant 0 : index
    %c27_511 = arith.constant 27 : index
    %998 = vector.load %arg2[%c0_508, %c0_509, %c0_510, %c27_511] : memref<1x1x4x384xf32, #tpu.memory_space<vmem>>, vector<1x1x4x128xf32>
    %999 = vector.shape_cast %998 : vector<1x1x4x128xf32> to vector<4x128xf32>
    %c1_i32_512 = arith.constant 1 : i32
    %1000 = vector.broadcast %c1_i32_512 : i32 to vector<1x128xi32>
    %1001 = arith.cmpi eq, %900, %1000 : vector<1x128xi32>
    %c0_513 = arith.constant 0 : index
    %c0_514 = arith.constant 0 : index
    %c0_515 = arith.constant 0 : index
    %c28_516 = arith.constant 28 : index
    %1002 = vector.load %arg2[%c0_513, %c0_514, %c0_515, %c28_516] : memref<1x1x4x384xf32, #tpu.memory_space<vmem>>, vector<1x1x4x128xf32>
    %1003 = vector.shape_cast %1002 : vector<1x1x4x128xf32> to vector<4x128xf32>
    %1004 = vector.shape_cast %1001 : vector<1x128xi1> to vector<1x128xi1>
    %1005 = vector.broadcast %1004 : vector<1x128xi1> to vector<4x128xi1>
    %1006 = arith.select %1005, %1003, %999 : vector<4x128xi1>, vector<4x128xf32>
    %c2_i32_517 = arith.constant 2 : i32
    %1007 = vector.broadcast %c2_i32_517 : i32 to vector<1x128xi32>
    %1008 = arith.cmpi eq, %900, %1007 : vector<1x128xi32>
    %c0_518 = arith.constant 0 : index
    %c0_519 = arith.constant 0 : index
    %c0_520 = arith.constant 0 : index
    %c5_521 = arith.constant 5 : index
    %1009 = vector.load %arg2[%c0_518, %c0_519, %c0_520, %c5_521] : memref<1x1x4x384xf32, #tpu.memory_space<vmem>>, vector<1x1x4x128xf32>
    %1010 = vector.shape_cast %1009 : vector<1x1x4x128xf32> to vector<4x128xf32>
    %1011 = vector.shape_cast %1008 : vector<1x128xi1> to vector<1x128xi1>
    %1012 = vector.broadcast %1011 : vector<1x128xi1> to vector<4x128xi1>
    %1013 = arith.select %1012, %1010, %1006 : vector<4x128xi1>, vector<4x128xf32>
    %c3_i32_522 = arith.constant 3 : i32
    %1014 = vector.broadcast %c3_i32_522 : i32 to vector<1x128xi32>
    %1015 = arith.cmpi eq, %900, %1014 : vector<1x128xi32>
    %c0_523 = arith.constant 0 : index
    %c0_524 = arith.constant 0 : index
    %c0_525 = arith.constant 0 : index
    %c6_526 = arith.constant 6 : index
    %1016 = vector.load %arg2[%c0_523, %c0_524, %c0_525, %c6_526] : memref<1x1x4x384xf32, #tpu.memory_space<vmem>>, vector<1x1x4x128xf32>
    %1017 = vector.shape_cast %1016 : vector<1x1x4x128xf32> to vector<4x128xf32>
    %1018 = vector.shape_cast %1015 : vector<1x128xi1> to vector<1x128xi1>
    %1019 = vector.broadcast %1018 : vector<1x128xi1> to vector<4x128xi1>
    %1020 = arith.select %1019, %1017, %1013 : vector<4x128xi1>, vector<4x128xf32>
    %c20 = arith.constant 20 : index
    %c0_527 = arith.constant 0 : index
    %1021 = vector.load %arg6[%c20, %c0_527] : memref<72x128xf32, #tpu.memory_space<vmem>>, vector<4x128xf32>
    tpu.vector_store %arg6[%c20, %c0_527], %1020 {strides = array<i32>} : memref<72x128xf32, #tpu.memory_space<vmem>>, vector<4x128xf32>,
    %c0_528 = arith.constant 0 : index
    %c0_529 = arith.constant 0 : index
    %c0_530 = arith.constant 0 : index
    %c49_531 = arith.constant 49 : index
    %1022 = vector.load %arg2[%c0_528, %c0_529, %c0_530, %c49_531] : memref<1x1x4x384xf32, #tpu.memory_space<vmem>>, vector<1x1x4x128xf32>
    %1023 = vector.shape_cast %1022 : vector<1x1x4x128xf32> to vector<4x128xf32>
    %c1_i32_532 = arith.constant 1 : i32
    %1024 = vector.broadcast %c1_i32_532 : i32 to vector<1x128xi32>
    %1025 = arith.cmpi eq, %900, %1024 : vector<1x128xi32>
    %c0_533 = arith.constant 0 : index
    %c0_534 = arith.constant 0 : index
    %c0_535 = arith.constant 0 : index
    %c50_536 = arith.constant 50 : index
    %1026 = vector.load %arg2[%c0_533, %c0_534, %c0_535, %c50_536] : memref<1x1x4x384xf32, #tpu.memory_space<vmem>>, vector<1x1x4x128xf32>
    %1027 = vector.shape_cast %1026 : vector<1x1x4x128xf32> to vector<4x128xf32>
    %1028 = vector.shape_cast %1025 : vector<1x128xi1> to vector<1x128xi1>
    %1029 = vector.broadcast %1028 : vector<1x128xi1> to vector<4x128xi1>
    %1030 = arith.select %1029, %1027, %1023 : vector<4x128xi1>, vector<4x128xf32>
    %c2_i32_537 = arith.constant 2 : i32
    %1031 = vector.broadcast %c2_i32_537 : i32 to vector<1x128xi32>
    %1032 = arith.cmpi eq, %900, %1031 : vector<1x128xi32>
    %c0_538 = arith.constant 0 : index
    %c0_539 = arith.constant 0 : index
    %c0_540 = arith.constant 0 : index
    %c49_541 = arith.constant 49 : index
    %1033 = vector.load %arg2[%c0_538, %c0_539, %c0_540, %c49_541] : memref<1x1x4x384xf32, #tpu.memory_space<vmem>>, vector<1x1x4x128xf32>
    %1034 = vector.shape_cast %1033 : vector<1x1x4x128xf32> to vector<4x128xf32>
    %1035 = vector.shape_cast %1032 : vector<1x128xi1> to vector<1x128xi1>
    %1036 = vector.broadcast %1035 : vector<1x128xi1> to vector<4x128xi1>
    %1037 = arith.select %1036, %1034, %1030 : vector<4x128xi1>, vector<4x128xf32>
    %c3_i32_542 = arith.constant 3 : i32
    %1038 = vector.broadcast %c3_i32_542 : i32 to vector<1x128xi32>
    %1039 = arith.cmpi eq, %900, %1038 : vector<1x128xi32>
    %c0_543 = arith.constant 0 : index
    %c0_544 = arith.constant 0 : index
    %c0_545 = arith.constant 0 : index
    %c50_546 = arith.constant 50 : index
    %1040 = vector.load %arg2[%c0_543, %c0_544, %c0_545, %c50_546] : memref<1x1x4x384xf32, #tpu.memory_space<vmem>>, vector<1x1x4x128xf32>
    %1041 = vector.shape_cast %1040 : vector<1x1x4x128xf32> to vector<4x128xf32>
    %1042 = vector.shape_cast %1039 : vector<1x128xi1> to vector<1x128xi1>
    %1043 = vector.broadcast %1042 : vector<1x128xi1> to vector<4x128xi1>
    %1044 = arith.select %1043, %1041, %1037 : vector<4x128xi1>, vector<4x128xf32>
    %c24_547 = arith.constant 24 : index
    %c0_548 = arith.constant 0 : index
    %1045 = vector.load %arg6[%c24_547, %c0_548] : memref<72x128xf32, #tpu.memory_space<vmem>>, vector<4x128xf32>
    tpu.vector_store %arg6[%c24_547, %c0_548], %1044 {strides = array<i32>} : memref<72x128xf32, #tpu.memory_space<vmem>>, vector<4x128xf32>,
    %c0_549 = arith.constant 0 : index
    %c0_550 = arith.constant 0 : index
    %c0_551 = arith.constant 0 : index
    %c71_552 = arith.constant 71 : index
    %1046 = vector.load %arg2[%c0_549, %c0_550, %c0_551, %c71_552] : memref<1x1x4x384xf32, #tpu.memory_space<vmem>>, vector<1x1x4x128xf32>
    %1047 = vector.shape_cast %1046 : vector<1x1x4x128xf32> to vector<4x128xf32>
    %c1_i32_553 = arith.constant 1 : i32
    %1048 = vector.broadcast %c1_i32_553 : i32 to vector<1x128xi32>
    %1049 = arith.cmpi eq, %900, %1048 : vector<1x128xi32>
    %c0_554 = arith.constant 0 : index
    %c0_555 = arith.constant 0 : index
    %c0_556 = arith.constant 0 : index
    %c72_557 = arith.constant 72 : index
    %1050 = vector.load %arg2[%c0_554, %c0_555, %c0_556, %c72_557] : memref<1x1x4x384xf32, #tpu.memory_space<vmem>>, vector<1x1x4x128xf32>
    %1051 = vector.shape_cast %1050 : vector<1x1x4x128xf32> to vector<4x128xf32>
    %1052 = vector.shape_cast %1049 : vector<1x128xi1> to vector<1x128xi1>
    %1053 = vector.broadcast %1052 : vector<1x128xi1> to vector<4x128xi1>
    %1054 = arith.select %1053, %1051, %1047 : vector<4x128xi1>, vector<4x128xf32>
    %c2_i32_558 = arith.constant 2 : i32
    %1055 = vector.broadcast %c2_i32_558 : i32 to vector<1x128xi32>
    %1056 = arith.cmpi eq, %900, %1055 : vector<1x128xi32>
    %c0_559 = arith.constant 0 : index
    %c0_560 = arith.constant 0 : index
    %c0_561 = arith.constant 0 : index
    %c71_562 = arith.constant 71 : index
    %1057 = vector.load %arg2[%c0_559, %c0_560, %c0_561, %c71_562] : memref<1x1x4x384xf32, #tpu.memory_space<vmem>>, vector<1x1x4x128xf32>
    %1058 = vector.shape_cast %1057 : vector<1x1x4x128xf32> to vector<4x128xf32>
    %1059 = vector.shape_cast %1056 : vector<1x128xi1> to vector<1x128xi1>
    %1060 = vector.broadcast %1059 : vector<1x128xi1> to vector<4x128xi1>
    %1061 = arith.select %1060, %1058, %1054 : vector<4x128xi1>, vector<4x128xf32>
    %c3_i32_563 = arith.constant 3 : i32
    %1062 = vector.broadcast %c3_i32_563 : i32 to vector<1x128xi32>
    %1063 = arith.cmpi eq, %900, %1062 : vector<1x128xi32>
    %c0_564 = arith.constant 0 : index
    %c0_565 = arith.constant 0 : index
    %c0_566 = arith.constant 0 : index
    %c72_567 = arith.constant 72 : index
    %1064 = vector.load %arg2[%c0_564, %c0_565, %c0_566, %c72_567] : memref<1x1x4x384xf32, #tpu.memory_space<vmem>>, vector<1x1x4x128xf32>
    %1065 = vector.shape_cast %1064 : vector<1x1x4x128xf32> to vector<4x128xf32>
    %1066 = vector.shape_cast %1063 : vector<1x128xi1> to vector<1x128xi1>
    %1067 = vector.broadcast %1066 : vector<1x128xi1> to vector<4x128xi1>
    %1068 = arith.select %1067, %1065, %1061 : vector<4x128xi1>, vector<4x128xf32>
    %c28_568 = arith.constant 28 : index
    %c0_569 = arith.constant 0 : index
    %1069 = vector.load %arg6[%c28_568, %c0_569] : memref<72x128xf32, #tpu.memory_space<vmem>>, vector<4x128xf32>
    tpu.vector_store %arg6[%c28_568, %c0_569], %1068 {strides = array<i32>} : memref<72x128xf32, #tpu.memory_space<vmem>>, vector<4x128xf32>,
    %c0_570 = arith.constant 0 : index
    %c0_571 = arith.constant 0 : index
    %c0_572 = arith.constant 0 : index
    %c93_573 = arith.constant 93 : index
    %1070 = vector.load %arg2[%c0_570, %c0_571, %c0_572, %c93_573] : memref<1x1x4x384xf32, #tpu.memory_space<vmem>>, vector<1x1x4x128xf32>
    %1071 = vector.shape_cast %1070 : vector<1x1x4x128xf32> to vector<4x128xf32>
    %c1_i32_574 = arith.constant 1 : i32
    %1072 = vector.broadcast %c1_i32_574 : i32 to vector<1x128xi32>
    %1073 = arith.cmpi eq, %900, %1072 : vector<1x128xi32>
    %c0_575 = arith.constant 0 : index
    %c0_576 = arith.constant 0 : index
    %c0_577 = arith.constant 0 : index
    %c94_578 = arith.constant 94 : index
    %1074 = vector.load %arg2[%c0_575, %c0_576, %c0_577, %c94_578] : memref<1x1x4x384xf32, #tpu.memory_space<vmem>>, vector<1x1x4x128xf32>
    %1075 = vector.shape_cast %1074 : vector<1x1x4x128xf32> to vector<4x128xf32>
    %1076 = vector.shape_cast %1073 : vector<1x128xi1> to vector<1x128xi1>
    %1077 = vector.broadcast %1076 : vector<1x128xi1> to vector<4x128xi1>
    %1078 = arith.select %1077, %1075, %1071 : vector<4x128xi1>, vector<4x128xf32>
    %c2_i32_579 = arith.constant 2 : i32
    %1079 = vector.broadcast %c2_i32_579 : i32 to vector<1x128xi32>
    %1080 = arith.cmpi eq, %900, %1079 : vector<1x128xi32>
    %c0_580 = arith.constant 0 : index
    %c0_581 = arith.constant 0 : index
    %c0_582 = arith.constant 0 : index
    %c93_583 = arith.constant 93 : index
    %1081 = vector.load %arg2[%c0_580, %c0_581, %c0_582, %c93_583] : memref<1x1x4x384xf32, #tpu.memory_space<vmem>>, vector<1x1x4x128xf32>
    %1082 = vector.shape_cast %1081 : vector<1x1x4x128xf32> to vector<4x128xf32>
    %1083 = vector.shape_cast %1080 : vector<1x128xi1> to vector<1x128xi1>
    %1084 = vector.broadcast %1083 : vector<1x128xi1> to vector<4x128xi1>
    %1085 = arith.select %1084, %1082, %1078 : vector<4x128xi1>, vector<4x128xf32>
    %c3_i32_584 = arith.constant 3 : i32
    %1086 = vector.broadcast %c3_i32_584 : i32 to vector<1x128xi32>
    %1087 = arith.cmpi eq, %900, %1086 : vector<1x128xi32>
    %c0_585 = arith.constant 0 : index
    %c0_586 = arith.constant 0 : index
    %c0_587 = arith.constant 0 : index
    %c94_588 = arith.constant 94 : index
    %1088 = vector.load %arg2[%c0_585, %c0_586, %c0_587, %c94_588] : memref<1x1x4x384xf32, #tpu.memory_space<vmem>>, vector<1x1x4x128xf32>
    %1089 = vector.shape_cast %1088 : vector<1x1x4x128xf32> to vector<4x128xf32>
    %1090 = vector.shape_cast %1087 : vector<1x128xi1> to vector<1x128xi1>
    %1091 = vector.broadcast %1090 : vector<1x128xi1> to vector<4x128xi1>
    %1092 = arith.select %1091, %1089, %1085 : vector<4x128xi1>, vector<4x128xf32>
    %c32 = arith.constant 32 : index
    %c0_589 = arith.constant 0 : index
    %1093 = vector.load %arg6[%c32, %c0_589] : memref<72x128xf32, #tpu.memory_space<vmem>>, vector<4x128xf32>
    tpu.vector_store %arg6[%c32, %c0_589], %1092 {strides = array<i32>} : memref<72x128xf32, #tpu.memory_space<vmem>>, vector<4x128xf32>,
    %c0_590 = arith.constant 0 : index
    %c0_591 = arith.constant 0 : index
    %c0_592 = arith.constant 0 : index
    %c111_593 = arith.constant 111 : index
    %1094 = vector.load %arg2[%c0_590, %c0_591, %c0_592, %c111_593] : memref<1x1x4x384xf32, #tpu.memory_space<vmem>>, vector<1x1x4x128xf32>
    %1095 = vector.shape_cast %1094 : vector<1x1x4x128xf32> to vector<4x128xf32>
    %c1_i32_594 = arith.constant 1 : i32
    %1096 = vector.broadcast %c1_i32_594 : i32 to vector<1x128xi32>
    %1097 = arith.cmpi eq, %900, %1096 : vector<1x128xi32>
    %c0_595 = arith.constant 0 : index
    %c0_596 = arith.constant 0 : index
    %c0_597 = arith.constant 0 : index
    %c110_598 = arith.constant 110 : index
    %1098 = vector.load %arg2[%c0_595, %c0_596, %c0_597, %c110_598] : memref<1x1x4x384xf32, #tpu.memory_space<vmem>>, vector<1x1x4x128xf32>
    %1099 = vector.shape_cast %1098 : vector<1x1x4x128xf32> to vector<4x128xf32>
    %1100 = vector.shape_cast %1097 : vector<1x128xi1> to vector<1x128xi1>
    %1101 = vector.broadcast %1100 : vector<1x128xi1> to vector<4x128xi1>
    %1102 = arith.select %1101, %1099, %1095 : vector<4x128xi1>, vector<4x128xf32>
    %c2_i32_599 = arith.constant 2 : i32
    %1103 = vector.broadcast %c2_i32_599 : i32 to vector<1x128xi32>
    %1104 = arith.cmpi eq, %900, %1103 : vector<1x128xi32>
    %c0_600 = arith.constant 0 : index
    %c0_601 = arith.constant 0 : index
    %c0_602 = arith.constant 0 : index
    %c133_603 = arith.constant 133 : index
    %1105 = vector.load %arg2[%c0_600, %c0_601, %c0_602, %c133_603] : memref<1x1x4x384xf32, #tpu.memory_space<vmem>>, vector<1x1x4x128xf32>
    %1106 = vector.shape_cast %1105 : vector<1x1x4x128xf32> to vector<4x128xf32>
    %1107 = vector.shape_cast %1104 : vector<1x128xi1> to vector<1x128xi1>
    %1108 = vector.broadcast %1107 : vector<1x128xi1> to vector<4x128xi1>
    %1109 = arith.select %1108, %1106, %1102 : vector<4x128xi1>, vector<4x128xf32>
    %c3_i32_604 = arith.constant 3 : i32
    %1110 = vector.broadcast %c3_i32_604 : i32 to vector<1x128xi32>
    %1111 = arith.cmpi eq, %900, %1110 : vector<1x128xi32>
    %c0_605 = arith.constant 0 : index
    %c0_606 = arith.constant 0 : index
    %c0_607 = arith.constant 0 : index
    %c132_608 = arith.constant 132 : index
    %1112 = vector.load %arg2[%c0_605, %c0_606, %c0_607, %c132_608] : memref<1x1x4x384xf32, #tpu.memory_space<vmem>>, vector<1x1x4x128xf32>
    %1113 = vector.shape_cast %1112 : vector<1x1x4x128xf32> to vector<4x128xf32>
    %1114 = vector.shape_cast %1111 : vector<1x128xi1> to vector<1x128xi1>
    %1115 = vector.broadcast %1114 : vector<1x128xi1> to vector<4x128xi1>
    %1116 = arith.select %1115, %1113, %1109 : vector<4x128xi1>, vector<4x128xf32>
    %c36 = arith.constant 36 : index
    %c0_609 = arith.constant 0 : index
    %1117 = vector.load %arg6[%c36, %c0_609] : memref<72x128xf32, #tpu.memory_space<vmem>>, vector<4x128xf32>
    tpu.vector_store %arg6[%c36, %c0_609], %1116 {strides = array<i32>} : memref<72x128xf32, #tpu.memory_space<vmem>>, vector<4x128xf32>,
    %c0_610 = arith.constant 0 : index
    %c0_611 = arith.constant 0 : index
    %c0_612 = arith.constant 0 : index
    %c112_613 = arith.constant 112 : index
    %1118 = vector.load %arg2[%c0_610, %c0_611, %c0_612, %c112_613] : memref<1x1x4x384xf32, #tpu.memory_space<vmem>>, vector<1x1x4x128xf32>
    %1119 = vector.shape_cast %1118 : vector<1x1x4x128xf32> to vector<4x128xf32>
    %c1_i32_614 = arith.constant 1 : i32
    %1120 = vector.broadcast %c1_i32_614 : i32 to vector<1x128xi32>
    %1121 = arith.cmpi eq, %900, %1120 : vector<1x128xi32>
    %c0_615 = arith.constant 0 : index
    %c0_616 = arith.constant 0 : index
    %c0_617 = arith.constant 0 : index
    %c112_618 = arith.constant 112 : index
    %1122 = vector.load %arg2[%c0_615, %c0_616, %c0_617, %c112_618] : memref<1x1x4x384xf32, #tpu.memory_space<vmem>>, vector<1x1x4x128xf32>
    %1123 = vector.shape_cast %1122 : vector<1x1x4x128xf32> to vector<4x128xf32>
    %1124 = vector.shape_cast %1121 : vector<1x128xi1> to vector<1x128xi1>
    %1125 = vector.broadcast %1124 : vector<1x128xi1> to vector<4x128xi1>
    %1126 = arith.select %1125, %1123, %1119 : vector<4x128xi1>, vector<4x128xf32>
    %c2_i32_619 = arith.constant 2 : i32
    %1127 = vector.broadcast %c2_i32_619 : i32 to vector<1x128xi32>
    %1128 = arith.cmpi eq, %900, %1127 : vector<1x128xi32>
    %c0_620 = arith.constant 0 : index
    %c0_621 = arith.constant 0 : index
    %c0_622 = arith.constant 0 : index
    %c134_623 = arith.constant 134 : index
    %1129 = vector.load %arg2[%c0_620, %c0_621, %c0_622, %c134_623] : memref<1x1x4x384xf32, #tpu.memory_space<vmem>>, vector<1x1x4x128xf32>
    %1130 = vector.shape_cast %1129 : vector<1x1x4x128xf32> to vector<4x128xf32>
    %1131 = vector.shape_cast %1128 : vector<1x128xi1> to vector<1x128xi1>
    %1132 = vector.broadcast %1131 : vector<1x128xi1> to vector<4x128xi1>
    %1133 = arith.select %1132, %1130, %1126 : vector<4x128xi1>, vector<4x128xf32>
    %c3_i32_624 = arith.constant 3 : i32
    %1134 = vector.broadcast %c3_i32_624 : i32 to vector<1x128xi32>
    %1135 = arith.cmpi eq, %900, %1134 : vector<1x128xi32>
    %c0_625 = arith.constant 0 : index
    %c0_626 = arith.constant 0 : index
    %c0_627 = arith.constant 0 : index
    %c134_628 = arith.constant 134 : index
    %1136 = vector.load %arg2[%c0_625, %c0_626, %c0_627, %c134_628] : memref<1x1x4x384xf32, #tpu.memory_space<vmem>>, vector<1x1x4x128xf32>
    %1137 = vector.shape_cast %1136 : vector<1x1x4x128xf32> to vector<4x128xf32>
    %1138 = vector.shape_cast %1135 : vector<1x128xi1> to vector<1x128xi1>
    %1139 = vector.broadcast %1138 : vector<1x128xi1> to vector<4x128xi1>
    %1140 = arith.select %1139, %1137, %1133 : vector<4x128xi1>, vector<4x128xf32>
    %c40 = arith.constant 40 : index
    %c0_629 = arith.constant 0 : index
    %1141 = vector.load %arg6[%c40, %c0_629] : memref<72x128xf32, #tpu.memory_space<vmem>>, vector<4x128xf32>
    tpu.vector_store %arg6[%c40, %c0_629], %1140 {strides = array<i32>} : memref<72x128xf32, #tpu.memory_space<vmem>>, vector<4x128xf32>,
    %c0_630 = arith.constant 0 : index
    %c0_631 = arith.constant 0 : index
    %c0_632 = arith.constant 0 : index
    %c113_633 = arith.constant 113 : index
    %1142 = vector.load %arg2[%c0_630, %c0_631, %c0_632, %c113_633] : memref<1x1x4x384xf32, #tpu.memory_space<vmem>>, vector<1x1x4x128xf32>
    %1143 = vector.shape_cast %1142 : vector<1x1x4x128xf32> to vector<4x128xf32>
    %c1_i32_634 = arith.constant 1 : i32
    %1144 = vector.broadcast %c1_i32_634 : i32 to vector<1x128xi32>
    %1145 = arith.cmpi eq, %900, %1144 : vector<1x128xi32>
    %c0_635 = arith.constant 0 : index
    %c0_636 = arith.constant 0 : index
    %c0_637 = arith.constant 0 : index
    %c113_638 = arith.constant 113 : index
    %1146 = vector.load %arg2[%c0_635, %c0_636, %c0_637, %c113_638] : memref<1x1x4x384xf32, #tpu.memory_space<vmem>>, vector<1x1x4x128xf32>
    %1147 = vector.shape_cast %1146 : vector<1x1x4x128xf32> to vector<4x128xf32>
    %1148 = vector.shape_cast %1145 : vector<1x128xi1> to vector<1x128xi1>
    %1149 = vector.broadcast %1148 : vector<1x128xi1> to vector<4x128xi1>
    %1150 = arith.select %1149, %1147, %1143 : vector<4x128xi1>, vector<4x128xf32>
    %c2_i32_639 = arith.constant 2 : i32
    %1151 = vector.broadcast %c2_i32_639 : i32 to vector<1x128xi32>
    %1152 = arith.cmpi eq, %900, %1151 : vector<1x128xi32>
    %c0_640 = arith.constant 0 : index
    %c0_641 = arith.constant 0 : index
    %c0_642 = arith.constant 0 : index
    %c135_643 = arith.constant 135 : index
    %1153 = vector.load %arg2[%c0_640, %c0_641, %c0_642, %c135_643] : memref<1x1x4x384xf32, #tpu.memory_space<vmem>>, vector<1x1x4x128xf32>
    %1154 = vector.shape_cast %1153 : vector<1x1x4x128xf32> to vector<4x128xf32>
    %1155 = vector.shape_cast %1152 : vector<1x128xi1> to vector<1x128xi1>
    %1156 = vector.broadcast %1155 : vector<1x128xi1> to vector<4x128xi1>
    %1157 = arith.select %1156, %1154, %1150 : vector<4x128xi1>, vector<4x128xf32>
    %c3_i32_644 = arith.constant 3 : i32
    %1158 = vector.broadcast %c3_i32_644 : i32 to vector<1x128xi32>
    %1159 = arith.cmpi eq, %900, %1158 : vector<1x128xi32>
    %c0_645 = arith.constant 0 : index
    %c0_646 = arith.constant 0 : index
    %c0_647 = arith.constant 0 : index
    %c135_648 = arith.constant 135 : index
    %1160 = vector.load %arg2[%c0_645, %c0_646, %c0_647, %c135_648] : memref<1x1x4x384xf32, #tpu.memory_space<vmem>>, vector<1x1x4x128xf32>
    %1161 = vector.shape_cast %1160 : vector<1x1x4x128xf32> to vector<4x128xf32>
    %1162 = vector.shape_cast %1159 : vector<1x128xi1> to vector<1x128xi1>
    %1163 = vector.broadcast %1162 : vector<1x128xi1> to vector<4x128xi1>
    %1164 = arith.select %1163, %1161, %1157 : vector<4x128xi1>, vector<4x128xf32>
    %c44_649 = arith.constant 44 : index
    %c0_650 = arith.constant 0 : index
    %1165 = vector.load %arg6[%c44_649, %c0_650] : memref<72x128xf32, #tpu.memory_space<vmem>>, vector<4x128xf32>
    tpu.vector_store %arg6[%c44_649, %c0_650], %1164 {strides = array<i32>} : memref<72x128xf32, #tpu.memory_space<vmem>>, vector<4x128xf32>,
    %c0_651 = arith.constant 0 : index
    %c0_652 = arith.constant 0 : index
    %c0_653 = arith.constant 0 : index
    %c114_654 = arith.constant 114 : index
    %1166 = vector.load %arg2[%c0_651, %c0_652, %c0_653, %c114_654] : memref<1x1x4x384xf32, #tpu.memory_space<vmem>>, vector<1x1x4x128xf32>
    %1167 = vector.shape_cast %1166 : vector<1x1x4x128xf32> to vector<4x128xf32>
    %c1_i32_655 = arith.constant 1 : i32
    %1168 = vector.broadcast %c1_i32_655 : i32 to vector<1x128xi32>
    %1169 = arith.cmpi eq, %900, %1168 : vector<1x128xi32>
    %c0_656 = arith.constant 0 : index
    %c0_657 = arith.constant 0 : index
    %c0_658 = arith.constant 0 : index
    %c114_659 = arith.constant 114 : index
    %1170 = vector.load %arg2[%c0_656, %c0_657, %c0_658, %c114_659] : memref<1x1x4x384xf32, #tpu.memory_space<vmem>>, vector<1x1x4x128xf32>
    %1171 = vector.shape_cast %1170 : vector<1x1x4x128xf32> to vector<4x128xf32>
    %1172 = vector.shape_cast %1169 : vector<1x128xi1> to vector<1x128xi1>
    %1173 = vector.broadcast %1172 : vector<1x128xi1> to vector<4x128xi1>
    %1174 = arith.select %1173, %1171, %1167 : vector<4x128xi1>, vector<4x128xf32>
    %c2_i32_660 = arith.constant 2 : i32
    %1175 = vector.broadcast %c2_i32_660 : i32 to vector<1x128xi32>
    %1176 = arith.cmpi eq, %900, %1175 : vector<1x128xi32>
    %c0_661 = arith.constant 0 : index
    %c0_662 = arith.constant 0 : index
    %c0_663 = arith.constant 0 : index
    %c136_664 = arith.constant 136 : index
    %1177 = vector.load %arg2[%c0_661, %c0_662, %c0_663, %c136_664] : memref<1x1x4x384xf32, #tpu.memory_space<vmem>>, vector<1x1x4x128xf32>
    %1178 = vector.shape_cast %1177 : vector<1x1x4x128xf32> to vector<4x128xf32>
    %1179 = vector.shape_cast %1176 : vector<1x128xi1> to vector<1x128xi1>
    %1180 = vector.broadcast %1179 : vector<1x128xi1> to vector<4x128xi1>
    %1181 = arith.select %1180, %1178, %1174 : vector<4x128xi1>, vector<4x128xf32>
    %c3_i32_665 = arith.constant 3 : i32
    %1182 = vector.broadcast %c3_i32_665 : i32 to vector<1x128xi32>
    %1183 = arith.cmpi eq, %900, %1182 : vector<1x128xi32>
    %c0_666 = arith.constant 0 : index
    %c0_667 = arith.constant 0 : index
    %c0_668 = arith.constant 0 : index
    %c136_669 = arith.constant 136 : index
    %1184 = vector.load %arg2[%c0_666, %c0_667, %c0_668, %c136_669] : memref<1x1x4x384xf32, #tpu.memory_space<vmem>>, vector<1x1x4x128xf32>
    %1185 = vector.shape_cast %1184 : vector<1x1x4x128xf32> to vector<4x128xf32>
    %1186 = vector.shape_cast %1183 : vector<1x128xi1> to vector<1x128xi1>
    %1187 = vector.broadcast %1186 : vector<1x128xi1> to vector<4x128xi1>
    %1188 = arith.select %1187, %1185, %1181 : vector<4x128xi1>, vector<4x128xf32>
    %c48 = arith.constant 48 : index
    %c0_670 = arith.constant 0 : index
    %1189 = vector.load %arg6[%c48, %c0_670] : memref<72x128xf32, #tpu.memory_space<vmem>>, vector<4x128xf32>
    tpu.vector_store %arg6[%c48, %c0_670], %1188 {strides = array<i32>} : memref<72x128xf32, #tpu.memory_space<vmem>>, vector<4x128xf32>,
    %c0_671 = arith.constant 0 : index
    %c0_672 = arith.constant 0 : index
    %c0_673 = arith.constant 0 : index
    %c115_674 = arith.constant 115 : index
    %1190 = vector.load %arg2[%c0_671, %c0_672, %c0_673, %c115_674] : memref<1x1x4x384xf32, #tpu.memory_space<vmem>>, vector<1x1x4x128xf32>
    %1191 = vector.shape_cast %1190 : vector<1x1x4x128xf32> to vector<4x128xf32>
    %c1_i32_675 = arith.constant 1 : i32
    %1192 = vector.broadcast %c1_i32_675 : i32 to vector<1x128xi32>
    %1193 = arith.cmpi eq, %900, %1192 : vector<1x128xi32>
    %c0_676 = arith.constant 0 : index
    %c0_677 = arith.constant 0 : index
    %c0_678 = arith.constant 0 : index
    %c116_679 = arith.constant 116 : index
    %1194 = vector.load %arg2[%c0_676, %c0_677, %c0_678, %c116_679] : memref<1x1x4x384xf32, #tpu.memory_space<vmem>>, vector<1x1x4x128xf32>
    %1195 = vector.shape_cast %1194 : vector<1x1x4x128xf32> to vector<4x128xf32>
    %1196 = vector.shape_cast %1193 : vector<1x128xi1> to vector<1x128xi1>
    %1197 = vector.broadcast %1196 : vector<1x128xi1> to vector<4x128xi1>
    %1198 = arith.select %1197, %1195, %1191 : vector<4x128xi1>, vector<4x128xf32>
    %c2_i32_680 = arith.constant 2 : i32
    %1199 = vector.broadcast %c2_i32_680 : i32 to vector<1x128xi32>
    %1200 = arith.cmpi eq, %900, %1199 : vector<1x128xi32>
    %c0_681 = arith.constant 0 : index
    %c0_682 = arith.constant 0 : index
    %c0_683 = arith.constant 0 : index
    %c137_684 = arith.constant 137 : index
    %1201 = vector.load %arg2[%c0_681, %c0_682, %c0_683, %c137_684] : memref<1x1x4x384xf32, #tpu.memory_space<vmem>>, vector<1x1x4x128xf32>
    %1202 = vector.shape_cast %1201 : vector<1x1x4x128xf32> to vector<4x128xf32>
    %1203 = vector.shape_cast %1200 : vector<1x128xi1> to vector<1x128xi1>
    %1204 = vector.broadcast %1203 : vector<1x128xi1> to vector<4x128xi1>
    %1205 = arith.select %1204, %1202, %1198 : vector<4x128xi1>, vector<4x128xf32>
    %c3_i32_685 = arith.constant 3 : i32
    %1206 = vector.broadcast %c3_i32_685 : i32 to vector<1x128xi32>
    %1207 = arith.cmpi eq, %900, %1206 : vector<1x128xi32>
    %c0_686 = arith.constant 0 : index
    %c0_687 = arith.constant 0 : index
    %c0_688 = arith.constant 0 : index
    %c138_689 = arith.constant 138 : index
    %1208 = vector.load %arg2[%c0_686, %c0_687, %c0_688, %c138_689] : memref<1x1x4x384xf32, #tpu.memory_space<vmem>>, vector<1x1x4x128xf32>
    %1209 = vector.shape_cast %1208 : vector<1x1x4x128xf32> to vector<4x128xf32>
    %1210 = vector.shape_cast %1207 : vector<1x128xi1> to vector<1x128xi1>
    %1211 = vector.broadcast %1210 : vector<1x128xi1> to vector<4x128xi1>
    %1212 = arith.select %1211, %1209, %1205 : vector<4x128xi1>, vector<4x128xf32>
    %c52 = arith.constant 52 : index
    %c0_690 = arith.constant 0 : index
    %1213 = vector.load %arg6[%c52, %c0_690] : memref<72x128xf32, #tpu.memory_space<vmem>>, vector<4x128xf32>
    tpu.vector_store %arg6[%c52, %c0_690], %1212 {strides = array<i32>} : memref<72x128xf32, #tpu.memory_space<vmem>>, vector<4x128xf32>,
    %c0_691 = arith.constant 0 : index
    %c0_692 = arith.constant 0 : index
    %c0_693 = arith.constant 0 : index
    %c45_694 = arith.constant 45 : index
    %1214 = vector.load %arg2[%c0_691, %c0_692, %c0_693, %c45_694] : memref<1x1x4x384xf32, #tpu.memory_space<vmem>>, vector<1x1x4x128xf32>
    %1215 = vector.shape_cast %1214 : vector<1x1x4x128xf32> to vector<4x128xf32>
    %c1_i32_695 = arith.constant 1 : i32
    %1216 = vector.broadcast %c1_i32_695 : i32 to vector<1x128xi32>
    %1217 = arith.cmpi eq, %900, %1216 : vector<1x128xi32>
    %c0_696 = arith.constant 0 : index
    %c0_697 = arith.constant 0 : index
    %c0_698 = arith.constant 0 : index
    %c44_699 = arith.constant 44 : index
    %1218 = vector.load %arg2[%c0_696, %c0_697, %c0_698, %c44_699] : memref<1x1x4x384xf32, #tpu.memory_space<vmem>>, vector<1x1x4x128xf32>
    %1219 = vector.shape_cast %1218 : vector<1x1x4x128xf32> to vector<4x128xf32>
    %1220 = vector.shape_cast %1217 : vector<1x128xi1> to vector<1x128xi1>
    %1221 = vector.broadcast %1220 : vector<1x128xi1> to vector<4x128xi1>
    %1222 = arith.select %1221, %1219, %1215 : vector<4x128xi1>, vector<4x128xf32>
    %c2_i32_700 = arith.constant 2 : i32
    %1223 = vector.broadcast %c2_i32_700 : i32 to vector<1x128xi32>
    %1224 = arith.cmpi eq, %900, %1223 : vector<1x128xi32>
    %c0_701 = arith.constant 0 : index
    %c0_702 = arith.constant 0 : index
    %c0_703 = arith.constant 0 : index
    %c45_704 = arith.constant 45 : index
    %1225 = vector.load %arg2[%c0_701, %c0_702, %c0_703, %c45_704] : memref<1x1x4x384xf32, #tpu.memory_space<vmem>>, vector<1x1x4x128xf32>
    %1226 = vector.shape_cast %1225 : vector<1x1x4x128xf32> to vector<4x128xf32>
    %1227 = vector.shape_cast %1224 : vector<1x128xi1> to vector<1x128xi1>
    %1228 = vector.broadcast %1227 : vector<1x128xi1> to vector<4x128xi1>
    %1229 = arith.select %1228, %1226, %1222 : vector<4x128xi1>, vector<4x128xf32>
    %c3_i32_705 = arith.constant 3 : i32
    %1230 = vector.broadcast %c3_i32_705 : i32 to vector<1x128xi32>
    %1231 = arith.cmpi eq, %900, %1230 : vector<1x128xi32>
    %c0_706 = arith.constant 0 : index
    %c0_707 = arith.constant 0 : index
    %c0_708 = arith.constant 0 : index
    %c44_709 = arith.constant 44 : index
    %1232 = vector.load %arg2[%c0_706, %c0_707, %c0_708, %c44_709] : memref<1x1x4x384xf32, #tpu.memory_space<vmem>>, vector<1x1x4x128xf32>
    %1233 = vector.shape_cast %1232 : vector<1x1x4x128xf32> to vector<4x128xf32>
    %1234 = vector.shape_cast %1231 : vector<1x128xi1> to vector<1x128xi1>
    %1235 = vector.broadcast %1234 : vector<1x128xi1> to vector<4x128xi1>
    %1236 = arith.select %1235, %1233, %1229 : vector<4x128xi1>, vector<4x128xf32>
    %c56 = arith.constant 56 : index
    %c0_710 = arith.constant 0 : index
    %1237 = vector.load %arg6[%c56, %c0_710] : memref<72x128xf32, #tpu.memory_space<vmem>>, vector<4x128xf32>
    tpu.vector_store %arg6[%c56, %c0_710], %1236 {strides = array<i32>} : memref<72x128xf32, #tpu.memory_space<vmem>>, vector<4x128xf32>,
    %c0_711 = arith.constant 0 : index
    %c0_712 = arith.constant 0 : index
    %c0_713 = arith.constant 0 : index
    %c67_714 = arith.constant 67 : index
    %1238 = vector.load %arg2[%c0_711, %c0_712, %c0_713, %c67_714] : memref<1x1x4x384xf32, #tpu.memory_space<vmem>>, vector<1x1x4x128xf32>
    %1239 = vector.shape_cast %1238 : vector<1x1x4x128xf32> to vector<4x128xf32>
    %c1_i32_715 = arith.constant 1 : i32
    %1240 = vector.broadcast %c1_i32_715 : i32 to vector<1x128xi32>
    %1241 = arith.cmpi eq, %900, %1240 : vector<1x128xi32>
    %c0_716 = arith.constant 0 : index
    %c0_717 = arith.constant 0 : index
    %c0_718 = arith.constant 0 : index
    %c66_719 = arith.constant 66 : index
    %1242 = vector.load %arg2[%c0_716, %c0_717, %c0_718, %c66_719] : memref<1x1x4x384xf32, #tpu.memory_space<vmem>>, vector<1x1x4x128xf32>
    %1243 = vector.shape_cast %1242 : vector<1x1x4x128xf32> to vector<4x128xf32>
    %1244 = vector.shape_cast %1241 : vector<1x128xi1> to vector<1x128xi1>
    %1245 = vector.broadcast %1244 : vector<1x128xi1> to vector<4x128xi1>
    %1246 = arith.select %1245, %1243, %1239 : vector<4x128xi1>, vector<4x128xf32>
    %c2_i32_720 = arith.constant 2 : i32
    %1247 = vector.broadcast %c2_i32_720 : i32 to vector<1x128xi32>
    %1248 = arith.cmpi eq, %900, %1247 : vector<1x128xi32>
    %c0_721 = arith.constant 0 : index
    %c0_722 = arith.constant 0 : index
    %c0_723 = arith.constant 0 : index
    %c67_724 = arith.constant 67 : index
    %1249 = vector.load %arg2[%c0_721, %c0_722, %c0_723, %c67_724] : memref<1x1x4x384xf32, #tpu.memory_space<vmem>>, vector<1x1x4x128xf32>
    %1250 = vector.shape_cast %1249 : vector<1x1x4x128xf32> to vector<4x128xf32>
    %1251 = vector.shape_cast %1248 : vector<1x128xi1> to vector<1x128xi1>
    %1252 = vector.broadcast %1251 : vector<1x128xi1> to vector<4x128xi1>
    %1253 = arith.select %1252, %1250, %1246 : vector<4x128xi1>, vector<4x128xf32>
    %c3_i32_725 = arith.constant 3 : i32
    %1254 = vector.broadcast %c3_i32_725 : i32 to vector<1x128xi32>
    %1255 = arith.cmpi eq, %900, %1254 : vector<1x128xi32>
    %c0_726 = arith.constant 0 : index
    %c0_727 = arith.constant 0 : index
    %c0_728 = arith.constant 0 : index
    %c66_729 = arith.constant 66 : index
    %1256 = vector.load %arg2[%c0_726, %c0_727, %c0_728, %c66_729] : memref<1x1x4x384xf32, #tpu.memory_space<vmem>>, vector<1x1x4x128xf32>
    %1257 = vector.shape_cast %1256 : vector<1x1x4x128xf32> to vector<4x128xf32>
    %1258 = vector.shape_cast %1255 : vector<1x128xi1> to vector<1x128xi1>
    %1259 = vector.broadcast %1258 : vector<1x128xi1> to vector<4x128xi1>
    %1260 = arith.select %1259, %1257, %1253 : vector<4x128xi1>, vector<4x128xf32>
    %c60 = arith.constant 60 : index
    %c0_730 = arith.constant 0 : index
    %1261 = vector.load %arg6[%c60, %c0_730] : memref<72x128xf32, #tpu.memory_space<vmem>>, vector<4x128xf32>
    tpu.vector_store %arg6[%c60, %c0_730], %1260 {strides = array<i32>} : memref<72x128xf32, #tpu.memory_space<vmem>>, vector<4x128xf32>,
    %c0_731 = arith.constant 0 : index
    %c0_732 = arith.constant 0 : index
    %c0_733 = arith.constant 0 : index
    %c89_734 = arith.constant 89 : index
    %1262 = vector.load %arg2[%c0_731, %c0_732, %c0_733, %c89_734] : memref<1x1x4x384xf32, #tpu.memory_space<vmem>>, vector<1x1x4x128xf32>
    %1263 = vector.shape_cast %1262 : vector<1x1x4x128xf32> to vector<4x128xf32>
    %c1_i32_735 = arith.constant 1 : i32
    %1264 = vector.broadcast %c1_i32_735 : i32 to vector<1x128xi32>
    %1265 = arith.cmpi eq, %900, %1264 : vector<1x128xi32>
    %c0_736 = arith.constant 0 : index
    %c0_737 = arith.constant 0 : index
    %c0_738 = arith.constant 0 : index
    %c88_739 = arith.constant 88 : index
    %1266 = vector.load %arg2[%c0_736, %c0_737, %c0_738, %c88_739] : memref<1x1x4x384xf32, #tpu.memory_space<vmem>>, vector<1x1x4x128xf32>
    %1267 = vector.shape_cast %1266 : vector<1x1x4x128xf32> to vector<4x128xf32>
    %1268 = vector.shape_cast %1265 : vector<1x128xi1> to vector<1x128xi1>
    %1269 = vector.broadcast %1268 : vector<1x128xi1> to vector<4x128xi1>
    %1270 = arith.select %1269, %1267, %1263 : vector<4x128xi1>, vector<4x128xf32>
    %c2_i32_740 = arith.constant 2 : i32
    %1271 = vector.broadcast %c2_i32_740 : i32 to vector<1x128xi32>
    %1272 = arith.cmpi eq, %900, %1271 : vector<1x128xi32>
    %c0_741 = arith.constant 0 : index
    %c0_742 = arith.constant 0 : index
    %c0_743 = arith.constant 0 : index
    %c89_744 = arith.constant 89 : index
    %1273 = vector.load %arg2[%c0_741, %c0_742, %c0_743, %c89_744] : memref<1x1x4x384xf32, #tpu.memory_space<vmem>>, vector<1x1x4x128xf32>
    %1274 = vector.shape_cast %1273 : vector<1x1x4x128xf32> to vector<4x128xf32>
    %1275 = vector.shape_cast %1272 : vector<1x128xi1> to vector<1x128xi1>
    %1276 = vector.broadcast %1275 : vector<1x128xi1> to vector<4x128xi1>
    %1277 = arith.select %1276, %1274, %1270 : vector<4x128xi1>, vector<4x128xf32>
    %c3_i32_745 = arith.constant 3 : i32
    %1278 = vector.broadcast %c3_i32_745 : i32 to vector<1x128xi32>
    %1279 = arith.cmpi eq, %900, %1278 : vector<1x128xi32>
    %c0_746 = arith.constant 0 : index
    %c0_747 = arith.constant 0 : index
    %c0_748 = arith.constant 0 : index
    %c88_749 = arith.constant 88 : index
    %1280 = vector.load %arg2[%c0_746, %c0_747, %c0_748, %c88_749] : memref<1x1x4x384xf32, #tpu.memory_space<vmem>>, vector<1x1x4x128xf32>
    %1281 = vector.shape_cast %1280 : vector<1x1x4x128xf32> to vector<4x128xf32>
    %1282 = vector.shape_cast %1279 : vector<1x128xi1> to vector<1x128xi1>
    %1283 = vector.broadcast %1282 : vector<1x128xi1> to vector<4x128xi1>
    %1284 = arith.select %1283, %1281, %1277 : vector<4x128xi1>, vector<4x128xf32>
    %c64 = arith.constant 64 : index
    %c0_750 = arith.constant 0 : index
    %1285 = vector.load %arg6[%c64, %c0_750] : memref<72x128xf32, #tpu.memory_space<vmem>>, vector<4x128xf32>
    tpu.vector_store %arg6[%c64, %c0_750], %1284 {strides = array<i32>} : memref<72x128xf32, #tpu.memory_space<vmem>>, vector<4x128xf32>,
    %cst_751 = arith.constant 0.000000e+00 : f32
    %1286 = vector.broadcast %cst_751 : f32 to vector<4x128xf32>
    %c68 = arith.constant 68 : index
    %c0_752 = arith.constant 0 : index
    %1287 = vector.load %arg6[%c68, %c0_752] : memref<72x128xf32, #tpu.memory_space<vmem>>, vector<4x128xf32>
    tpu.vector_store %arg6[%c68, %c0_752], %1286 {strides = array<i32>} : memref<72x128xf32, #tpu.memory_space<vmem>>, vector<4x128xf32>,
    %c0_753 = arith.constant 0 : index
    %c0_754 = arith.constant 0 : index
    %1288 = vector.load %arg3[%c0_753, %c0_754] : memref<8x72xf32, #tpu.memory_space<vmem>>, vector<8x72xf32>
    %c0_755 = arith.constant 0 : index
    %c0_756 = arith.constant 0 : index
    %1289 = vector.load %arg6[%c0_755, %c0_756] : memref<72x128xf32, #tpu.memory_space<vmem>>, vector<72x128xf32>
    %cst_757 = arith.constant dense<0.000000e+00> : vector<8x128xf32>
    %1290 = tpu.matmul %1288, %1289, %cst_757 {dimension_numbers = #tpu.dot_dimension_numbers<[1], [0], [0], [1], [0, 0, 1, 1], [], []>} : vector<8x72xf32>, vector<72x128xf32>, vector<8x128xf32> -> vector<8x128xf32>
    %c0_758 = arith.constant 0 : index
    %c0_759 = arith.constant 0 : index
    %1291 = vector.load %arg4[%c0_758, %c0_759] : memref<8x1xf32, #tpu.memory_space<vmem>>, vector<8x1xf32>
    %1292 = vector.broadcast %1291 : vector<8x1xf32> to vector<8x128xf32>
    %1293 = arith.addf %1290, %1292 : vector<8x128xf32>
    %c0_760 = arith.constant 0 : index
    %c0_761 = arith.constant 0 : index
    %c0_762 = arith.constant 0 : index
    %1294 = vector.load %arg5[%c0_760, %c0_761, %c0_762] : memref<1x8x128xf32, #tpu.memory_space<vmem>>, vector<1x8x128xf32>
    %1295 = vector.shape_cast %1294 : vector<1x8x128xf32> to vector<8x128xf32>
    %1296 = vector.shape_cast %1293 : vector<8x128xf32> to vector<1x8x128xf32>
    tpu.vector_store %arg5[%c0_760, %c0_761, %c0_762], %1296 {strides = array<i32>} : memref<1x8x128xf32, #tpu.memory_space<vmem>>, vector<1x8x128xf32>,
    return
  }
  func.func @transform_0(%arg0: i32, %arg1: i32) -> (i32, i32, i32, i32) {
    %c0_i32 = arith.constant 0 : i32
    %c0_i32_0 = arith.constant 0 : i32
    %c0_i32_1 = arith.constant 0 : i32
    return %arg0, %arg1, %c0_i32, %c0_i32_0 : i32, i32, i32, i32
  }
  func.func @transform_1(%arg0: i32, %arg1: i32) -> (i32, i32) {
    %c0_i32 = arith.constant 0 : i32
    %c0_i32_0 = arith.constant 0 : i32
    %c0_i32_1 = arith.constant 0 : i32
    return %c0_i32, %c0_i32_0 : i32, i32
  }
  func.func @transform_2(%arg0: i32, %arg1: i32) -> (i32, i32) {
    %c0_i32 = arith.constant 0 : i32
    %c0_i32_0 = arith.constant 0 : i32
    %c0_i32_1 = arith.constant 0 : i32
    return %c0_i32, %c0_i32_0 : i32, i32
  }
  func.func @transform_3(%arg0: i32, %arg1: i32) -> (i32, i32, i32) {
    %c0_i32 = arith.constant 0 : i32
    %c0_i32_0 = arith.constant 0 : i32
    return %arg0, %c0_i32, %arg1 : i32, i32, i32
  }
}

</mosaic_0001>

<bundles_post_ra>
// kernel: f.1
= control target key start
LH: loop header
LB: loop body
LE: loop exit
PB: predicated region body
PF: predicated region fallthrough
CT: control target
= control target key end

     0   :  { %s3807_s12 = smov 0   ;;  %s3809_s13 = smov 0   ;;  %s5506_s0 = inlined_call_operand.vmem [shape: f32[2,3,4,384], index: 0, kind: input, shape index: {}]   ;;  %s5507_s1 = inlined_call_operand.vmem [shape: f32[8,72], index: 1, kind: input, shape index: {}]   ;;  %s5508_s2 = inlined_call_operand.vmem [shape: f32[8,1], index: 2, kind: input, shape index: {}]   ;;  %s5509_s3 = inlined_call_operand.vmem [shape: f32[2,8,384], index: 3, kind: output, shape index: {}]  }
   0x1   :  { %s3811_s14 = smov 0   ;;  %s3813_s15 = smov 0  }
   0x2   :  { %s3815_s16 = smov 0  }
   0x3 LB: > { %s22_s17 = sadd.s32 1, %s3701_s14  ;;  %s25_s18 = sadd.s32 1, %s3705_s15  ;;  %s3709_s16 = sphi %s3815_s16, %s13_s16   ;;  %s3705_s15 = sphi %s3813_s15, %s5701_s15   ;;  %s3701_s14 = sphi %s3811_s14, %s5700_s14   ;;  %s3697_s13 = sphi %s3809_s13, %s5699_s13   ;;  %s3693_s12 = sphi %s3807_s12, %s5698_s12  }
   0x4   : > { %p23_p0 = scmp.ge.s32.totalorder %s22_s17, 3  ;;  %p3100_p1 = scmp.ge.s32.totalorder %s3709_s16, 1 }
   0x5   : > { %p157_p2 = scmp.lt.s32.totalorder %s3709_s16, 7 }
   0x6   : > { %s5703_s17 = smov (%p23_p0, %s22_s17), 0  ;;  %s5705_s18 = smov (!%p23_p0, %s25_s18), %s3705_s15 }
   0x7   : > { %p158_p3 = pnand %p3100_p1, %p157_p2  ;;  %p27_p4 = scmp.ge.s32.totalorder %s5705_s18, 2 }
   0x9   : > { %s5707_s18 = smov (%p27_p4, %s5705_s18), 0  ;;  %161 = sbr.rel (%p158_p3) target bundleno = 1187 (0x4a3), region = 32 }
  0x10   : > { %p188_p5 = scmp.lt.s32.totalorder %s3697_s13, 1  ;;  %p190_p6 = scmp.lt.s32.totalorder %s3693_s12, 2  ;;  %vm356_vm0 = vcmask 695296   ;;  %vm5534_vm1 = vcmask 678912   ;;  %vm363_vm2 = vcmask 1043664   ;;  %vm259_vm3 = vcmask 1043648  }
  0x11   : > { %s3711_s26 = smov 85   ;;  %s5512_s27 = smov 83   ;;  %vm408_vm4 = vcmask 703488   ;;  %vm304_vm5 = vcmask 687104   ;;  %vm415_vm6 = vcmask 1043672   ;;  %vm311_vm7 = vcmask 1043656  }
  0x12   : > { %s5709_s13 = smov (!%p188_p5, %s3697_s13), 1  ;;  %s5711_s12 = smov (!%p190_p6, %s3693_s12), 2  ;;  %vm512_vm8 = vcmask 15360   ;;  %vm460_vm9 = vcmask 883712   ;;  %vm519_vm10 = vcmask 1044024   ;;  %vm467_vm11 = vcmask 1043848  }
  0x13   : > { %s3229_s19 = smul.u32 9, %s5709_s13  ;;  %s3713_s28 = smov 86   ;;  %vm616_vm12 = vcmask 343040   ;;  %vm371_vm13 = vcmask 207872   ;;  %vm623_vm14 = vcmask 1044344   ;;  %vm267_vm15 = vcmask 191488  }
  0x14   : > { %s3228_s20 = smul.u32 3, %s5711_s12  ;;  %s3714_s29 = smov 84  }
  0x15   : > { %s3715_s30 = smov 2   ;;  %s3716_s4 = smov 108  }
  0x16   : > { %s194_s21 = sadd.s32 %s3229_s19, %s3228_s20  ;;  %s3717_s5 = smov 42  }
  0x17   : > { %s3101_s22 = sshll.u32 %s194_s21, 2  ;;  %s3718_s6 = smov 24  }
  0x18   : > { %s3846_s25 = scalar_lea.vmem %s5506_s0, %s3101_s22  ;;  %s3719_s7 = smov 44  }
  0x19   : > { %v3849_v0 = vld [vmem:[%s3846_s25] sm:$0xff]  ;;  %s3720_s8 = smov 43   ;;  %s3721_s9 = smov 46  }
  0x1a   : > { %353 = vrot.lane.b32.xlu1 %v3849_v0, %s3711_s26  ;;  %249 = vrot.lane.b32.xlu0 %v3849_v0, %s5512_s27  ;;  %s3722_s10 = smov 45   ;;  %s3723_s11 = smov 126  }
  0x1b   : > { %s5516_s19 = smov 104   ;;  %s3725_s20 = smov 82  }
  0x1c   : > { %s3726_s21 = smov 20   ;;  %s3727_s22 = smov 109  }
  0x1d   : > { %s3728_s23 = smov 87   ;;  %s3729_s24 = smov 25  }
  0x1e   : > { %405 = vrot.lane.b32.xlu1 %v3849_v0, %s3713_s28  ;;  %301 = vrot.lane.b32.xlu0 %v3849_v0, %s3714_s29  ;;  %s3730_s26 = smov 3   ;;  %s3731_s28 = smov 47  }
  0x1f   : > { %s3758_s27 = smov 122  }
  0x22   : > { %509 = vrot.lane.b32.xlu1 %v3849_v0, %s3715_s30  ;;  %457 = vrot.lane.b32.xlu0 %v3849_v0, %s3716_s4  ;;  %s3732_s30 = smov 41   ;;  %s5514_s4 = smov 103  }
  0x26   : > { %613 = vrot.lane.b32.xlu1 %v3849_v0, %s3717_s5  ;;  %561 = vrot.lane.b32.xlu0 %v3849_v0, %s3718_s6  ;;  %s3734_s5 = smov 125   ;;  %s3735_s6 = smov 19  }
  0x2a   : > { %717 = vrot.lane.b32.xlu1 %v3849_v0, %s3719_s7  ;;  %665 = vrot.lane.b32.xlu0 %v3849_v0, %s3720_s8  ;;  %s3736_s7 = smov 81   ;;  %s5510_s8 = smov 61  }
  0x2e   : > { %821 = vrot.lane.b32.xlu1 %v3849_v0, %s3721_s9  ;;  %769 = vrot.lane.b32.xlu0 %v3849_v0, %s3722_s10  ;;  %s3738_s9 = smov 62   ;;  %s3739_s10 = smov 63  }
  0x32   : > { %925 = vrot.lane.b32.xlu1 %v3849_v0, %s3723_s11  ;;  %873 = vrot.lane.b32.xlu0 %v3849_v0, %s5516_s19  ;;  %s3760_s19 = smov 78  }
  0x36   : > { %207 = vrot.lane.b32.xlu1 %v3849_v0, %s3725_s20  ;;  %975 = vrot.lane.b32.xlu0 %v3849_v0, %s3726_s21  ;;  %s3740_s20 = smov 64   ;;  %s3741_s21 = smov 66  }
  0x3a   : > { %1150 = vrot.lane.b32.xlu1 %v3849_v0, %s3727_s22  ;;  %1098 = vrot.lane.b32.xlu0 %v3849_v0, %s3728_s23  ;;  %s3742_s22 = smov 68   ;;  %s3743_s23 = smov 65  }
  0x3e   : > { %1254 = vrot.lane.b32.xlu1 %v3849_v0, %s3729_s24  ;;  %1202 = vrot.lane.b32.xlu0 %v3849_v0, %s3730_s26  ;;  %s3744_s24 = smov 67   ;;  %s3745_s26 = smov 60  }
  0x42   : > { %1384 = vrot.lane.b32.xlu1 %v3849_v0, %s3731_s28  ;;  %1306 = vrot.lane.b32.xlu0 %v3849_v0, %s3732_s30  ;;  %s3746_s28 = smov 127   ;;  %s3747_s30 = smov 124  }
  0x46   : > { %1436 = vrot.lane.b32.xlu0 %v3849_v0, %s5514_s4  ;;  %1487 = vrot.lane.b32.xlu1 %v3849_v0, %s3734_s5  ;;  %s3759_s4 = smov 100  }
  0x4a   : > { %1537 = vrot.lane.b32.xlu0 %v3849_v0, %s3735_s6  ;;  %1029 = vrot.lane.b32.xlu1 %v3849_v0, %s3736_s7  ;;  %s3748_s6 = smov 102   ;;  %s3749_s7 = smov 80  }
  0x4e   : > { %1632 = vrot.lane.b32.xlu0 %v3849_v0, %s5510_s8  ;;  %1683 = vrot.lane.b32.xlu1 %v3849_v0, %s3738_s9  ;;  %s5518_s8 = smov 34  }
  0x52   : > { %1733 = vrot.lane.b32.xlu0 %v3849_v0, %s3739_s10  ;;  %1784 = vrot.lane.b32.xlu1 %v3849_v0, %s3740_s20  ;;  %s5540_s10 = smov 40   ;;  %s3751_s20 = smov 58  }
  0x56   : > { %1958 = vrot.lane.b32.xlu1 %v3849_v0, %s3741_s21  ;;  %1906 = vrot.lane.b32.xlu0 %v3849_v0, %s3743_s23  ;;  %s3752_s21 = smov 38   ;;  %s3754_s23 = smov 36  }
  0x5a   : > { %2061 = vrot.lane.b32.xlu1 %v3849_v0, %s3742_s22  ;;  %2009 = vrot.lane.b32.xlu0 %v3849_v0, %s3744_s24  ;;  %s5538_s22 = smov 39   ;;  %s3755_s24 = smov 37  }
  0x5e   : > { %1590 = vrot.lane.b32.xlu0 %v3849_v0, %s3745_s26  ;;  %s3756_s26 = smov 106  }
  0x8c   : > { %v354_v1 = vpop.permute.xlu1 %353  ;;  %v250_v2 = vpop.permute.xlu0 %249 }
  0x8d   : > { %v355_v3 = vrot.slane %v354_v1, 4  ;;  %v251_v4 = vrot.slane %v250_v2, 4 }
  0x8f   : > { %v357_v5 = vsel %vm356_vm0, %v354_v1, %v355_v3  ;;  %v253_v6 = vsel %vm5534_vm1, %v250_v2, %v251_v4  ;;  %vm423_vm0 = vcmask 216064   ;;  %vm2321_vm1 = vcmask 1043536  }
  0x90   : > { %v3895_v7 = vmul.f32 %v357_v5, %v3849_v0  ;;  %v3898_v8 = vmul.f32 %v253_v6, %v3849_v0  ;;  %v406_v9 = vpop.permute.xlu1 %405  ;;  %v302_v10 = vpop.permute.xlu0 %301 }
  0x91   : > { %v407_v11 = vrot.slane %v406_v9, 4  ;;  %v303_v12 = vrot.slane %v302_v10, 4 }
  0x92   : > { %v364_v13 = vsel %vm363_vm2, %v3895_v7, 0.0  ;;  %v260_v14 = vsel %vm259_vm3, %v3898_v8, 0.0  ;;  %v361_v61 = vcombine.high %v3895_v7, %v3895_v7  ;;  %v257_v5 = vcombine.high %v3898_v8, %v3898_v8 }
  0x93   : > { %v365_v15 = vrot.slane %v364_v13, 4  ;;  %v261_v16 = vrot.slane %v260_v14, 4  ;;  %v409_v17 = vsel %vm408_vm4, %v406_v9, %v407_v11  ;;  %v305_v18 = vsel %vm304_vm5, %v302_v10, %v303_v12 }
  0x94   : > { %v3905_v19 = vmul.f32 %v409_v17, %v3849_v0  ;;  %v3908_v20 = vmul.f32 %v305_v18, %v3849_v0  ;;  %v510_v41 = vpop.permute.xlu1 %509  ;;  %v458_v49 = vpop.permute.xlu0 %457  ;;  %v372_v10 = vsel %vm371_vm13, %v361_v61, 0.0  ;;  %vm319_vm2 = vcmask 199680  }
  0x95   : > { %v366_v21 = vadd.f32 %v365_v15, %v364_v13  ;;  %v262_v22 = vadd.f32 %v261_v16, %v260_v14  ;;  %v511_v50 = vrot.slane %v510_v41, 4  ;;  %v459_v56 = vrot.slane %v458_v49, 4 }
  0x96   : > { %v416_v23 = vsel %vm415_vm6, %v3905_v19, 0.0  ;;  %v312_v24 = vsel %vm311_vm7, %v3908_v20, 0.0  ;;  %v268_v16 = vsel %vm267_vm15, %v257_v5, 0.0  ;;  %vm564_vm3 = vcmask 195584  }
  0x97   : > { %v367_v25 = vrot.slane %v366_v21, 2  ;;  %v263_v26 = vrot.slane %v262_v22, 2  ;;  %v417_v27 = vrot.slane %v416_v23, 4  ;;  %v313_v28 = vrot.slane %v312_v24, 4 }
  0x98   : > { %v614_v52 = vpop.permute.xlu1 %613  ;;  %v513_v55 = vsel %vm512_vm8, %v511_v50, %v510_v41  ;;  %v461_v59 = vsel %vm460_vm9, %v458_v49, %v459_v56  ;;  %vm571_vm4 = vcmask 1044200   ;;  %vm720_vm6 = vcmask 359424  }
  0x99   : > { %v368_v29 = vadd.f32 %v367_v25, %v366_v21  ;;  %v264_v30 = vadd.f32 %v263_v26, %v262_v22  ;;  %v418_v31 = vadd.f32 %v417_v27, %v416_v23  ;;  %v314_v32 = vadd.f32 %v313_v28, %v312_v24 }
  0x9a   : > { %v3913_v58 = vmul.f32 %v513_v55, %v3849_v0  ;;  %v615_v60 = vrot.slane %v614_v52, 4  ;;  %v3918_v62 = vmul.f32 %v461_v59, %v3849_v0  ;;  %v373_v21 = vrot.slane %v372_v10, 4 }
  0x9b   : > { %v369_v33 = vrot.slane %v368_v29, 1  ;;  %v265_v34 = vrot.slane %v264_v30, 1  ;;  %v419_v35 = vrot.slane %v418_v31, 2  ;;  %v315_v36 = vrot.slane %v314_v32, 2 }
  0x9c   : > { %v520_v1 = vsel %vm519_vm10, %v3913_v58, 0.0  ;;  %v617_v2 = vsel %vm616_vm12, %v615_v60, %v614_v52  ;;  %v468_v4 = vsel %vm467_vm11, %v3918_v62, 0.0  ;;  %v269_v24 = vrot.slane %v268_v16, 4 }
  0x9d   : > { %v370_v37 = vadd.f32 %v369_v33, %v368_v29  ;;  %v266_v38 = vadd.f32 %v265_v34, %v264_v30  ;;  %v420_v39 = vadd.f32 %v419_v35, %v418_v31  ;;  %v316_v40 = vadd.f32 %v315_v36, %v314_v32  ;;  %v562_v35 = vpop.permute.xlu0 %561 }
  0x9e   : > { %v521_v3 = vrot.slane %v520_v1, 4  ;;  %v469_v6 = vrot.slane %v468_v4, 4  ;;  %v3925_v7 = vmul.f32 %v617_v2, %v3849_v0  ;;  %v413_v28 = vcombine.high %v3905_v19, %v3905_v19 }
  0x9f   : > { %v3105_v42 = vmul.f32 -0.25, %v266_v38  ;;  %v3109_v43 = vmul.f32 -0.25, %v370_v37  ;;  %v421_v44 = vrot.slane %v420_v39, 1  ;;  %v317_v45 = vrot.slane %v316_v40, 1 }
  0xa0   : > { %v522_v9 = vadd.f32 %v521_v3, %v520_v1  ;;  %v470_v11 = vadd.f32 %v469_v6, %v468_v4  ;;  %v624_v12 = vsel %vm623_vm14, %v3925_v7, 0.0  ;;  %v309_v29 = vcombine.high %v3908_v20, %v3908_v20 }
  0xa1   : > { %v279_v46 = vmul.f32 1.442695, %v3105_v42  ;;  %v422_v47 = vadd.f32 %v421_v44, %v420_v39  ;;  %v318_v48 = vadd.f32 %v317_v45, %v316_v40  ;;  %v383_v51 = vmul.f32 1.442695, %v3109_v43  ;;  %v666_v2 = vpop.permute.xlu0 %665 }
  0xa2   : > { %v523_v14 = vrot.slane %v522_v9, 2  ;;  %v625_v15 = vrot.slane %v624_v12, 4  ;;  %v471_v18 = vrot.slane %v470_v11, 2  ;;  %v374_v31 = vadd.f32 %v373_v21, %v372_v10 }
  0xa3   : > { %3351 = vpow2.f32 %v279_v46  ;;  %v3111_v53 = vmul.f32 -0.25, %v422_v47  ;;  %v3107_v54 = vmul.f32 -0.25, %v318_v48  ;;  %v563_v38 = vrot.slane %v562_v35, 4  ;;  %v718_v46 = vpop.permute.xlu1 %717 }
  0xa4   : > { %3353 = vpow2.f32 %v383_v51  ;;  %v524_v22 = vadd.f32 %v523_v14, %v522_v9  ;;  %v472_v8 = vadd.f32 %v471_v18, %v470_v11  ;;  %v626_v26 = vadd.f32 %v625_v15, %v624_v12 }
  0xa5   : > { %v331_v57 = vmul.f32 1.442695, %v3107_v54  ;;  %v435_v63 = vmul.f32 1.442695, %v3111_v53  ;;  %v270_v39 = vadd.f32 %v269_v24, %v268_v16  ;;  %v375_v20 = vrot.slane %v374_v31, 2 }
  0xa6   : > { %v525_v25 = vrot.slane %v524_v22, 1  ;;  %v473_v30 = vrot.slane %v472_v8, 1  ;;  %v627_v34 = vrot.slane %v626_v26, 2  ;;  %v424_v43 = vsel %vm423_vm0, %v413_v28, 0.0 }
  0xa7   : > { %3355 = vpow2.f32 %v331_v57  ;;  %v320_v44 = vsel %vm319_vm2, %v309_v29, 0.0  ;;  %v565_v49 = vsel %vm564_vm3, %v563_v38, %v562_v35  ;;  %v271_v50 = vrot.slane %v270_v39, 2 }
  0xa8   : > { %3357 = vpow2.f32 %v435_v63  ;;  %v526_v33 = vadd.f32 %v525_v25, %v524_v22  ;;  %v474_v37 = vadd.f32 %v473_v30, %v472_v8  ;;  %v628_v19 = vadd.f32 %v627_v34, %v626_v26 }
  0xa9   : > { %v3934_v52 = vmul.f32 %v565_v49, %v3849_v0  ;;  %v425_v54 = vrot.slane %v424_v43, 4  ;;  %v719_v56 = vrot.slane %v718_v46, 4  ;;  %v321_v57 = vrot.slane %v320_v44, 4 }
  0xaa   : > { %v3115_v40 = vmul.f32 -0.25, %v526_v33  ;;  %v3113_v42 = vmul.f32 -0.25, %v474_v37  ;;  %v629_v48 = vrot.slane %v628_v19, 1  ;;  %vm727_vm7 = vcmask 1044360  }
  0xab   : > { %v572_v59 = vsel %vm571_vm4, %v3934_v52, 0.0  ;;  %vm668_vm8 = vcmask 351232   ;;  %v376_v60 = vadd.f32 %v375_v20, %v374_v31  ;;  %v721_v1 = vsel %vm720_vm6, %v719_v56, %v718_v46 }
  0xac   : > { %v539_v45 = vmul.f32 1.442695, %v3115_v40  ;;  %v487_v47 = vmul.f32 1.442695, %v3113_v42  ;;  %v630_v55 = vadd.f32 %v629_v48, %v628_v19  ;;  %v573_v63 = vrot.slane %v572_v59, 4 }
  0xad   : > { %v3352_v13 = vpop.eup %3351  ;;  %v272_v3 = vadd.f32 %v271_v50, %v270_v39  ;;  %v3944_v4 = vmul.f32 %v721_v1, %v3849_v0  ;;  %v667_v5 = vrot.slane %v666_v2, 4  ;;  %v426_v6 = vadd.f32 %v425_v54, %v424_v43 }
  0xae   : > { %v283_v17 = vadd.f32 1.0, %v3352_v13  ;;  %v3354_v23 = vpop.eup %3353  ;;  %v3119_v61 = vmul.f32 -0.25, %v630_v55  ;;  %v574_v10 = vadd.f32 %v573_v63, %v572_v59  ;;  %vm675_vm9 = vcmask 1044352  }
  0xaf   : > { %v387_v36 = vadd.f32 1.0, %v3354_v23  ;;  %v728_v12 = vsel %vm727_vm7, %v3944_v4, 0.0  ;;  %v669_v13 = vsel %vm668_vm8, %v667_v5, %v666_v2  ;;  %v322_v14 = vadd.f32 %v321_v57, %v320_v44 }
  0xb0   : > { %3359 = vrcp.f32 %v283_v17  ;;  %v643_v9 = vmul.f32 1.442695, %v3119_v61  ;;  %v575_v15 = vrot.slane %v574_v10, 2  ;;  %v729_v16 = vrot.slane %v728_v12, 4  ;;  %v822_v17 = vpop.permute.xlu1 %821 }
  0xb1   : > { %v3356_v27 = vpop.eup %3355  ;;  %v377_v18 = vrot.slane %v376_v60, 1  ;;  %v273_v21 = vrot.slane %v272_v3, 1  ;;  %v3954_v22 = vmul.f32 %v669_v13, %v3849_v0  ;;  %v427_v23 = vrot.slane %v426_v6, 2 }
  0xb2   : > { %v335_v32 = vadd.f32 1.0, %v3356_v27  ;;  %v3358_v41 = vpop.eup %3357  ;;  %v517_v24 = vcombine.high %v3913_v58, %v3913_v58  ;;  %v576_v25 = vadd.f32 %v575_v15, %v574_v10  ;;  %v730_v26 = vadd.f32 %v729_v16, %v728_v12 }
  0xb3   : > { %v439_v51 = vadd.f32 1.0, %v3358_v41  ;;  %vm527_vm10 = vcmask 576512   ;;  %v676_v28 = vsel %vm675_vm9, %v3954_v22, 0.0  ;;  %v823_v29 = vrot.slane %v822_v17, 4 }
  0xb4   : > { %3361 = vrcp.f32 %v335_v32  ;;  %v323_v31 = vrot.slane %v322_v14, 2  ;;  %v577_v32 = vrot.slane %v576_v25, 1  ;;  %v731_v33 = vrot.slane %v730_v26, 2  ;;  %v926_v2 = vpop.permute.xlu1 %925 }
  0xb5   : > { %3363 = vrcp.f32 %v387_v36  ;;  %vm824_vm11 = vcmask 375808   ;;  %v378_v34 = vadd.f32 %v377_v18, %v376_v60  ;;  %v274_v35 = vadd.f32 %v273_v21, %v272_v3 }
  0xb6   : > { %3365 = vpow2.f32 %v539_v45  ;;  %v677_v58 = vrot.slane %v676_v28, 4  ;;  %v428_v37 = vadd.f32 %v427_v23, %v426_v6  ;;  %v528_v38 = vsel %vm527_vm10, %v517_v24, 0.0 }
  0xb7   : > { %3367 = vpow2.f32 %v487_v47  ;;  %vm475_vm12 = vcmask 396288   ;;  %vm631_vm13 = vcmask 904192   ;;  %v578_v39 = vadd.f32 %v577_v32, %v576_v25 }
  0xb8   : > { %3369 = vrcp.f32 %v439_v51  ;;  %v732_v42 = vadd.f32 %v731_v33, %v730_v26  ;;  %v825_v19 = vsel %vm824_vm11, %v823_v29, %v822_v17  ;;  %v678_v43 = vadd.f32 %v677_v58, %v676_v28 }
  0xb9   : > { %3371 = vpow2.f32 %v643_v9  ;;  %v3117_v20 = vmul.f32 -0.25, %v578_v39  ;;  %vm831_vm14 = vcmask 1044376   ;;  %vm772_vm15 = vcmask 367616  }
  0xba   : > { %v3936_v53 = vpop.eup %3359  ;;  %v3110_v44 = vmul.f32 -0.25, %v378_v34  ;;  %v3106_v45 = vmul.f32 -0.25, %v274_v35  ;;  %v324_v46 = vadd.f32 %v323_v31, %v322_v14  ;;  %v733_v47 = vrot.slane %v732_v42, 1  ;;  %v770_v14 = vpop.permute.xlu0 %769 }
  0xbb   : > { %291 = vrot.lane.b32.xlu1 %v3936_v53, %s3746_s28  ;;  %v529_v49 = vrot.slane %v528_v38, 4  ;;  %v591_v50 = vmul.f32 1.442695, %v3117_v20  ;;  %vm735_vm0 = vcmask 920576   ;;  %v679_v51 = vrot.slane %v678_v43, 2 }
  0xbc   : > { %v3966_v54 = vmul.f32 %v825_v19, %v3849_v0  ;;  %v429_v55 = vrot.slane %v428_v37, 1  ;;  %v734_v57 = vadd.f32 %v733_v47, %v732_v42  ;;  %vm779_vm2 = vcmask 1044368  }
  0xbd   : > { %v621_v59 = vcombine.high %v3925_v7, %v3925_v7  ;;  %v680_v60 = vadd.f32 %v679_v51, %v678_v43  ;;  %vm347_vm3 = vcmask 1031168   ;;  %v325_v61 = vrot.slane %v324_v46, 1 }
  0xbe   : > { %v3946_v11 = vpop.eup %3361  ;;  %v465_v63 = vcombine.high %v3918_v62, %v3918_v62  ;;  %v3123_v1 = vmul.f32 -0.25, %v734_v57  ;;  %vm934_vm4 = vcmask 1043992   ;;  %v385_v3 = vmul.f32 1.442695, %v3110_v44  ;;  %v874_v42 = vpop.permute.xlu0 %873 }
  0xbf   : > { %343 = vrot.lane.b32.xlu1 %v3946_v11, %s3723_s11  ;;  %v3956_v8 = vpop.eup %3363  ;;  %v530_v5 = vadd.f32 %v529_v49, %v528_v38  ;;  %v681_v6 = vrot.slane %v680_v60, 1  ;;  %v832_v9 = vsel %vm831_vm14, %v3966_v54, 0.0  ;;  %v281_v10 = vmul.f32 1.442695, %v3106_v45 }
  0xc0   : > { %v3366_v27 = vpop.eup %3365  ;;  %v430_v12 = vadd.f32 %v429_v55, %v428_v37  ;;  %v747_v7 = vmul.f32 1.442695, %v3123_v1  ;;  %vm839_vm6 = vcmask 936960   ;;  %v833_v13 = vrot.slane %v832_v9, 4 }
  0xc1   : > { %v3368_v30 = vpop.eup %3367  ;;  %v543_v41 = vadd.f32 1.0, %v3366_v27  ;;  %v632_v15 = vsel %vm631_vm13, %v621_v59, 0.0  ;;  %v682_v16 = vadd.f32 %v681_v6, %v680_v60  ;;  %v771_v62 = vrot.slane %v770_v14, 4 }
  0xc2   : > { %v491_v36 = vadd.f32 1.0, %v3368_v30  ;;  %v3370_v40 = vpop.eup %3369  ;;  %v927_v17 = vrot.slane %v926_v2, 4  ;;  %v476_v21 = vsel %vm475_vm12, %v465_v63, 0.0  ;;  %vm579_vm7 = vcmask 756736  }
  0xc3   : > { %395 = vrot.lane.b32.xlu1 %v3956_v8, %s3734_s5  ;;  %v3372_v48 = vpop.eup %3371  ;;  %v725_v23 = vcombine.high %v3944_v4, %v3944_v4  ;;  %v834_v24 = vadd.f32 %v833_v13, %v832_v9  ;;  %v531_v25 = vrot.slane %v530_v5, 2  ;;  %v3121_v26 = vmul.f32 -0.25, %v682_v16 }
  0xc4   : > { %3373 = vrcp.f32 %v491_v36  ;;  %v647_v56 = vadd.f32 1.0, %v3372_v48  ;;  %v773_v27 = vsel %vm772_vm15, %v771_v62, %v770_v14  ;;  %v928_v28 = vsel %vm347_vm3, %v926_v2, %v927_v17 }
  0xc5   : > { %3375 = vrcp.f32 %v543_v41  ;;  %vm876_vm8 = vcmask 850944   ;;  %v3112_v29 = vmul.f32 -0.25, %v430_v12  ;;  %v633_v30 = vrot.slane %v632_v15, 4 }
  0xc6   : > { %3377 = vpow2.f32 %v591_v50  ;;  %v835_v31 = vrot.slane %v834_v24, 2  ;;  %v3985_v32 = vmul.f32 %v773_v27, %v3849_v0  ;;  %v326_v4 = vadd.f32 %v325_v61, %v324_v46 }
  0xc7   : > { %447 = vrot.lane.b32.xlu1 %v3370_v40, %s3747_s30  ;;  %3379 = vrcp.f32 %v647_v56  ;;  %v695_v33 = vmul.f32 1.442695, %v3121_v26  ;;  %v3988_v34 = vmul.f32 %v928_v28, %v3849_v0  ;;  %v477_v36 = vrot.slane %v476_v21, 4 }
  0xc8   : > { %3381 = vpow2.f32 %v747_v7  ;;  %v736_v58 = vsel %vm735_vm0, %v725_v23, 0.0  ;;  %v836_v37 = vadd.f32 %v835_v31, %v834_v24  ;;  %v532_v39 = vadd.f32 %v531_v25, %v530_v5 }
  0xc9   : > { %3383 = vpow2.f32 %v385_v3  ;;  %v829_v40 = vcombine.high %v3966_v54, %v3966_v54  ;;  %v780_v41 = vsel %vm779_vm2, %v3985_v32, 0.0  ;;  %v437_v20 = vmul.f32 1.442695, %v3112_v29 }
  0xca   : > { %3385 = vpow2.f32 %v281_v10  ;;  %v634_v43 = vadd.f32 %v633_v30, %v632_v15  ;;  %v837_v45 = vrot.slane %v836_v37, 1  ;;  %vm883_vm9 = vcmask 1043816  }
  0xcb   : > { %3387 = vpow2.f32 %v695_v33  ;;  %v569_v46 = vcombine.high %v3934_v52, %v3934_v52  ;;  %v737_v47 = vrot.slane %v736_v58, 4  ;;  %vm683_vm10 = vcmask 912384  }
  0xcc   : > { %v781_v48 = vrot.slane %v780_v41, 4  ;;  %v935_v49 = vsel %vm934_vm4, %v3988_v34, 0.0  ;;  %v478_v50 = vadd.f32 %v477_v36, %v476_v21  ;;  %v838_v51 = vadd.f32 %v837_v45, %v836_v37 }
  0xcd   : > { %v875_v54 = vrot.slane %v874_v42, 4  ;;  %v533_v55 = vrot.slane %v532_v39, 1  ;;  %v840_v56 = vsel %vm839_vm6, %v829_v40, 0.0  ;;  %v936_v59 = vrot.slane %v935_v49, 4 }
  0xce   : > { %v3975_v18 = vpop.eup %3373  ;;  %v782_v57 = vadd.f32 %v781_v48, %v780_v41  ;;  %v3108_v52 = vmul.f32 -0.25, %v326_v4  ;;  %v635_v61 = vrot.slane %v634_v43, 2  ;;  %v3127_v63 = vmul.f32 -0.25, %v838_v51 }
  0xcf   : > { %499 = vrot.lane.b32.xlu1 %v3975_v18, %s3748_s6  ;;  %v3990_v35 = vpop.eup %3375  ;;  %v580_v1 = vsel %vm579_vm7, %v569_v46, 0.0  ;;  %v738_v2 = vadd.f32 %v737_v47, %v736_v58  ;;  %v841_v6 = vrot.slane %v840_v56, 4  ;;  %vm787_vm11 = vcmask 928768  }
  0xd0   : > { %v3378_v38 = vpop.eup %3377  ;;  %v783_v5 = vrot.slane %v782_v57, 2  ;;  %v851_v9 = vmul.f32 1.442695, %v3127_v63  ;;  %v937_v10 = vadd.f32 %v936_v59, %v935_v49  ;;  %v877_v12 = vsel %vm876_vm8, %v874_v42, %v875_v54 }
  0xd1   : > { %v3380_v19 = vpop.eup %3379  ;;  %v595_v44 = vadd.f32 1.0, %v3378_v38  ;;  %v534_v13 = vadd.f32 %v533_v55, %v532_v39  ;;  %v479_v14 = vrot.slane %v478_v50, 2  ;;  %v333_v62 = vmul.f32 1.442695, %v3108_v52 }
  0xd2   : > { %655 = vrot.lane.b32.xlu0 %v3380_v19, %s5540_s10  ;;  %v3382_v60 = vpop.eup %3381  ;;  %v784_v15 = vadd.f32 %v783_v5, %v782_v57  ;;  %v673_v17 = vcombine.high %v3954_v22, %v3954_v22  ;;  %v938_v21 = vrot.slane %v937_v10, 2  ;;  %v636_v24 = vadd.f32 %v635_v61, %v634_v43 }
  0xd3   : > { %551 = vrot.lane.b32.xlu1 %v3990_v35, %s3749_s7  ;;  %3389 = vrcp.f32 %v595_v44  ;;  %v751_v3 = vadd.f32 1.0, %v3382_v60  ;;  %v3384_v7 = vpop.eup %3383  ;;  %v581_v25 = vrot.slane %v580_v1, 4  ;;  %v4010_v27 = vmul.f32 %v877_v12, %v3849_v0 }
  0xd4   : > { %3391 = vpow2.f32 %v437_v20  ;;  %v3386_v16 = vpop.eup %3385  ;;  %v785_v26 = vrot.slane %v784_v15, 1  ;;  %v739_v28 = vrot.slane %v738_v2, 2  ;;  %v842_v30 = vadd.f32 %v841_v6, %v840_v56  ;;  %v4019_v20 = vpop.permute.xlu1 %207 }
  0xd5   : > { %3393 = vrcp.f32 %v751_v3  ;;  %v3388_v23 = vpop.eup %3387  ;;  %v939_v31 = vadd.f32 %v938_v21, %v937_v10  ;;  %v3116_v4 = vmul.f32 -0.25, %v534_v13  ;;  %v480_v33 = vadd.f32 %v479_v14, %v478_v50 }
  0xd6   : > { %3395 = vpow2.f32 %v851_v9  ;;  %v699_v29 = vadd.f32 1.0, %v3388_v23  ;;  %v786_v36 = vadd.f32 %v785_v26, %v784_v15  ;;  %v884_v58 = vsel %vm883_vm9, %v4010_v27, 0.0  ;;  %v976_v23 = vpop.permute.xlu0 %975 }
  0xd7   : > { %v684_v37 = vsel %vm683_vm10, %v673_v17, 0.0  ;;  %v940_v38 = vrot.slane %v939_v31, 1  ;;  %v885_v39 = vrot.slane %v884_v58, 4  ;;  %v637_v40 = vrot.slane %v636_v24, 1 }
  0xd8   : > { %3397 = vrcp.f32 %v699_v29  ;;  %v582_v41 = vadd.f32 %v581_v25, %v580_v1  ;;  %v777_v42 = vcombine.high %v3985_v32, %v3985_v32  ;;  %v3125_v19 = vmul.f32 -0.25, %v786_v36  ;;  %v1151_v6 = vpop.permute.xlu1 %1150 }
  0xd9   : > { %v740_v44 = vadd.f32 %v739_v28, %v738_v2  ;;  %v843_v45 = vrot.slane %v842_v30, 2  ;;  %vm942_vm12 = vcmask 543744   ;;  %v886_v46 = vadd.f32 %v885_v39, %v884_v58 }
  0xda   : > { %v685_v47 = vrot.slane %v684_v37, 4  ;;  %v799_v48 = vmul.f32 1.442695, %v3125_v19  ;;  %v941_v49 = vadd.f32 %v940_v38, %v939_v31  ;;  %vm1153_vm13 = vcmask 891904  }
  0xdb   : > { %3399 = vpow2.f32 %v333_v62  ;;  %v541_v50 = vmul.f32 1.442695, %v3116_v4  ;;  %v481_v51 = vrot.slane %v480_v33, 1  ;;  %v887_v32 = vrot.slane %v886_v46, 2 }
  0xdc   : > { %vm978_vm14 = vcmask 162816   ;;  %v638_v55 = vadd.f32 %v637_v40, %v636_v24  ;;  %v583_v56 = vrot.slane %v582_v41, 2  ;;  %v788_v57 = vsel %vm787_vm11, %v777_v42, 0.0 }
  0xdd   : > { %v4014_v22 = vpop.eup %3389  ;;  %3401 = vpow2.f32 %v799_v48  ;;  %vm891_vm15 = vcmask 363520   ;;  %v388_v60 = vadd.f32 1.0, %v3384_v7  ;;  %v741_v52 = vrot.slane %v740_v44, 1 }
  0xde   : > { %603 = vrot.lane.b32.xlu1 %v4014_v22, %s3751_s20  ;;  %v3392_v43 = vpop.eup %3391  ;;  %v844_v61 = vadd.f32 %v843_v45, %v842_v30  ;;  %v888_v63 = vadd.f32 %v887_v32, %v886_v46  ;;  %v686_v1 = vadd.f32 %v685_v47, %v684_v37  ;;  %v932_v3 = vcombine.high %v3988_v34, %v3988_v34  ;;  %v1255_v46 = vpop.permute.xlu1 %1254 }
  0xdf   : > { %v4023_v54 = vpop.eup %3393  ;;  %v3131_v5 = vmul.f32 -0.25, %v941_v49  ;;  %v284_v9 = vadd.f32 1.0, %v3386_v16  ;;  %3403 = vpow2.f32 %v541_v50  ;;  %v789_v10 = vrot.slane %v788_v57, 4 }
  0xe0   : > { %v3396_v59 = vpop.eup %3395  ;;  %759 = vrot.lane.b32.xlu0 %v4023_v54, %s3752_s21  ;;  %v889_v12 = vrot.slane %v888_v63, 1  ;;  %v482_v13 = vadd.f32 %v481_v51, %v480_v33  ;;  %v3120_v7 = vmul.f32 -0.25, %v638_v55  ;;  %v584_v14 = vadd.f32 %v583_v56, %v582_v41 }
  0xe1   : > { %v855_v2 = vadd.f32 1.0, %v3396_v59  ;;  %vm985_vm0 = vcmask 1044168   ;;  %v845_v62 = vrot.slane %v844_v61, 1  ;;  %vm1160_vm2 = vcmask 1043856  }
  0xe2   : > { %v4030_v15 = vpop.eup %3397  ;;  %v890_v17 = vadd.f32 %v889_v12, %v888_v63  ;;  %v1152_v21 = vrot.slane %v1151_v6, 4  ;;  %v742_v34 = vadd.f32 %v741_v52, %v740_v44  ;;  %v687_v24 = vrot.slane %v686_v1, 2 }
  0xe3   : > { %3405 = vrcp.f32 %v855_v2  ;;  %v943_v16 = vsel %vm942_vm12, %v932_v3, 0.0  ;;  %v954_v25 = vmul.f32 1.442695, %v3131_v5  ;;  %707 = vrot.lane.b32.xlu1 %v4030_v15, %s5538_s22  ;;  %v440_v26 = vadd.f32 1.0, %v3392_v43 }
  0xe4   : > { %3407 = vrcp.f32 %v388_v60  ;;  %v790_v28 = vadd.f32 %v789_v10, %v788_v57  ;;  %v881_v29 = vcombine.high %v4010_v27, %v4010_v27  ;;  %v3129_v30 = vmul.f32 -0.25, %v890_v17  ;;  %v1385_v10 = vpop.permute.xlu1 %1384 }
  0xe5   : > { %v3114_v31 = vmul.f32 -0.25, %v482_v13  ;;  %v645_v4 = vmul.f32 1.442695, %v3120_v7  ;;  %v585_v33 = vrot.slane %v584_v14, 1  ;;  %v977_v36 = vrot.slane %v976_v23, 4  ;;  %v3400_v58 = vpop.eup %3399 }
  0xe6   : > { %v846_v37 = vadd.f32 %v845_v62, %v844_v61  ;;  %v944_v38 = vrot.slane %v943_v16, 4  ;;  %v903_v39 = vmul.f32 1.442695, %v3129_v30  ;;  %v1154_v40 = vsel %vm1153_vm13, %v1151_v6, %v1152_v21 }
  0xe7   : > { %v3402_v41 = vpop.eup %3401  ;;  %v3124_v42 = vmul.f32 -0.25, %v742_v34  ;;  %v688_v19 = vadd.f32 %v687_v24, %v686_v1  ;;  %3409 = vpow2.f32 %v954_v25  ;;  %v979_v43 = vsel %vm978_vm14, %v977_v36, %v976_v23 }
  0xe8   : > { %v791_v44 = vrot.slane %v790_v28, 2  ;;  %v803_v45 = vadd.f32 1.0, %v3402_v41  ;;  %v892_v27 = vsel %vm891_vm15, %v881_v29, 0.0  ;;  %3411 = vpow2.f32 %v903_v39 }
  0xe9   : > { %v336_v47 = vadd.f32 1.0, %v3400_v58  ;;  %3413 = vpow2.f32 %v645_v4  ;;  %v4041_v48 = vmul.f32 %v1154_v40, %v3849_v0  ;;  %v4044_v49 = vmul.f32 %v979_v43, %v3849_v0  ;;  %v3404_v50 = vpop.eup %3403  ;;  %v4066_v43 = vld [vmem:[%s3846_s25] sm:$0xff] }
  0xea   : > { %v586_v51 = vadd.f32 %v585_v33, %v584_v14  ;;  %v3128_v32 = vmul.f32 -0.25, %v846_v37  ;;  %3415 = vrcp.f32 %v803_v45  ;;  %v945_v55 = vadd.f32 %v944_v38, %v943_v16 }
  0xeb   : > { %3417 = vrcp.f32 %v284_v9  ;;  %v749_v57 = vmul.f32 1.442695, %v3124_v42  ;;  %v893_v59 = vrot.slane %v892_v27, 4  ;;  %vm1257_vm4 = vcmask 203776  }
  0xec   : > { %v489_v52 = vmul.f32 1.442695, %v3114_v31  ;;  %v689_v61 = vrot.slane %v688_v19, 1  ;;  %v792_v63 = vadd.f32 %v791_v44, %v790_v28  ;;  %v986_v1 = vsel %vm985_vm0, %v4044_v49, 0.0 }
  0xed   : > { %v3406_v56 = vpop.eup %3405  ;;  %3419 = vrcp.f32 %v440_v26  ;;  %v544_v0 = vadd.f32 1.0, %v3404_v50  ;;  %vm1168_vm6 = vcmask 404480   ;;  %v1161_v2 = vsel %vm1160_vm2, %v4041_v48, 0.0 }
  0xee   : > { %v4046_v60 = vpop.eup %3407  ;;  %863 = vrot.lane.b32.xlu0 %v3406_v56, %s3754_s23  ;;  %v987_v3 = vrot.slane %v986_v1, 4  ;;  %3421 = vrcp.f32 %v336_v47  ;;  %v3118_v5 = vmul.f32 -0.25, %v586_v51  ;;  %v853_v6 = vmul.f32 1.442695, %v3128_v32 }
  0xef   : > { %v946_v9 = vrot.slane %v945_v55, 2  ;;  %3423 = vpow2.f32 %v749_v57  ;;  %v894_v12 = vadd.f32 %v893_v59, %v892_v27  ;;  %vm1264_vm7 = vcmask 1044208  }
  0xf0   : > { %v988_v13 = vadd.f32 %v987_v3, %v986_v1  ;;  %v1256_v7 = vrot.slane %v1255_v46, 4  ;;  %3425 = vpow2.f32 %v489_v52  ;;  %v690_v14 = vadd.f32 %v689_v61, %v688_v19 }
  0xf1   : > { %v793_v62 = vrot.slane %v792_v63, 1  ;;  %v1162_v17 = vrot.slane %v1161_v2, 4  ;;  %v3410_v21 = vpop.eup %3409  ;;  %3427 = vrcp.f32 %v544_v0  ;;  %vm1387_vm9 = vcmask 384000  }
  0xf2   : > { %v989_v23 = vrot.slane %v988_v13, 2  ;;  %v1386_v34 = vrot.slane %v1385_v10, 4  ;;  %v3412_v24 = vpop.eup %3411  ;;  %v593_v16 = vmul.f32 1.442695, %v3118_v5  ;;  %3429 = vpow2.f32 %v853_v6  ;;  %v1099_v6 = vpop.permute.xlu0 %1098 }
  0xf3   : > { %v947_v25 = vadd.f32 %v946_v9, %v945_v55  ;;  %vm1394_vm10 = vcmask 1044384   ;;  %v3414_v26 = vpop.eup %3413  ;;  %v895_v28 = vrot.slane %v894_v12, 2  ;;  %v907_v29 = vadd.f32 1.0, %v3412_v24 }
  0xf4   : > { %v990_v30 = vadd.f32 %v989_v23, %v988_v13  ;;  %v1258_v31 = vsel %vm1257_vm4, %v1256_v7, %v1255_v46  ;;  %v4054_v4 = vpop.eup %3415  ;;  %v3122_v33 = vmul.f32 -0.25, %v690_v14  ;;  %v794_v36 = vadd.f32 %v793_v62, %v792_v63 }
  0xf5   : > { %v1158_v58 = vcombine.high %v4041_v48, %v4041_v48  ;;  %v1163_v37 = vadd.f32 %v1162_v17, %v1161_v2  ;;  %v4058_v38 = vpop.eup %3417  ;;  %v958_v39 = vadd.f32 1.0, %v3410_v21  ;;  %3431 = vrcp.f32 %v907_v29  ;;  %811 = vrot.lane.b32.xlu1 %v4054_v4, %s3755_s24 }
  0xf6   : > { %v991_v40 = vrot.slane %v990_v30, 1  ;;  %v1388_v41 = vsel %vm1387_vm9, %v1386_v34, %v1385_v10  ;;  %3433 = vpow2.f32 %v593_v16  ;;  %v948_v42 = vrot.slane %v947_v25, 1 }
  0xf7   : > { %v983_v19 = vcombine.high %v4044_v49, %v4044_v49  ;;  %v4069_v44 = vmul.f32 %v4066_v43, %v1258_v31  ;;  %v4071_v45 = vpop.eup %3419  ;;  %v648_v27 = vadd.f32 1.0, %v3414_v26  ;;  %v896_v46 = vadd.f32 %v895_v28, %v894_v12  ;;  %v1203_v26 = vpop.permute.xlu0 %1202 }
  0xf8   : > { %vm993_vm11 = vcmask 723968   ;;  %v992_v47 = vadd.f32 %v991_v40, %v990_v30  ;;  %v4073_v48 = vpop.eup %3421  ;;  %v697_v50 = vmul.f32 1.442695, %v3122_v33  ;;  %v1164_v51 = vrot.slane %v1163_v37, 2 }
  0xf9   : > { %v1169_v32 = vsel %vm1168_vm6, %v1158_v58, 0.0  ;;  %vm1272_vm12 = vcmask 764928   ;;  %v4077_v49 = vmul.f32 %v4066_v43, %v1388_v41  ;;  %v3424_v55 = vpop.eup %3423  ;;  %v3126_v56 = vmul.f32 -0.25, %v794_v36  ;;  %1357 = vrot.lane.b32.xlu1 %v4030_v15, %s3752_s21 }
  0xfa   : > { %3435 = vrcp.f32 %v958_v39  ;;  %v3133_v57 = vmul.f32 -0.25, %v992_v47  ;;  %vm1101_vm13 = vcmask 711680   ;;  %v4081_v59 = vpop.eup %3425  ;;  %v949_v52 = vadd.f32 %v948_v42, %v947_v25 }
  0xfb   : > { %v994_v61 = vsel %vm993_vm11, %v983_v19, 0.0  ;;  %v1265_v63 = vsel %vm1264_vm7, %v4069_v44, 0.0  ;;  %v1395_v1 = vsel %vm1394_vm10, %v4077_v49, 0.0  ;;  %v4088_v0 = vpop.eup %3427  ;;  %3437 = vrcp.f32 %v648_v27 }
  0xfc   : > { %v897_v2 = vrot.slane %v896_v46, 1  ;;  %v1170_v3 = vrot.slane %v1169_v32, 4  ;;  %v1005_v5 = vmul.f32 1.442695, %v3133_v57  ;;  %v3430_v9 = vpop.eup %3429  ;;  %v752_v15 = vadd.f32 1.0, %v3424_v55 }
  0xfd   : > { %3439 = vpow2.f32 %v697_v50  ;;  %v1165_v10 = vadd.f32 %v1164_v51, %v1163_v37  ;;  %v1396_v12 = vrot.slane %v1395_v1, 4  ;;  %v995_v13 = vrot.slane %v994_v61, 4  ;;  %1366 = vrot.lane.b32.xlu1 %v4023_v54, %s3755_s24 }
  0xfe   : > { %3441 = vpow2.f32 %v1005_v5  ;;  %v1266_v7 = vrot.slane %v1265_v63, 4  ;;  %vm1108_vm14 = vcmask 1043680   ;;  %v801_v14 = vmul.f32 1.442695, %v3126_v56 }
  0xff   : > { %v3132_v62 = vmul.f32 -0.25, %v949_v52  ;;  %v1397_v17 = vadd.f32 %v1396_v12, %v1395_v1  ;;  %v1100_v21 = vrot.slane %v1099_v6, 4  ;;  %v4092_v23 = vpop.eup %3431  ;;  %v856_v34 = vadd.f32 1.0, %v3430_v9 }
 0x100   : > { %v898_v24 = vadd.f32 %v897_v2, %v896_v46  ;;  %v1171_v16 = vadd.f32 %v1170_v3, %v1169_v32  ;;  %v1262_v25 = vcombine.high %v4069_v44, %v4069_v44  ;;  %v4096_v28 = vpop.eup %3433  ;;  %3443 = vrcp.f32 %v752_v15  ;;  %915 = vrot.lane.b32.xlu0 %v4092_v23, %s3756_s26 }
 0x101   : > { %v1166_v29 = vrot.slane %v1165_v10, 1  ;;  %v1398_v30 = vrot.slane %v1397_v17, 2  ;;  %v1102_v54 = vsel %vm1101_vm13, %v1099_v6, %v1100_v21  ;;  %v996_v31 = vadd.f32 %v995_v13, %v994_v61  ;;  %1375 = vrot.lane.b32.xlu1 %v4054_v4, %s3754_s23  ;;  %v1307_v21 = vpop.permute.xlu0 %1306 }
 0x102   : > { %v1267_v33 = vadd.f32 %v1266_v7, %v1265_v63  ;;  %v1104_v36 = vmul.f32 %v4066_v43, %v1102_v54  ;;  %vm1205_vm15 = vcmask 23552   ;;  %3445 = vpow2.f32 %v801_v14 }
 0x103   : > { %v956_v58 = vmul.f32 1.442695, %v3132_v62  ;;  %v1399_v37 = vadd.f32 %v1398_v30, %v1397_v17  ;;  %v1204_v39 = vrot.slane %v1203_v26, 4  ;;  %3447 = vrcp.f32 %v856_v34 }
 0x104   : > { %v4104_v40 = vpop.eup %3435  ;;  %v3130_v41 = vmul.f32 -0.25, %v898_v24  ;;  %v1172_v42 = vrot.slane %v1171_v16, 2  ;;  %v1273_v19 = vsel %vm1272_vm12, %v1262_v25, 0.0  ;;  %v1106_v27 = vcombine.high %v1104_v36, %v1104_v36 }
 0x105   : > { %v1400_v44 = vrot.slane %v1399_v37, 1  ;;  %v1109_v46 = vsel %vm1108_vm14, %v1104_v36, 0.0  ;;  %v1206_v47 = vsel %vm1205_vm15, %v1204_v39, %v1203_v26  ;;  %966 = vrot.lane.b32.xlu0 %v4104_v40, %s3714_s29  ;;  %v4110_v4 = vpop.eup %3437  ;;  %v1167_v50 = vadd.f32 %v1166_v29, %v1165_v10 }
 0x106   : > { %v997_v51 = vrot.slane %v996_v31, 2  ;;  %v1268_v32 = vrot.slane %v1267_v33, 2  ;;  %vm1116_vm0 = vcmask 224256   ;;  %3449 = vpow2.f32 %v956_v58 }
 0x107   : > { %v4112_v55 = vpop.eup %3439  ;;  %v1401_v56 = vadd.f32 %v1400_v44, %v1399_v37  ;;  %v1110_v57 = vrot.slane %v1109_v46, 4  ;;  %vm1212_vm2 = vcmask 1044032   ;;  %v905_v61 = vmul.f32 1.442695, %v3130_v41 }
 0x108   : > { %v3442_v52 = vpop.eup %3441  ;;  %v1173_v63 = vadd.f32 %v1172_v42, %v1171_v16  ;;  %v1274_v1 = vrot.slane %v1273_v19, 4  ;;  %vm1402_vm4 = vcmask 945152   ;;  %v1208_v2 = vmul.f32 %v4066_v43, %v1206_v47 }
 0x109   : > { %v1009_v3 = vadd.f32 1.0, %v3442_v52  ;;  %v3147_v5 = vmul.f32 -0.25, %v1401_v56  ;;  %v1111_v6 = vadd.f32 %v1110_v57, %v1109_v46  ;;  %v1117_v9 = vsel %vm1116_vm0, %v1106_v27, 0.0 }
 0x10a   : > { %v3139_v15 = vmul.f32 -0.25, %v1167_v50  ;;  %v998_v10 = vadd.f32 %v997_v51, %v996_v31  ;;  %v1269_v12 = vadd.f32 %v1268_v32, %v1267_v33  ;;  %v1213_v13 = vsel %vm1212_vm2, %v1208_v2, 0.0  ;;  %v4115_v7 = vpop.eup %3443  ;;  %v1437_v51 = vpop.permute.xlu0 %1436 }
 0x10b   : > { %3451 = vrcp.f32 %v1009_v3  ;;  %v1414_v14 = vmul.f32 1.442695, %v3147_v5  ;;  %v1112_v62 = vrot.slane %v1111_v6, 2  ;;  %v1214_v17 = vrot.slane %v1213_v13, 4 }
 0x10c   : > { %3453 = vpow2.f32 %v905_v61  ;;  %v1174_v34 = vrot.slane %v1173_v63, 1  ;;  %v1275_v24 = vadd.f32 %v1274_v1, %v1273_v19  ;;  %v1118_v16 = vrot.slane %v1117_v9, 4  ;;  %v4117_v25 = vpop.eup %3445 }
 0x10d   : > { %3455 = vpow2.f32 %v1414_v14  ;;  %v1113_v26 = vadd.f32 %v1112_v62, %v1111_v6  ;;  %v1215_v29 = vadd.f32 %v1214_v17, %v1213_v13  ;;  %vm1309_vm6 = vcmask 334848   ;;  %v4119_v30 = vpop.eup %3447 }
 0x10e   : > { %v1180_v54 = vmul.f32 1.442695, %v3139_v15  ;;  %v999_v31 = vrot.slane %v998_v10, 1  ;;  %v1270_v33 = vrot.slane %v1269_v12, 1  ;;  %v1308_v36 = vrot.slane %v1307_v21, 4 }
 0x10f   : > { %v1392_v58 = vcombine.high %v4077_v49, %v4077_v49  ;;  %v1114_v37 = vrot.slane %v1113_v26, 1  ;;  %v1210_v39 = vcombine.high %v1208_v2, %v1208_v2  ;;  %v1216_v41 = vrot.slane %v1215_v29, 2 }
 0x110   : > { %v1276_v42 = vrot.slane %v1275_v24, 2  ;;  %v1119_v19 = vadd.f32 %v1118_v16, %v1117_v9  ;;  %vm1220_vm7 = vcmask 584704   ;;  %v1310_v44 = vsel %vm1309_vm6, %v1308_v36, %v1307_v21  ;;  %v4123_v27 = vpop.eup %3449 }
 0x111   : > { %v1175_v46 = vadd.f32 %v1174_v34, %v1173_v63  ;;  %v1115_v47 = vadd.f32 %v1114_v37, %v1113_v26  ;;  %v1217_v50 = vadd.f32 %v1216_v41, %v1215_v29  ;;  %vm1316_vm9 = vcmask 1044336  }
 0x112   : > { %3457 = vpow2.f32 %v1180_v54  ;;  %v1000_v32 = vadd.f32 %v999_v31, %v998_v10  ;;  %v1271_v56 = vadd.f32 %v1270_v33, %v1269_v12  ;;  %v1312_v57 = vmul.f32 %v4066_v43, %v1310_v44 }
 0x113   : > { %v1403_v49 = vsel %vm1402_vm4, %v1392_v58, 0.0  ;;  %v3137_v52 = vmul.f32 -0.25, %v1115_v47  ;;  %v1218_v61 = vrot.slane %v1217_v50, 1  ;;  %v1221_v1 = vsel %vm1220_vm7, %v1210_v39, 0.0 }
 0x114   : > { %v1277_v2 = vadd.f32 %v1276_v42, %v1275_v24  ;;  %v1120_v3 = vrot.slane %v1119_v19, 2  ;;  %v1317_v5 = vsel %vm1316_vm9, %v1312_v57, 0.0  ;;  %v1438_v6 = vrot.slane %v1437_v51, 4 }
 0x115   : > { %v4127_v9 = vpop.eup %3451  ;;  %v1128_v63 = vmul.f32 1.442695, %v3137_v52  ;;  %v1219_v15 = vadd.f32 %v1218_v61, %v1217_v50  ;;  %v1318_v13 = vrot.slane %v1317_v5, 4  ;;  %vm1439_vm10 = vcmask 842752   ;;  %v1488_v50 = vpop.permute.xlu1 %1487 }
 0x116   : > { %v3454_v14 = vpop.eup %3453  ;;  %v3134_v10 = vmul.f32 -0.25, %v1000_v32  ;;  %v3143_v12 = vmul.f32 -0.25, %v1271_v56  ;;  %v1404_v62 = vrot.slane %v1403_v49, 4  ;;  %v1222_v17 = vrot.slane %v1221_v1, 4  ;;  %1017 = vrot.lane.b32.xlu0 %v4127_v9, %s3738_s9 }
 0x117   : > { %v3456_v21 = vpop.eup %3455  ;;  %3459 = vpow2.f32 %v1128_v63  ;;  %v3141_v34 = vmul.f32 -0.25, %v1219_v15  ;;  %v1314_v24 = vcombine.high %v1312_v57, %v1312_v57  ;;  %v1319_v16 = vadd.f32 %v1318_v13, %v1317_v5  ;;  %v1538_v15 = vpop.permute.xlu0 %1537 }
 0x118   : > { %v1278_v26 = vrot.slane %v1277_v2, 1  ;;  %v1418_v29 = vadd.f32 1.0, %v3456_v21  ;;  %vm1324_vm11 = vcmask 896000   ;;  %v1440_v54 = vsel %vm1439_vm10, %v1437_v51, %v1438_v6 }
 0x119   : > { %v908_v31 = vadd.f32 1.0, %v3454_v14  ;;  %v1121_v33 = vadd.f32 %v1120_v3, %v1119_v19  ;;  %v1232_v36 = vmul.f32 1.442695, %v3141_v34  ;;  %v1320_v58 = vrot.slane %v1319_v16, 2 }
 0x11a   : > { %v1284_v37 = vmul.f32 1.442695, %v3143_v12  ;;  %v1405_v39 = vadd.f32 %v1404_v62, %v1403_v49  ;;  %3461 = vrcp.f32 %v1418_v29  ;;  %v1223_v41 = vadd.f32 %v1222_v17, %v1221_v1  ;;  %1071 = vrot.lane.b32.xlu0 %v3936_v53, %s3723_s11 }
 0x11b   : > { %3463 = vpow2.f32 %v1232_v36  ;;  %v1321_v42 = vadd.f32 %v1320_v58, %v1319_v16  ;;  %v1325_v44 = vsel %vm1324_vm11, %v1314_v24, 0.0  ;;  %v4135_v47 = vmul.f32 %v4066_v43, %v1440_v54 }
 0x11c   : > { %v3458_v32 = vpop.eup %3457  ;;  %v3140_v51 = vmul.f32 -0.25, %v1175_v46  ;;  %v1007_v56 = vmul.f32 1.442695, %v3134_v10  ;;  %v1279_v19 = vadd.f32 %v1278_v26, %v1277_v2  ;;  %vm1446_vm12 = vcmask 1043808  }
 0x11d   : > { %3465 = vrcp.f32 %v908_v31  ;;  %v1122_v57 = vrot.slane %v1121_v33, 1  ;;  %v1322_v49 = vrot.slane %v1321_v42, 1  ;;  %vm399_vm13 = vcmask 1022976  }
 0x11e   : > { %v4138_v52 = vadd.f32 1.0, %v4081_v59  ;;  %3467 = vpow2.f32 %v1284_v37  ;;  %v1326_v53 = vrot.slane %v1325_v44, 4  ;;  %1080 = vrot.lane.b32.xlu0 %v3946_v11, %s3734_s5  ;;  %v1489_v61 = vrot.slane %v1488_v50, 4 }
 0x11f   : > { %v1406_v1 = vrot.slane %v1405_v39, 2  ;;  %v1224_v3 = vrot.slane %v1223_v41, 2  ;;  %v1323_v5 = vadd.f32 %v1322_v49, %v1321_v42  ;;  %v1447_v46 = vsel %vm1446_vm12, %v4135_v47, 0.0 }
 0x120   : > { %v596_v2 = vadd.f32 1.0, %v4096_v28  ;;  %3469 = vpow2.f32 %v1007_v56  ;;  %v3144_v6 = vmul.f32 -0.25, %v1279_v19  ;;  %v1490_v63 = vsel %vm399_vm13, %v1488_v50, %v1489_v61 }
 0x121   : > { %v3460_v59 = vpop.eup %3459  ;;  %v1182_v13 = vmul.f32 1.442695, %v3140_v51  ;;  %v1123_v14 = vadd.f32 %v1122_v57, %v1121_v33  ;;  %v3145_v10 = vmul.f32 -0.25, %v1323_v5  ;;  %v4146_v12 = vmul.f32 %v4066_v43, %v1490_v63  ;;  %v1633_v63 = vpop.permute.xlu0 %1632 }
 0x122   : > { %v1132_v11 = vadd.f32 1.0, %v3460_v59  ;;  %v1327_v62 = vadd.f32 %v1326_v53, %v1325_v44  ;;  %1089 = vrot.lane.b32.xlu0 %v3956_v8, %s3747_s30  ;;  %v1448_v17 = vrot.slane %v1447_v46, 4  ;;  %vm1496_vm14 = vcmask 1043984  }
 0x123   : > { %v1407_v28 = vadd.f32 %v1406_v1, %v1405_v39  ;;  %v1225_v21 = vadd.f32 %v1224_v3, %v1223_v41  ;;  %v1336_v34 = vmul.f32 1.442695, %v3145_v10  ;;  %v1539_v24 = vrot.slane %v1538_v15, 4 }
 0x124   : > { %v3462_v16 = vpop.eup %3461  ;;  %v1184_v26 = vadd.f32 1.0, %v3458_v32  ;;  %v1286_v29 = vmul.f32 1.442695, %v3144_v6  ;;  %3471 = vrcp.f32 %v1132_v11  ;;  %vm1540_vm15 = vcmask 154624  }
 0x125   : > { %v3464_v54 = vpop.eup %3463  ;;  %v3138_v31 = vmul.f32 -0.25, %v1123_v14  ;;  %1426 = vrot.lane.b32.xlu1 %v3462_v16, %s5518_s8  ;;  %vm1454_vm0 = vcmask 355328   ;;  %v1444_v8 = vcombine.high %v4135_v47, %v4135_v47  ;;  %v1497_v33 = vsel %vm1496_vm14, %v4146_v12, 0.0  ;;  %s3761_s8 = smov 56  }
 0x126   : > { %v1236_v36 = vadd.f32 1.0, %v3464_v54  ;;  %v1328_v58 = vrot.slane %v1327_v62, 2  ;;  %3473 = vpow2.f32 %v1336_v34  ;;  %v1449_v37 = vadd.f32 %v1448_v17, %v1447_v46 }
 0x127   : > { %v4155_v39 = vpop.eup %3465  ;;  %3475 = vpow2.f32 %v1182_v13  ;;  %v1226_v41 = vrot.slane %v1225_v21, 1  ;;  %vm1547_vm2 = vcmask 1044160   ;;  %v1541_v42 = vsel %vm1540_vm15, %v1539_v24, %v1538_v15 }
 0x128   : > { %v3468_v44 = vpop.eup %3467  ;;  %v959_v50 = vadd.f32 1.0, %v4123_v27  ;;  %3477 = vrcp.f32 %v1184_v26  ;;  %v1498_v32 = vrot.slane %v1497_v33, 4  ;;  %v4160_v47 = vmul.f32 %v4066_v43, %v1541_v42 }
 0x129   : > { %3479 = vpow2.f32 %v1286_v29  ;;  %v1408_v51 = vrot.slane %v1407_v28, 1  ;;  %v1130_v56 = vmul.f32 1.442695, %v3138_v31  ;;  %657 = vrot.lane.b32.xlu1 %v4110_v4, %s5540_s10  ;;  %v1455_v19 = vsel %vm1454_vm0, %v1444_v8, 0.0 }
 0x12a   : > { %v3470_v57 = vpop.eup %3469  ;;  %3481 = vrcp.f32 %v1236_v36  ;;  %v1329_v49 = vadd.f32 %v1328_v58, %v1327_v62  ;;  %v1450_v53 = vrot.slane %v1449_v37, 2  ;;  %v1548_v27 = vsel %vm1547_vm2, %v4160_v47, 0.0  ;;  %v4185_v36 = vpop.permute.xlu1 %1029 }
 0x12b   : > { %3483 = vrcp.f32 %v4138_v52  ;;  %v1288_v61 = vadd.f32 1.0, %v3468_v44  ;;  %v1227_v1 = vadd.f32 %v1226_v41, %v1225_v21  ;;  %v1499_v3 = vadd.f32 %v1498_v32, %v1497_v33 }
 0x12c   : > { %3485 = vrcp.f32 %v596_v2  ;;  %v1549_v5 = vrot.slane %v1548_v27, 4  ;;  %v1010_v46 = vadd.f32 1.0, %v3470_v57  ;;  %v1409_v6 = vadd.f32 %v1408_v51, %v1407_v28 }
 0x12d   : > { %3487 = vrcp.f32 %v959_v50  ;;  %v1456_v4 = vrot.slane %v1455_v19, 4  ;;  %761 = vrot.lane.b32.xlu1 %v4115_v7, %s3752_s21  ;;  %v1330_v59 = vrot.slane %v1329_v49, 1  ;;  %v1451_v13 = vadd.f32 %v1450_v53, %v1449_v37 }
 0x12e   : > { %v3472_v15 = vpop.eup %3471  ;;  %3489 = vpow2.f32 %v1130_v56  ;;  %v1494_v52 = vcombine.high %v4146_v12, %v4146_v12  ;;  %v700_v14 = vadd.f32 1.0, %v4112_v55  ;;  %v3142_v2 = vmul.f32 -0.25, %v1227_v1 }
 0x12f   : > { %3491 = vrcp.f32 %v1288_v61  ;;  %1140 = vrot.lane.b32.xlu0 %v3472_v15, %s3758_s27  ;;  %vm1504_vm4 = vcmask 535552   ;;  %v1500_v11 = vrot.slane %v1499_v3, 2  ;;  %v1550_v62 = vadd.f32 %v1549_v5, %v1548_v27 }
 0x130   : > { %v3474_v10 = vpop.eup %3473  ;;  %vm5533_vm6 = vcmask 498688   ;;  %v1634_v17 = vrot.slane %v1633_v63, 4  ;;  %v804_v21 = vadd.f32 1.0, %v4117_v25  ;;  %v3148_v34 = vmul.f32 -0.25, %v1409_v6 }
 0x131   : > { %v3476_v28 = vpop.eup %3475  ;;  %v1340_v24 = vadd.f32 1.0, %v3474_v10  ;;  %v1457_v16 = vadd.f32 %v1456_v4, %v1455_v19  ;;  %865 = vrot.lane.b32.xlu1 %v4119_v30, %s3754_s23  ;;  %3493 = vrcp.f32 %v1010_v46  ;;  %v1331_v12 = vadd.f32 %v1330_v59, %v1329_v49 }
 0x132   : > { %v4177_v55 = vpop.eup %3477  ;;  %v1452_v26 = vrot.slane %v1451_v13, 1  ;;  %v1505_v29 = vsel %vm1504_vm4, %v1494_v52, 0.0  ;;  %v1234_v31 = vmul.f32 1.442695, %v3142_v2  ;;  %v1636_v25 = vsel %vm5533_vm6, %v1633_v63, %v1634_v17  ;;  %v1684_v63 = vpop.permute.xlu1 %1683 }
 0x133   : > { %v3480_v54 = vpop.eup %3479  ;;  %3495 = vrcp.f32 %v1340_v24  ;;  %1192 = vrot.lane.b32.xlu0 %v4177_v55, %s3759_s4  ;;  %v1501_v30 = vadd.f32 %v1500_v11, %v1499_v3  ;;  %v1551_v33 = vrot.slane %v1550_v62, 2  ;;  %v1185_v37 = vadd.f32 1.0, %v3476_v28  ;;  %v1734_v2 = vpop.permute.xlu0 %1733 }
 0x134   : > { %v4183_v8 = vpop.eup %3481  ;;  %3497 = vrcp.f32 %v700_v14  ;;  %v1458_v41 = vrot.slane %v1457_v16, 2  ;;  %v1506_v42 = vrot.slane %v1505_v29, 4  ;;  %v1416_v50 = vmul.f32 1.442695, %v3148_v34 }
 0x135   : > { %v4187_v58 = vpop.eup %3483  ;;  %3499 = vrcp.f32 %v804_v21  ;;  %917 = vrot.lane.b32.xlu1 %v4155_v39, %s3756_s26  ;;  %v3146_v32 = vmul.f32 -0.25, %v1331_v12  ;;  %v1453_v51 = vadd.f32 %v1452_v26, %v1451_v13  ;;  %v1638_v56 = vmul.f32 %v4066_v43, %v1636_v25 }
 0x136   : > { %v4191_v44 = vpop.eup %3485  ;;  %v1289_v57 = vadd.f32 1.0, %v3480_v54  ;;  %3501 = vpow2.f32 %v1234_v31  ;;  %v1502_v53 = vrot.slane %v1501_v30, 1  ;;  %v1552_v27 = vadd.f32 %v1551_v33, %v1550_v62 }
 0x137   : > { %v4194_v19 = vpop.eup %3487  ;;  %1244 = vrot.lane.b32.xlu0 %v4183_v8, %s3760_s19  ;;  %vm1650_vm7 = vcmask 11264   ;;  %v1640_v61 = vcombine.high %v1638_v56, %v1638_v56  ;;  %3503 = vrcp.f32 %v1185_v37  ;;  %v1459_v3 = vadd.f32 %v1458_v41, %v1457_v16 }
 0x138   : > { %v3490_v49 = vpop.eup %3489  ;;  %v1507_v5 = vadd.f32 %v1506_v42, %v1505_v29  ;;  %v1545_v46 = vcombine.high %v4160_v47, %v4160_v47  ;;  %3505 = vpow2.f32 %v1416_v50  ;;  %v1338_v6 = vmul.f32 1.442695, %v3146_v32  ;;  %v4222_v50 = vpop.permute.xlu1 %1784 }
 0x139   : > { %v4198_v1 = vpop.eup %3491  ;;  %968 = vrot.lane.b32.xlu1 %v4194_v19, %s3714_s29  ;;  %v3149_v4 = vmul.f32 -0.25, %v1453_v51  ;;  %vm1555_vm9 = vcmask 715776   ;;  %3507 = vrcp.f32 %v1289_v57  ;;  %v1133_v15 = vadd.f32 1.0, %v3490_v49 }
 0x13a   : > { %vm1642_vm11 = vcmask 1043472   ;;  %v1651_v59 = vsel %vm1650_vm7, %v1640_v61, 0.0  ;;  %v1503_v47 = vadd.f32 %v1502_v53, %v1501_v30  ;;  %v1553_v52 = vrot.slane %v1552_v27, 1 }
 0x13b   : > { %1296 = vrot.lane.b32.xlu0 %v4198_v1, %s3761_s8  ;;  %v4207_v13 = vpop.eup %3493  ;;  %v1652_v14 = vrot.slane %v1651_v59, 4  ;;  %vm1021_vm12 = vcmask 506880   ;;  %v1460_v11 = vrot.slane %v1459_v3, 1  ;;  %v1508_v62 = vrot.slane %v1507_v5, 2 }
 0x13c   : > { %v1556_v17 = vsel %vm1555_vm9, %v1545_v46, 0.0  ;;  %v1685_v28 = vrot.slane %v1684_v63, 4  ;;  %3509 = vpow2.f32 %v1338_v6  ;;  %v1466_v34 = vmul.f32 1.442695, %v3149_v4 }
 0x13d   : > { %v3496_v10 = vpop.eup %3495  ;;  %1019 = vrot.lane.b32.xlu1 %v4207_v13, %s3738_s9  ;;  %v1653_v24 = vadd.f32 %v1652_v14, %v1651_v59  ;;  %v1643_v12 = vsel %vm1642_vm11, %v1638_v56, 0.0  ;;  %vm1736_vm14 = vcmask 515072   ;;  %v1735_v29 = vrot.slane %v1734_v2, 4  ;;  %v4236_v59 = vpop.permute.xlu1 %1958 }
 0x13e   : > { %v4212_v21 = vpop.eup %3497  ;;  %v1686_v26 = vsel %vm1021_vm12, %v1684_v63, %v1685_v28  ;;  %v3151_v54 = vmul.f32 -0.25, %v1503_v47  ;;  %v1554_v31 = vadd.f32 %v1553_v52, %v1552_v27  ;;  %v1557_v25 = vrot.slane %v1556_v17, 4 }
 0x13f   : > { %v4214_v16 = vpop.eup %3499  ;;  %1348 = vrot.lane.b32.xlu0 %v3496_v10, %s5540_s10  ;;  %v1654_v30 = vrot.slane %v1653_v24, 2  ;;  %3511 = vrcp.f32 %v1133_v15  ;;  %v1461_v37 = vadd.f32 %v1460_v11, %v1459_v3  ;;  %v1509_v41 = vadd.f32 %v1508_v62, %v1507_v5 }
 0x140   : > { %v3502_v33 = vpop.eup %3501  ;;  %v1688_v42 = vmul.f32 %v4066_v43, %v1686_v26  ;;  %v1644_v32 = vrot.slane %v1643_v12, 4  ;;  %vm1692_vm15 = vcmask 1043480   ;;  %vm1700_vm0 = vcmask 19456  }
 0x141   : > { %1073 = vrot.lane.b32.xlu1 %v4058_v38, %s3723_s11  ;;  %v1737_v51 = vsel %vm1736_vm14, %v1734_v2, %v1735_v29  ;;  %v4225_v56 = vpop.eup %3503  ;;  %3513 = vpow2.f32 %v1466_v34  ;;  %v1655_v57 = vadd.f32 %v1654_v30, %v1653_v24  ;;  %v1237_v27 = vadd.f32 1.0, %v3502_v33  ;;  %v4247_v30 = vld [vmem:[%s3846_s25 + $0x4] sm:$0xff] }
 0x142   : > { %v1690_v49 = vcombine.high %v1688_v42, %v1688_v42  ;;  %v4229_v53 = vpop.eup %3505  ;;  %v1516_v61 = vmul.f32 1.442695, %v3151_v54  ;;  %v1558_v3 = vadd.f32 %v1557_v25, %v1556_v17  ;;  %v3153_v5 = vmul.f32 -0.25, %v1554_v31 }
 0x143   : > { %293 = vrot.lane.b32.xlu0 %v4058_v38, %s3746_s28  ;;  %v4231_v46 = vpop.eup %3507  ;;  %v1656_v6 = vrot.slane %v1655_v57, 1  ;;  %v1693_v4 = vsel %vm1692_vm15, %v1688_v42, 0.0  ;;  %v1739_v15 = vmul.f32 %v4066_v43, %v1737_v51  ;;  %v3150_v38 = vmul.f32 -0.25, %v1461_v37  ;;  %v4249_v37 = vpop.permute.xlu1 %2061 }
 0x144   : > { %v1701_v63 = vsel %vm1700_vm0, %v1690_v49, 0.0  ;;  %v1510_v47 = vrot.slane %v1509_v41, 1  ;;  %v1645_v52 = vadd.f32 %v1644_v32, %v1643_v12  ;;  %vm1743_vm2 = vcmask 1043488  }
 0x145   : > { %1082 = vrot.lane.b32.xlu1 %v4073_v48, %s3734_s5  ;;  %v1657_v14 = vadd.f32 %v1656_v6, %v1655_v57  ;;  %v1702_v2 = vrot.slane %v1701_v63, 4  ;;  %vm1751_vm4 = vcmask 27648   ;;  %v1741_v10 = vcombine.high %v1739_v15, %v1739_v15 }
 0x146   : > { %v3510_v11 = vpop.eup %3509  ;;  %3515 = vrcp.f32 %v1237_v27  ;;  %v1559_v62 = vrot.slane %v1558_v3, 2  ;;  %v1694_v17 = vrot.slane %v1693_v4, 4  ;;  %v1567_v28 = vmul.f32 1.442695, %v3153_v5 }
 0x147   : > { %345 = vrot.lane.b32.xlu0 %v4073_v48, %s3723_s11  ;;  %3517 = vpow2.f32 %v1516_v61  ;;  %v1703_v34 = vadd.f32 %v1702_v2, %v1701_v63  ;;  %v1468_v24 = vmul.f32 1.442695, %v3150_v38  ;;  %v1646_v12 = vrot.slane %v1645_v52, 2 }
 0x148   : > { %v1744_v26 = vsel %vm1743_vm2, %v1739_v15, 0.0  ;;  %v1752_v48 = vsel %vm1751_vm4, %v1741_v10, 0.0  ;;  %v1511_v54 = vadd.f32 %v1510_v47, %v1509_v41  ;;  %v3158_v31 = vmul.f32 -0.25, %v1657_v14 }
 0x149   : > { %1091 = vrot.lane.b32.xlu1 %v4046_v60, %s3747_s30  ;;  %v3512_v29 = vpop.eup %3511  ;;  %v1704_v25 = vrot.slane %v1703_v34, 2  ;;  %v1753_v33 = vrot.slane %v1752_v48, 4  ;;  %v1341_v42 = vadd.f32 1.0, %v3510_v11  ;;  %v1560_v32 = vadd.f32 %v1559_v62, %v1558_v3 }
 0x14a   : > { %v1695_v57 = vadd.f32 %v1694_v17, %v1693_v4  ;;  %v2249_v49 = vmul.f32 %v4247_v30, %v1737_v51  ;;  %3519 = vpow2.f32 %v1567_v28  ;;  %v1745_v5 = vrot.slane %v1744_v26, 4  ;;  %v4259_v4 = vpop.permute.xlu1 %291 }
 0x14b   : > { %397 = vrot.lane.b32.xlu0 %v4046_v60, %s3734_s5  ;;  %v3514_v27 = vpop.eup %3513  ;;  %v1705_v61 = vadd.f32 %v1704_v25, %v1703_v34  ;;  %v1754_v41 = vadd.f32 %v1753_v33, %v1752_v48  ;;  %v1647_v6 = vadd.f32 %v1646_v12, %v1645_v52  ;;  %vm1787_vm7 = vcmask 523264  }
 0x14c   : > { %v2251_v60 = vcombine.high %v2249_v49, %v2249_v49  ;;  %v4254_v63 = vsel %vm1743_vm2, %v2249_v49, 0.0  ;;  %v1664_v15 = vmul.f32 1.442695, %v3158_v31  ;;  %v1786_v51 = vrot.slane %v4222_v50, 4 }
 0x14d   : > { %1142 = vrot.lane.b32.xlu1 %v3512_v29, %s3758_s27  ;;  %v1706_v38 = vrot.slane %v1705_v61, 1  ;;  %v1755_v3 = vrot.slane %v1754_v41, 2  ;;  %v1470_v47 = vadd.f32 1.0, %v3514_v27  ;;  %v1561_v14 = vrot.slane %v1560_v32, 1 }
 0x14e   : > { %v1696_v2 = vrot.slane %v1695_v57, 2  ;;  %v4262_v52 = vsel %vm1751_vm4, %v2251_v60, 0.0  ;;  %3521 = vpow2.f32 %v1468_v24  ;;  %v1746_v11 = vadd.f32 %v1745_v5, %v1744_v26 }
 0x14f   : > { %449 = vrot.lane.b32.xlu0 %v4071_v45, %s3747_s30  ;;  %v1707_v10 = vadd.f32 %v1706_v38, %v1705_v61  ;;  %v1756_v62 = vadd.f32 %v1755_v3, %v1754_v41  ;;  %3523 = vrcp.f32 %v1341_v42  ;;  %v3152_v45 = vmul.f32 -0.25, %v1511_v54 }
 0x150   : > { %v4266_v17 = vpop.eup %3515  ;;  %v1648_v28 = vrot.slane %v1647_v6, 1  ;;  %v1788_v34 = vsel %vm1787_vm7, %v4222_v50, %v1786_v51  ;;  %3525 = vpow2.f32 %v1664_v15  ;;  %vm1794_vm9 = vcmask 1043496   ;;  %v4275_v50 = vpop.permute.xlu1 %343 }
 0x151   : > { %1194 = vrot.lane.b32.xlu1 %v4225_v56, %s3759_s4  ;;  %v3518_v12 = vpop.eup %3517  ;;  %v3160_v48 = vmul.f32 -0.25, %v1707_v10  ;;  %v1757_v29 = vrot.slane %v1756_v62, 1  ;;  %3527 = vrcp.f32 %v1470_v47  ;;  %v1562_v24 = vadd.f32 %v1561_v14, %v1560_v32 }
 0x152   : > { %v1697_v26 = vadd.f32 %v1696_v2, %v1695_v57  ;;  %v1790_v31 = vmul.f32 %v4066_v43, %v1788_v34  ;;  %v1747_v33 = vrot.slane %v1746_v11, 2  ;;  %vm1802_vm11 = vcmask 35840  }
 0x153   : > { %501 = vrot.lane.b32.xlu0 %v4187_v58, %s3748_s6  ;;  %v1714_v25 = vmul.f32 1.442695, %v3160_v48  ;;  %v1758_v54 = vadd.f32 %v1757_v29, %v1756_v62  ;;  %v1520_v42 = vadd.f32 1.0, %v3518_v12  ;;  %v1863_v61 = vmul.f32 %v4247_v30, %v1788_v34  ;;  %v4288_v34 = vpop.permute.xlu0 %1906 }
 0x154   : > { %v1792_v49 = vcombine.high %v1790_v31, %v1790_v31  ;;  %v1795_v27 = vsel %vm1794_vm9, %v1790_v31, 0.0  ;;  %v3520_v5 = vpop.eup %3519  ;;  %v1419_v32 = vadd.f32 1.0, %v4229_v53  ;;  %v1649_v57 = vadd.f32 %v1648_v28, %v1647_v6 }
 0x155   : > { %1246 = vrot.lane.b32.xlu1 %v4266_v17, %s3760_s19  ;;  %v3162_v43 = vmul.f32 -0.25, %v1758_v54  ;;  %v1796_v41 = vrot.slane %v1795_v27, 4  ;;  %v1518_v60 = vmul.f32 1.442695, %v3152_v45  ;;  %v1698_v15 = vrot.slane %v1697_v26, 1 }
 0x156   : > { %3529 = vpow2.f32 %v1714_v25  ;;  %v1803_v38 = vsel %vm1802_vm11, %v1792_v49, 0.0  ;;  %v3154_v3 = vmul.f32 -0.25, %v1562_v24  ;;  %v1748_v51 = vadd.f32 %v1747_v33, %v1746_v11  ;;  %v4290_v11 = vpop.permute.xlu1 %395 }
 0x157   : > { %553 = vrot.lane.b32.xlu0 %v4088_v0, %s3749_s7  ;;  %v1765_v47 = vmul.f32 1.442695, %v3162_v43  ;;  %v1797_v14 = vadd.f32 %v1796_v41, %v1795_v27  ;;  %3531 = vrcp.f32 %v1520_v42  ;;  %v1571_v53 = vadd.f32 1.0, %v3520_v5 }
 0x158   : > { %v1804_v6 = vrot.slane %v1803_v38, 4  ;;  %v1865_v2 = vcombine.high %v1863_v61, %v1863_v61  ;;  %v3522_v10 = vpop.eup %3521  ;;  %v3157_v62 = vmul.f32 -0.25, %v1649_v57  ;;  %v1867_v45 = vsel %vm1794_vm9, %v1863_v61, 0.0 }
 0x159   : > { %1298 = vrot.lane.b32.xlu1 %v4231_v46, %s3761_s8  ;;  %3533 = vpow2.f32 %v1765_v47  ;;  %v1798_v28 = vrot.slane %v1797_v14, 2  ;;  %v3524_v12 = vpop.eup %3523  ;;  %v1699_v48 = vadd.f32 %v1698_v15, %v1697_v26  ;;  %v1569_v25 = vmul.f32 1.442695, %v3154_v3  ;;  %v4298_v26 = vpop.permute.xlu0 %2009 }
 0x15a   : > { %v1805_v29 = vadd.f32 %v1804_v6, %v1803_v38  ;;  %v1874_v24 = vsel %vm1802_vm11, %v1865_v2, 0.0  ;;  %v3526_v31 = vpop.eup %3525  ;;  %3535 = vrcp.f32 %v1419_v32  ;;  %v1749_v33 = vrot.slane %v1748_v51, 1 }
 0x15b   : > { %605 = vrot.lane.b32.xlu0 %v4191_v44, %s3751_s20  ;;  %v1875_v54 = vrot.slane %v1874_v24, 4  ;;  %v4294_v42 = vpop.eup %3527  ;;  %3537 = vrcp.f32 %v1571_v53  ;;  %v1799_v49 = vadd.f32 %v1798_v28, %v1797_v14  ;;  %v1868_v61 = vrot.slane %v1867_v45, 4 }
 0x15c   : > { %5555 = vst [vmem:[#allocation3_spill] sm:$0xff] %v4294_v42  ;;  %v1806_v27 = vrot.slane %v1805_v29, 2  ;;  %3539 = vpow2.f32 %v1518_v60  ;;  %v1662_v5 = vmul.f32 1.442695, %v3157_v62  ;;  %vm1961_vm14 = vcmask 539648   ;;  %v4303_v60 = vpop.permute.xlu1 %447 }
 0x15d   : > { %1350 = vrot.lane.b32.xlu1 %v3524_v12, %s5540_s10  ;;  %v1876_v57 = vadd.f32 %v1875_v54, %v1874_v24  ;;  %v1667_v32 = vadd.f32 1.0, %v3526_v31  ;;  %v3159_v43 = vmul.f32 -0.25, %v1699_v48  ;;  %v1960_v15 = vrot.slane %v4236_v59, 4 }
 0x15e   : > { %v1807_v41 = vadd.f32 %v1806_v27, %v1805_v29  ;;  %v1471_v38 = vadd.f32 1.0, %v3522_v10  ;;  %3541 = vpow2.f32 %v1569_v25  ;;  %v1750_v3 = vadd.f32 %v1749_v33, %v1748_v51 }
 0x15f   : > { %709 = vrot.lane.b32.xlu0 %v4212_v21, %s5538_s22  ;;  %v1877_v47 = vrot.slane %v1876_v57, 2  ;;  %v1800_v53 = vrot.slane %v1799_v49, 1  ;;  %v1869_v2 = vadd.f32 %v1868_v61, %v1867_v45  ;;  %v1962_v62 = vsel %vm1961_vm14, %v4236_v59, %v1960_v15  ;;  %v4314_v59 = vpop.permute.xlu0 %1590  ;;  %s3767_s22 = smov 118  }
 0x160   : > { %v3530_v14 = vpop.eup %3529  ;;  %v1808_v6 = vrot.slane %v1807_v41, 1  ;;  %3543 = vpow2.f32 %v1662_v5  ;;  %v1964_v10 = vmul.f32 %v1962_v62, %v4247_v30  ;;  %v1712_v48 = vmul.f32 1.442695, %v3159_v43 }
 0x161   : > { %1478 = vrot.lane.b32.xlu1 %v4294_v42, %s3756_s26  ;;  %v1717_v28 = vadd.f32 1.0, %v3530_v14  ;;  %v1878_v12 = vadd.f32 %v1877_v47, %v1876_v57  ;;  %v4310_v51 = vpop.eup %3531  ;;  %3545 = vrcp.f32 %v1667_v32  ;;  %vm1968_vm15 = vcmask 1043512   ;;  %v4320_v32 = vpop.permute.xlu1 %499 }
 0x162   : > { %5556 = vst [vmem:[#allocation4_spill] sm:$0xff] %v4310_v51  ;;  %v1809_v29 = vadd.f32 %v1808_v6, %v1807_v41  ;;  %v3161_v31 = vmul.f32 -0.25, %v1750_v3  ;;  %vm1976_vm0 = vcmask 52224   ;;  %v1966_v25 = vcombine.high %v1964_v10, %v1964_v10 }
 0x163   : > { %813 = vrot.lane.b32.xlu0 %v4214_v16, %s3755_s24  ;;  %v3534_v24 = vpop.eup %3533  ;;  %v1879_v45 = vrot.slane %v1878_v12, 1  ;;  %3547 = vrcp.f32 %v1471_v38  ;;  %v1801_v33 = vadd.f32 %v1800_v53, %v1799_v49  ;;  %v1870_v27 = vrot.slane %v1869_v2, 2 }
 0x164   : > { %v3164_v54 = vmul.f32 -0.25, %v1809_v29  ;;  %v4316_v61 = vpop.eup %3535  ;;  %3549 = vrcp.f32 %v1717_v28  ;;  %v1768_v5 = vadd.f32 1.0, %v3534_v24  ;;  %v1969_v57 = vsel %vm1968_vm15, %v1964_v10, 0.0  ;;  %v4332_v10 = vpop.permute.xlu0 %655 }
 0x165   : > { %1528 = vrot.lane.b32.xlu1 %v4310_v51, %s3714_s29  ;;  %vm2064_vm2 = vcmask 556032   ;;  %v4322_v43 = vpop.eup %3537  ;;  %v1880_v15 = vadd.f32 %v1879_v45, %v1878_v12  ;;  %v1970_v3 = vrot.slane %v1969_v57, 4  ;;  %v1977_v49 = vsel %vm1976_vm0, %v1966_v25, 0.0  ;;  %5558 = vst [vmem:[#allocation6_spill] sm:$0xff] %v4332_v10  ;;  %v4336_v25 = vld [vmem:[%s3846_s25] sm:$0xff] }
 0x166   : > { %5557 = vst [vmem:[#allocation5_spill] sm:$0xff] %v4322_v43  ;;  %v1816_v41 = vmul.f32 1.442695, %v3164_v54  ;;  %v3540_v38 = vpop.eup %3539  ;;  %3551 = vpow2.f32 %v1712_v48  ;;  %v1763_v47 = vmul.f32 1.442695, %v3161_v31  ;;  %v2063_v14 = vrot.slane %v4249_v37, 4 }
 0x167   : > { %1359 = vrot.lane.b32.xlu0 %v4212_v21, %s3752_s21  ;;  %v3163_v53 = vmul.f32 -0.25, %v1801_v33  ;;  %v1971_v21 = vadd.f32 %v1970_v3, %v1969_v57  ;;  %v1871_v62 = vadd.f32 %v1870_v27, %v1869_v2  ;;  %v1978_v28 = vrot.slane %v1977_v49, 4  ;;  %s3762_s21 = smov 69   ;;  %v4339_v2 = vpop.permute.xlu1 %551 }
 0x168   : > { %3553 = vpow2.f32 %v1816_v41  ;;  %v3542_v6 = vpop.eup %3541  ;;  %vm2071_vm4 = vcmask 1043528   ;;  %v2065_v12 = vsel %vm2064_vm2, %v4249_v37, %v2063_v14  ;;  %v1521_v48 = vadd.f32 1.0, %v3540_v38 }
 0x169   : > { %1579 = vrot.lane.b32.xlu1 %v4322_v43, %s3738_s9  ;;  %3555 = vrcp.f32 %v1768_v5  ;;  %v3166_v29 = vmul.f32 -0.25, %v1880_v15  ;;  %v2067_v24 = vmul.f32 %v2065_v12, %v4247_v30  ;;  %v1972_v45 = vrot.slane %v1971_v21, 2 }
 0x16a   : > { %v3544_v31 = vpop.eup %3543  ;;  %3557 = vpow2.f32 %v1763_v47  ;;  %vm1909_vm7 = vcmask 531456   ;;  %v1572_v54 = vadd.f32 1.0, %v3542_v6  ;;  %v1872_v27 = vrot.slane %v1871_v62, 1 }
 0x16b   : > { %1368 = vrot.lane.b32.xlu0 %v4115_v7, %s3755_s24  ;;  %v4341_v37 = vpop.eup %3545  ;;  %v1814_v7 = vmul.f32 1.442695, %v3163_v53  ;;  %v2072_v33 = vsel %vm2071_vm4, %v2067_v24, 0.0  ;;  %v1979_v5 = vadd.f32 %v1978_v28, %v1977_v49  ;;  %v1908_v57 = vrot.slane %v4288_v34, 4  ;;  %v4356_v49 = vpop.permute.xlu0 %759  ;;  %s5561_s24 = smov 34  }
 0x16c   : > { %3559 = vrcp.f32 %v1521_v48  ;;  %v1887_v15 = vmul.f32 1.442695, %v3166_v29  ;;  %vm2079_vm9 = vcmask 68608   ;;  %v2069_v3 = vcombine.high %v2067_v24, %v2067_v24  ;;  %5560 = vst [vmem:[#allocation8_spill] sm:$0xff] %v4356_v49 }
 0x16d   : > { %2311 = vrot.lane.b32.xlu1 %v4336_v25, %s3762_s21  ;;  %v4347_v41 = vpop.eup %3547  ;;  %v1973_v47 = vadd.f32 %v1972_v45, %v1971_v21  ;;  %v2073_v14 = vrot.slane %v2072_v33, 4  ;;  %vm1916_vm11 = vcmask 1043504   ;;  %v4352_v53 = vsel %vm1909_vm7, %v4288_v34, %v1908_v57  ;;  %v4362_v34 = vpop.permute.xlu1 %603  ;;  %s3766_s21 = smov 120  }
 0x16e   : > { %5559 = vst [vmem:[#allocation7_spill] sm:$0xff] %v4347_v41  ;;  %v4349_v38 = vpop.eup %3549  ;;  %3561 = vpow2.f32 %v1814_v7  ;;  %v1912_v6 = vmul.f32 %v4352_v53, %v4247_v30  ;;  %v1873_v12 = vadd.f32 %v1872_v27, %v1871_v62  ;;  %v1980_v48 = vrot.slane %v1979_v5, 2 }
 0x16f   : > { %1377 = vrot.lane.b32.xlu0 %v4214_v16, %s3754_s23  ;;  %v1666_v16 = vadd.f32 1.0, %v3544_v31  ;;  %3563 = vrcp.f32 %v1572_v54  ;;  %vm1924_vm14 = vcmask 44032   ;;  %v2080_v29 = vsel %vm2079_vm9, %v2069_v3, 0.0 }
 0x170   : > { %v3552_v28 = vpop.eup %3551  ;;  %3565 = vpow2.f32 %v1887_v15  ;;  %v1914_v24 = vcombine.high %v1912_v6, %v1912_v6  ;;  %v1917_v31 = vsel %vm1916_vm11, %v1912_v6, 0.0  ;;  %v1974_v7 = vrot.slane %v1973_v47, 1  ;;  %v4373_v6 = vpop.permute.xlu0 %863 }
 0x171   : > { %1676 = vrot.lane.b32.xlu1 %v4341_v37, %s3746_s28  ;;  %v2074_v57 = vadd.f32 %v2073_v14, %v2072_v33  ;;  %3567 = vrcp.f32 %v1666_v16  ;;  %v1716_v54 = vadd.f32 1.0, %v3552_v28  ;;  %v3165_v15 = vmul.f32 -0.25, %v1873_v12  ;;  %5562 = vst [vmem:[#allocation9_spill] sm:$0xff] %v4373_v6 }
 0x172   : > { %v3554_v21 = vpop.eup %3553  ;;  %v1925_v27 = vsel %vm1924_vm14, %v1914_v24, 0.0  ;;  %v2081_v3 = vrot.slane %v2080_v29, 4  ;;  %v1981_v33 = vadd.f32 %v1980_v48, %v1979_v5  ;;  %vm1032_vm15 = vcmask 662528   ;;  %v4378_v24 = vpop.permute.xlu1 %707 }
 0x173   : > { %1428 = vrot.lane.b32.xlu0 %v4316_v61, %s5561_s24  ;;  %v1819_v45 = vadd.f32 1.0, %v3554_v21  ;;  %v4368_v62 = vpop.eup %3555  ;;  %v1918_v61 = vrot.slane %v1917_v31, 4  ;;  %v1926_v21 = vrot.slane %v1925_v27, 4  ;;  %v1031_v51 = vrot.slane %v4185_v36, 4  ;;  %5563 = vst [vmem:[#allocation10_spill] sm:$0xff] %v4378_v24 }
 0x174   : > { %v3558_v43 = vpop.eup %3557  ;;  %v1975_v16 = vadd.f32 %v1974_v7, %v1973_v47  ;;  %v2075_v28 = vrot.slane %v2074_v57, 2  ;;  %v1885_v6 = vmul.f32 1.442695, %v3165_v15  ;;  %v2082_v5 = vadd.f32 %v2081_v3, %v2080_v29 }
 0x175   : > { %1726 = vrot.lane.b32.xlu1 %v4349_v38, %s3723_s11  ;;  %3569 = vrcp.f32 %v1819_v45  ;;  %v1919_v14 = vadd.f32 %v1918_v61, %v1917_v31  ;;  %v1767_v45 = vadd.f32 1.0, %v3558_v43  ;;  %v1927_v42 = vadd.f32 %v1926_v21, %v1925_v27  ;;  %v4389_v27 = vpop.permute.xlu0 %915 }
 0x176   : > { %v4380_v12 = vpop.eup %3559  ;;  %3571 = vrcp.f32 %v1716_v54  ;;  %vm2012_vm0 = vcmask 547840   ;;  %v1982_v47 = vrot.slane %v1981_v33, 1  ;;  %v2011_v61 = vrot.slane %v4298_v26, 4  ;;  %5566 = vst [vmem:[#allocation13_spill] sm:$0xff] %v4389_v27 }
 0x177   : > { %1480 = vrot.lane.b32.xlu0 %v4347_v41, %s3756_s26  ;;  %5564 = vst [vmem:[#allocation11_spill] sm:$0xff] %v4380_v12  ;;  %v1920_v41 = vrot.slane %v1919_v14, 2  ;;  %v1928_v7 = vrot.slane %v1927_v42, 2  ;;  %v1033_v54 = vsel %vm1032_vm15, %v4185_v36, %v1031_v51  ;;  %v3169_v43 = vmul.f32 -0.25, %v1975_v16 }
 0x178   : > { %v3562_v48 = vpop.eup %3561  ;;  %v2076_v24 = vadd.f32 %v2075_v28, %v2074_v57  ;;  %3573 = vrcp.f32 %v1767_v45  ;;  %v2013_v21 = vsel %vm2012_vm0, %v4298_v26, %v2011_v61  ;;  %vm2019_vm2 = vcmask 1043520  }
 0x179   : > { %1777 = vrot.lane.b32.xlu1 %v4368_v62, %s3734_s5  ;;  %v1921_v31 = vadd.f32 %v1920_v41, %v1919_v14  ;;  %v4385_v49 = vpop.eup %3563  ;;  %v1929_v3 = vadd.f32 %v1928_v7, %v1927_v42  ;;  %v1818_v41 = vadd.f32 1.0, %v3562_v48  ;;  %3575 = vpow2.f32 %v1885_v6 }
 0x17a   : > { %5565 = vst [vmem:[#allocation12_spill] sm:$0xff] %v4385_v49  ;;  %v3566_v29 = vpop.eup %3565  ;;  %v2083_v14 = vrot.slane %v2082_v5, 2  ;;  %v1983_v51 = vadd.f32 %v1982_v47, %v1981_v33  ;;  %v2015_v28 = vmul.f32 %v2013_v21, %v4247_v30  ;;  %v1988_v7 = vmul.f32 1.442695, %v3169_v43  ;;  %v4407_v30 = vpop.permute.xlu0 %966 }
 0x17b   : > { %1530 = vrot.lane.b32.xlu0 %v4380_v12, %s3714_s29  ;;  %v1922_v15 = vrot.slane %v1921_v31, 1  ;;  %v4395_v12 = vpop.permute.xlu1 %811  ;;  %v4397_v36 = vpop.eup %3567  ;;  %v1930_v16 = vrot.slane %v1929_v3, 1  ;;  %v1890_v45 = vadd.f32 1.0, %v3566_v29  ;;  %v2077_v26 = vrot.slane %v2076_v24, 1  ;;  %5569 = vst [vmem:[#allocation16_spill] sm:$0xff] %v4407_v30 }
 0x17c   : > { %5567 = vst [vmem:[#allocation14_spill] sm:$0xff] %v4395_v12  ;;  %vm2027_vm4 = vcmask 60416   ;;  %v2017_v61 = vcombine.high %v2015_v28, %v2015_v28  ;;  %v2020_v27 = vsel %vm2019_vm2, %v2015_v28, 0.0  ;;  %vm1039_vm7 = vcmask 1043632  }
 0x17d   : > { %v1923_v57 = vadd.f32 %v1922_v15, %v1921_v31  ;;  %v1931_v6 = vadd.f32 %v1930_v16, %v1929_v3  ;;  %v2084_v33 = vadd.f32 %v2083_v14, %v2082_v5  ;;  %v2021_v47 = vrot.slane %v2020_v27, 4 }
 0x17e   : > { %3577 = vrcp.f32 %v1818_v41  ;;  %v2028_v15 = vsel %vm2027_vm4, %v2017_v61, 0.0  ;;  %v3170_v3 = vmul.f32 -0.25, %v1983_v51  ;;  %v2078_v14 = vadd.f32 %v2077_v26, %v2076_v24 }
 0x17f   : > { %1581 = vrot.lane.b32.xlu0 %v4385_v49, %s3738_s9  ;;  %v3570_v42 = vpop.eup %3569  ;;  %v3167_v48 = vmul.f32 -0.25, %v1923_v57  ;;  %v4403_v49 = vmul.f32 %v4336_v25, %v1033_v54  ;;  %v3168_v43 = vmul.f32 -0.25, %v1931_v6  ;;  %3579 = vpow2.f32 %v1988_v7  ;;  %v4414_v5 = vpop.permute.xlu1 %1357 }
 0x180   : > { %1828 = vrot.lane.b32.xlu1 %v3570_v42, %s3747_s30  ;;  %v4409_v31 = vpop.eup %3571  ;;  %v2187_v54 = vmul.f32 %v4336_v25, %v4352_v53  ;;  %v2022_v21 = vadd.f32 %v2021_v47, %v2020_v27  ;;  %3581 = vrcp.f32 %v1890_v45  ;;  %v2029_v16 = vrot.slane %v2028_v15, 4 }
 0x181   : > { %5568 = vst [vmem:[#allocation15_spill] sm:$0xff] %v4403_v49  ;;  %v1936_v29 = vmul.f32 1.442695, %v3167_v48  ;;  %v1938_v57 = vmul.f32 1.442695, %v3168_v43  ;;  %v2085_v41 = vrot.slane %v2084_v33, 1 }
 0x182   : > { %v2023_v28 = vrot.slane %v2022_v21, 2  ;;  %v4420_v51 = vpop.eup %3573  ;;  %v2030_v53 = vadd.f32 %v2029_v16, %v2028_v15  ;;  %v1040_v42 = vsel %vm1039_vm7, %v4403_v49, 0.0  ;;  %v1990_v7 = vmul.f32 1.442695, %v3170_v3 }
 0x183   : > { %1674 = vrot.lane.b32.xlu0 %v4397_v36, %s3746_s28  ;;  %3583 = vpow2.f32 %v1936_v29  ;;  %v3576_v27 = vpop.eup %3575  ;;  %v3173_v26 = vmul.f32 -0.25, %v2078_v14  ;;  %v2086_v48 = vadd.f32 %v2085_v41, %v2084_v33  ;;  %v4431_v47 = vpop.permute.xlu1 %1366  ;;  %v1041_v43 = vrot.slane %v1040_v42, 4 }
 0x184   : > { %1837 = vrot.lane.b32.xlu1 %v4187_v58, %s3749_s7  ;;  %3585 = vpow2.f32 %v1938_v57  ;;  %v2024_v24 = vadd.f32 %v2023_v28, %v2022_v21  ;;  %v2191_v58 = vsel %vm1916_vm11, %v2187_v54, 0.0  ;;  %v2031_v6 = vrot.slane %v2030_v53, 2 }
 0x185   : > { %v2189_v29 = vcombine.high %v2187_v54, %v2187_v54  ;;  %v1889_v21 = vadd.f32 1.0, %v3576_v27  ;;  %v2192_v57 = vrot.slane %v2191_v58, 4  ;;  %3587 = vpow2.f32 %v1990_v7 }
 0x186   : > { %v2025_v61 = vrot.slane %v2024_v24, 1  ;;  %v2032_v15 = vadd.f32 %v2031_v6, %v2030_v53  ;;  %v2091_v16 = vmul.f32 1.442695, %v3173_v26  ;;  %v3174_v33 = vmul.f32 -0.25, %v2086_v48 }
 0x187   : > { %1724 = vrot.lane.b32.xlu0 %v4409_v31, %s3723_s11  ;;  %v1042_v54 = vadd.f32 %v1041_v43, %v1040_v42  ;;  %v2198_v53 = vsel %vm1924_vm14, %v2189_v29, 0.0  ;;  %3589 = vrcp.f32 %v1889_v21  ;;  %v2193_v7 = vadd.f32 %v2192_v57, %v2191_v58  ;;  %v4439_v6 = vpop.permute.xlu1 %1375 }
 0x188   : > { %v4424_v45 = vpop.permute.xlu0 %1017  ;;  %1846 = vrot.lane.b32.xlu1 %v4088_v0, %s3751_s20  ;;  %v2026_v3 = vadd.f32 %v2025_v61, %v2024_v24  ;;  %v3578_v14 = vpop.eup %3577  ;;  %v2033_v28 = vrot.slane %v2032_v15, 1  ;;  %5571 = vst [vmem:[#allocation18_spill] sm:$0xff] %v4439_v6  ;;  %3591 = vpow2.f32 %v2091_v16  ;;  %v2199_v30 = vrot.slane %v2198_v53, 4 }
 0x189   : > { %5570 = vst [vmem:[#allocation17_spill] sm:$0xff] %v4424_v45  ;;  %v3580_v0 = vpop.eup %3579  ;;  %v1043_v42 = vrot.slane %v1042_v54, 2  ;;  %v2194_v29 = vrot.slane %v2193_v7, 2  ;;  %vm210_vm9 = vcmask 670720   ;;  %vm225_vm11 = vcmask 183296  }
 0x18a   : > { %v3171_v41 = vmul.f32 -0.25, %v2026_v3  ;;  %v3582_v45 = vpop.eup %3581  ;;  %v2034_v27 = vadd.f32 %v2033_v28, %v2032_v15  ;;  %v2093_v3 = vmul.f32 1.442695, %v3174_v33  ;;  %v1992_v58 = vadd.f32 1.0, %v3580_v0 }
 0x18b   : > { %1775 = vrot.lane.b32.xlu0 %v4420_v51, %s3734_s5  ;;  %v2200_v21 = vadd.f32 %v2199_v30, %v2198_v53  ;;  %v1044_v16 = vadd.f32 %v1043_v42, %v1042_v54  ;;  %vm217_vm14 = vcmask 1043640   ;;  %vm1593_vm15 = vcmask 490496  }
 0x18c   : > { %1855 = vrot.lane.b32.xlu1 %v4191_v44, %s3754_s23  ;;  %v4436_v49 = vpop.permute.xlu0 %1071  ;;  %v2039_v26 = vmul.f32 1.442695, %v3171_v41  ;;  %v3172_v48 = vmul.f32 -0.25, %v2034_v27  ;;  %vm1600_vm0 = vcmask 1043464   ;;  %vm451_vm2 = vcmask 1014784  }
 0x18d   : > { %v3584_v24 = vpop.eup %3583  ;;  %v2201_v41 = vrot.slane %v2200_v21, 2  ;;  %v1045_v53 = vrot.slane %v1044_v16, 1  ;;  %vm5535_vm4 = vcmask 998400   ;;  %vm1196_vm7 = vcmask 818176  }
 0x18e   : > { %v3586_v61 = vpop.eup %3585  ;;  %v1940_v44 = vadd.f32 1.0, %v3584_v24  ;;  %3593 = vpow2.f32 %v2039_v26  ;;  %v2041_v43 = vmul.f32 1.442695, %v3172_v48  ;;  %vm2314_vm6 = vcmask 564224  }
 0x18f   : > { %1826 = vrot.lane.b32.xlu0 %v3578_v14, %s3747_s30  ;;  %v1941_v14 = vadd.f32 1.0, %v3586_v61  ;;  %v3588_v57 = vpop.eup %3587 }
 0x190   : > { %1899 = vrot.lane.b32.xlu1 %v3582_v45, %s3747_s30  ;;  %3595 = vrcp.f32 %v1940_v44  ;;  %v4444_v15 = vpop.permute.xlu0 %1080  ;;  %v1993_v33 = vadd.f32 1.0, %v3588_v57  ;;  %v2202_v44 = vadd.f32 %v2201_v41, %v2200_v21  ;;  %v209_v41 = vrot.slane %v4019_v20, 4 }
 0x191   : > { %3597 = vrcp.f32 %v1941_v14  ;;  %v3590_v28 = vpop.eup %3589 }
 0x192   : > { %3599 = vpow2.f32 %v2041_v43  ;;  %v3592_v30 = vpop.eup %3591 }
 0x193   : > { %1835 = vrot.lane.b32.xlu0 %v3975_v18, %s3749_s7  ;;  %3601 = vpow2.f32 %v2093_v3  ;;  %v2195_v18 = vadd.f32 %v2194_v29, %v2193_v7  ;;  %v2254_v7 = vrot.slane %v4254_v63, 4  ;;  %v1046_v3 = vadd.f32 %v1045_v53, %v1044_v16  ;;  %s3763_s7 = smov 123  }
 0x194   : > { %3603 = vrcp.f32 %v1992_v58  ;;  %v4452_v0 = vpop.permute.xlu0 %1089  ;;  %v2095_v14 = vadd.f32 1.0, %v3592_v30 }
 0x195   : > { %3605 = vrcp.f32 %v1993_v33  ;;  %v2255_v21 = vadd.f32 %v2254_v7, %v4254_v63  ;;  %v2203_v33 = vrot.slane %v2202_v44, 1  ;;  %v3135_v30 = vmul.f32 -0.25, %v1046_v3 }
 0x197   : > { %1844 = vrot.lane.b32.xlu0 %v3990_v35, %s3751_s20  ;;  %v4448_v45 = vpop.permute.xlu1 %1426  ;;  %v2196_v35 = vrot.slane %v2195_v18, 1  ;;  %s3764_s20 = smov 59   ;;  %v1059_v3 = vmul.f32 1.442695, %v3135_v30 }
 0x198   : > { %5572 = vst [vmem:[#allocation19_spill] sm:$0xff] %v4448_v45  ;;  %v3594_v24 = vpop.eup %3593 }
 0x199   : > { %v2043_v61 = vadd.f32 1.0, %v3594_v24  ;;  %v2197_v43 = vadd.f32 %v2196_v35, %v2195_v18  ;;  %v2256_v24 = vrot.slane %v2255_v21, 2 }
 0x19a   : > { %v4456_v26 = vpop.eup %3595 }
 0x19b   : > { %1853 = vrot.lane.b32.xlu0 %v4014_v22, %s3754_s23  ;;  %v4454_v27 = vpop.permute.xlu1 %657  ;;  %v4458_v54 = vpop.eup %3597  ;;  %3607 = vrcp.f32 %v2043_v61  ;;  %v3176_v53 = vmul.f32 -0.25, %v2197_v43  ;;  %v2204_v61 = vadd.f32 %v2203_v33, %v2202_v44  ;;  %v2257_v44 = vadd.f32 %v2256_v24, %v2255_v21  ;;  %s3765_s23 = smov 121  }
 0x19c   : > { %5573 = vst [vmem:[#allocation20_spill] sm:$0xff] %v4454_v27  ;;  %v3600_v48 = vpop.eup %3599  ;;  %1950 = vrot.lane.b32.xlu1 %v4458_v54, %s3763_s7 }
 0x19d   : > { %v3602_v42 = vpop.eup %3601  ;;  %v2044_v58 = vadd.f32 1.0, %v3600_v48  ;;  %v211_v48 = vsel %vm210_vm9, %v4019_v20, %v209_v41  ;;  %v3177_v33 = vmul.f32 -0.25, %v2204_v61  ;;  %v2258_v21 = vrot.slane %v2257_v44, 1 }
 0x19e   : > { %v4468_v57 = vpop.eup %3603  ;;  %v2096_v18 = vadd.f32 1.0, %v3602_v42  ;;  %v2209_v42 = vmul.f32 1.442695, %v3176_v53  ;;  %vm1248_vm9 = vcmask 637952  }
 0x19f   : > { %1897 = vrot.lane.b32.xlu0 %v3590_v28, %s3747_s30  ;;  %v4462_v22 = vpop.permute.xlu1 %761  ;;  %v2261_v28 = vrot.slane %v4262_v52, 4  ;;  %3609 = vrcp.f32 %v2044_v58  ;;  %v2211_v61 = vmul.f32 1.442695, %v3177_v33  ;;  %v2259_v6 = vadd.f32 %v2258_v21, %v2257_v44 }
 0x1a0   : > { %5574 = vst [vmem:[#allocation21_spill] sm:$0xff] %v4462_v22  ;;  %3611 = vrcp.f32 %v2095_v14  ;;  %2000 = vrot.lane.b32.xlu1 %v4468_v57, %s3758_s27  ;;  %v4487_v14 = vpop.eup %3605 }
 0x1a1   : > { %v4466_v29 = vpop.permute.xlu0 %1140  ;;  %v2262_v35 = vadd.f32 %v2261_v28, %v4262_v52  ;;  %3613 = vrcp.f32 %v2096_v18  ;;  %v213_v52 = vmul.f32 %v4336_v25, %v211_v48  ;;  %v3178_v44 = vmul.f32 -0.25, %v2259_v6 }
 0x1a2   : > { %3615 = vpow2.f32 %v1059_v3 }
 0x1a3   : > { %1948 = vrot.lane.b32.xlu0 %v4456_v26, %s3763_s7  ;;  %v4474_v16 = vpop.permute.xlu1 %865  ;;  %v2263_v28 = vrot.slane %v2262_v35, 2  ;;  %3617 = vpow2.f32 %v2209_v42  ;;  %v215_v53 = vcombine.high %v213_v52, %v213_v52 }
 0x1a4   : > { %5575 = vst [vmem:[#allocation22_spill] sm:$0xff] %v4474_v16  ;;  %3619 = vpow2.f32 %v2211_v61 }
 0x1a5   : > { %v4479_v63 = vpop.permute.xlu0 %1192  ;;  %v4491_v58 = vpop.eup %3607  ;;  %v2264_v24 = vadd.f32 %v2263_v28, %v2262_v35  ;;  %v226_v45 = vsel %vm225_vm11, %v215_v53, 0.0  ;;  %v218_v28 = vsel %vm217_vm14, %v213_v52, 0.0  ;;  %vm5536_vm11 = vcmask 457728  }
 0x1a6   : > { %2051 = vrot.lane.b32.xlu1 %v4491_v58, %s3765_s23  ;;  %v219_v12 = vrot.slane %v218_v28, 4  ;;  %vm5554_vm14 = vcmask 326656  }
 0x1a7   : > { %2143 = vrot.lane.b32.xlu0 %v4336_v25, %s3764_s20  ;;  %v4484_v7 = vpop.permute.xlu1 %917 }
 0x1a8   : > { %5576 = vst [vmem:[#allocation23_spill] sm:$0xff] %v4484_v7  ;;  %v1592_v7 = vrot.slane %v4314_v59, 4  ;;  %v220_v10 = vadd.f32 %v219_v12, %v218_v28 }
 0x1a9   : > { %v4489_v43 = vpop.permute.xlu0 %1244  ;;  %v4500_v41 = vpop.eup %3609 }
 0x1aa   : > { %v3612_v18 = vpop.eup %3611  ;;  %v1594_v22 = vsel %vm1593_vm15, %v4314_v59, %v1592_v7  ;;  %v221_v59 = vrot.slane %v220_v10, 2  ;;  %vm763_vm15 = vcmask 310272  }
 0x1ab   : > { %2002 = vrot.lane.b32.xlu0 %v4487_v14, %s3758_s27  ;;  %v4498_v20 = vpop.permute.xlu1 %968  ;;  %2103 = vrot.lane.b32.xlu1 %v3612_v18, %s3766_s21  ;;  %v3614_v42 = vpop.eup %3613  ;;  %v4535_v6 = vmul.f32 %v4336_v25, %v1594_v22 }
 0x1ac   : > { %5577 = vst [vmem:[#allocation24_spill] sm:$0xff] %v4498_v20  ;;  %v2265_v20 = vrot.slane %v2264_v24, 1  ;;  %v3616_v18 = vpop.eup %3615 }
 0x1ad   : > { %v4502_v30 = vpop.permute.xlu0 %1296  ;;  %v3618_v16 = vpop.eup %3617  ;;  %v1063_v52 = vadd.f32 1.0, %v3616_v18  ;;  %v1601_v25 = vsel %vm1600_vm0, %v4535_v6, 0.0  ;;  %vm815_vm0 = vcmask 302080  }
 0x1ae   : > { %v2266_v53 = vadd.f32 %v2265_v20, %v2264_v24  ;;  %v2271_v20 = vmul.f32 1.442695, %v3178_v44  ;;  %v222_v24 = vadd.f32 %v221_v59, %v220_v10 }
 0x1af   : > { %2053 = vrot.lane.b32.xlu0 %v4500_v41, %s3765_s23  ;;  %v4507_v48 = vpop.permute.xlu1 %1019  ;;  %2113 = vrot.lane.b32.xlu1 %v4092_v23, %s3714_s29  ;;  %3621 = vrcp.f32 %v1063_v52 }
 0x1b0   : > { %5578 = vst [vmem:[#allocation25_spill] sm:$0xff] %v4507_v48  ;;  %v227_v48 = vrot.slane %v226_v45, 4  ;;  %v3179_v27 = vmul.f32 -0.25, %v2266_v53  ;;  %v223_v10 = vrot.slane %v222_v24, 1 }
 0x1b1   : > { %v4509_v3 = vpop.permute.xlu0 %1348 }
 0x1b2   : > { %v228_v61 = vadd.f32 %v227_v48, %v226_v45  ;;  %v2273_v12 = vmul.f32 1.442695, %v3179_v27 }
 0x1b3   : > { %2105 = vrot.lane.b32.xlu0 %v3614_v42, %s3766_s21  ;;  %v4514_v35 = vpop.permute.xlu1 %1073  ;;  %2122 = vrot.lane.b32.xlu1 %v4104_v40, %s3738_s9  ;;  %v2213_v42 = vadd.f32 1.0, %v3618_v16 }
 0x1b4   : > { %v229_v16 = vrot.slane %v228_v61, 2  ;;  %v1075_v28 = vsel %vm347_vm3, %v4436_v49, %v4514_v35 }
 0x1b5   : > { %v4516_v33 = vpop.permute.xlu0 %293  ;;  %3623 = vrcp.f32 %v2213_v42 }
 0x1b6   : > { %3625 = vpow2.f32 %v2271_v20  ;;  %v230_v7 = vadd.f32 %v229_v16, %v228_v61 }
 0x1b7   : > { %2115 = vrot.lane.b32.xlu0 %v4155_v39, %s3714_s29  ;;  %v4523_v23 = vpop.permute.xlu1 %1082  ;;  %2131 = vrot.lane.b32.xlu1 %v4127_v9, %s5540_s10  ;;  %v3620_v39 = vpop.eup %3619  ;;  %3627 = vpow2.f32 %v2273_v12 }
 0x1b8   : > { %v231_v48 = vrot.slane %v230_v7, 1  ;;  %v1084_v44 = vsel %vm399_vm13, %v4444_v15, %v4523_v23 }
 0x1b9   : > { %v4525_v21 = vpop.permute.xlu0 %345  ;;  %v3622_v18 = vpop.eup %3621 }
 0x1ba   : > { %v1078_v61 = vadd.f32 %v3622_v18, %v1075_v28  ;;  %v232_v42 = vadd.f32 %v231_v48, %v230_v7 }
 0x1bb   : > { %2124 = vrot.lane.b32.xlu0 %v4194_v19, %s3738_s9  ;;  %v4532_v40 = vpop.permute.xlu1 %1091  ;;  %2166 = vrot.lane.b32.xlu1 %v4397_v36, %s3723_s11  ;;  %v2214_v19 = vadd.f32 1.0, %v3620_v39 }
 0x1bc   : > { %v1087_v20 = vadd.f32 %v1084_v44, %v1078_v61  ;;  %v3104_v7 = vmul.f32 -0.25, %v232_v42 }
 0x1bd   : > { %v4537_v45 = vpop.permute.xlu0 %397  ;;  %3629 = vrcp.f32 %v2214_v19 }
 0x1bf   : > { %2133 = vrot.lane.b32.xlu0 %v4207_v13, %s5540_s10  ;;  %v4543_v9 = vpop.permute.xlu1 %1142  ;;  %2173 = vrot.lane.b32.xlu1 %v4409_v31, %s3734_s5  ;;  %v1602_v13 = vrot.slane %v1601_v25, 4  ;;  %v3624_v31 = vpop.eup %3623 }
 0x1c0   : > { %v3626_v52 = vpop.eup %3625  ;;  %v1145_v59 = vsel %vm5535_vm4, %v4466_v29, %v4543_v9  ;;  %vm2329_vm4 = vcmask 76800  }
 0x1c1   : > { %v4546_v22 = vpop.permute.xlu0 %449  ;;  %v1603_v53 = vadd.f32 %v1602_v13, %v1601_v25  ;;  %v2275_v39 = vadd.f32 1.0, %v3626_v52  ;;  %v3628_v12 = vpop.eup %3627 }
 0x1c2   : > { %v2276_v48 = vadd.f32 1.0, %v3628_v12 }
 0x1c3   : > { %2168 = vrot.lane.b32.xlu0 %v4341_v37, %s3723_s11  ;;  %v4552_v36 = vpop.permute.xlu1 %1194  ;;  %2180 = vrot.lane.b32.xlu1 %v4420_v51, %s3747_s30  ;;  %v1093_v51 = vsel %vm451_vm2, %v4452_v0, %v4532_v40  ;;  %v1604_v16 = vrot.slane %v1603_v53, 2  ;;  %3631 = vrcp.f32 %v2275_v39 }
 0x1c4   : > { %v1096_v19 = vadd.f32 %v1093_v51, %v1087_v20  ;;  %3633 = vrcp.f32 %v2276_v48 }
 0x1c5   : > { %v4554_v27 = vpop.permute.xlu0 %501  ;;  %v1605_v28 = vadd.f32 %v1604_v16, %v1603_v53 }
 0x1c6   : > { %v1148_v13 = vadd.f32 %v1145_v59, %v1096_v19 }
 0x1c7   : > { %2175 = vrot.lane.b32.xlu0 %v4349_v38, %s3734_s5  ;;  %v4563_v37 = vpop.permute.xlu1 %1246  ;;  %v224_v38 = vadd.f32 %v223_v10, %v222_v24  ;;  %2221 = vrot.lane.b32.xlu1 %v3624_v31, %s3758_s27  ;;  %v3630_v0 = vpop.eup %3629 }
 0x1c8   : > { %v1249_v18 = vsel %vm1248_vm9, %v4489_v43, %v4563_v37  ;;  %v1606_v43 = vrot.slane %v1605_v28, 1 }
 0x1c9   : > { %v4568_v49 = vpop.permute.xlu0 %553  ;;  %v3103_v24 = vmul.f32 -0.25, %v224_v38 }
 0x1cb   : > { %2182 = vrot.lane.b32.xlu0 %v4368_v62, %s3747_s30  ;;  %v4576_v15 = vpop.permute.xlu1 %1298  ;;  %v1197_v62 = vsel %vm1196_vm7, %v4479_v63, %v4552_v36  ;;  %2228 = vrot.lane.b32.xlu1 %v4177_v55, %s3760_s19  ;;  %v239_v63 = vmul.f32 1.442695, %v3104_v7  ;;  %v237_v52 = vmul.f32 1.442695, %v3103_v24 }
 0x1cc   : > { %v1200_v10 = vadd.f32 %v1197_v62, %v1148_v13  ;;  %v1301_v55 = vsel %vm5536_vm11, %v4502_v30, %v4576_v15  ;;  %v1607_v30 = vadd.f32 %v1606_v43, %v1605_v28  ;;  %vm607_vm11 = vcmask 474112  }
 0x1cd   : > { %v4581_v25 = vpop.permute.xlu0 %605  ;;  %3635 = vpow2.f32 %v239_v63  ;;  %v3632_v20 = vpop.eup %3631 }
 0x1ce   : > { %v1252_v44 = vadd.f32 %v1249_v18, %v1200_v10  ;;  %3637 = vpow2.f32 %v237_v52  ;;  %v3634_v59 = vpop.eup %3633 }
 0x1cf   : > { %2223 = vrot.lane.b32.xlu0 %v3630_v0, %s3758_s27  ;;  %v4589_v29 = vpop.permute.xlu1 %1350  ;;  %2235 = vrot.lane.b32.xlu1 %v4183_v8, %s3761_s8 }
 0x1d0   : > { %v1352_v61 = vsel %vm5554_vm14, %v4509_v3, %v4589_v29  ;;  %v1304_v42 = vadd.f32 %v1301_v55, %v1252_v44 }
 0x1d1   : > { %v4594_v31 = vpop.permute.xlu0 %709 }
 0x1d2   : > { %v1355_v8 = vadd.f32 %v1352_v61, %v1304_v42 }
 0x1d3   : > { %2230 = vrot.lane.b32.xlu0 %v4225_v56, %s3760_s19  ;;  %v4603_v53 = vpop.permute.xlu1 %1478  ;;  %2242 = vrot.lane.b32.xlu1 %v4198_v1, %s5561_s24 }
 0x1d5   : > { %v4608_v51 = vpop.permute.xlu0 %813 }
 0x1d7   : > { %2237 = vrot.lane.b32.xlu0 %v4266_v17, %s3761_s8  ;;  %v4614_v56 = vpop.permute.xlu1 %1528  ;;  %2283 = vrot.lane.b32.xlu1 %v3632_v20, %s3747_s30  ;;  %v3155_v17 = vmul.f32 -0.25, %v1607_v30  ;;  %v3636_v19 = vpop.eup %3635 }
 0x1d8   : > { %v3638_v24 = vpop.eup %3637  ;;  %v242_v48 = vadd.f32 1.0, %v3636_v19 }
 0x1d9   : > { %v4616_v38 = vpop.permute.xlu0 %1359  ;;  %v1620_v0 = vmul.f32 1.442695, %v3155_v17  ;;  %v241_v28 = vadd.f32 1.0, %v3638_v24 }
 0x1da   : > { %v1361_v3 = vsel %vm763_vm15, %v4414_v5, %v4616_v38 }
 0x1db   : > { %v1364_v39 = vadd.f32 %v1361_v3, %v1355_v8  ;;  %2244 = vrot.lane.b32.xlu0 %v4231_v46, %s5561_s24  ;;  %v4624_v1 = vpop.permute.xlu1 %1579  ;;  %2290 = vrot.lane.b32.xlu1 %v4456_v26, %s3758_s27  ;;  %3639 = vpow2.f32 %v1620_v0 }
 0x1dc   : > { %3641 = vrcp.f32 %v242_v48 }
 0x1dd   : > { %v4626_v16 = vpop.permute.xlu0 %1368  ;;  %3643 = vrcp.f32 %v241_v28 }
 0x1de   : > { %v1370_v12 = vsel %vm815_vm0, %v4431_v47, %v4626_v16  ;;  %v3669_v47 = vld [vmem:[%s3846_s25 + $0x4] sm:$0xff] }
 0x1df   : > { %v4633_v5 = vadd.f32 %v1370_v12, %v1364_v39  ;;  %2285 = vrot.lane.b32.xlu0 %v3634_v59, %s3747_s30  ;;  %v2312_v46 = vpop.permute.xlu1 %2311  ;;  %2297 = vrot.lane.b32.xlu1 %v4468_v57, %s3765_s23 }
 0x1e0   : > { %v2313_v7 = vrot.slane %v2312_v46, 4 }
 0x1e1   : > { %v4636_v62 = vpop.permute.xlu0 %1377 }
 0x1e2   : > { %v2315_v13 = vsel %vm2314_vm6, %v2312_v46, %v2313_v7  ;;  %vm5537_vm6 = vcmask 834560  }
 0x1e3   : > { %2292 = vrot.lane.b32.xlu0 %v4458_v54, %s3758_s27  ;;  %v2317_v26 = vmul.f32 %v3669_v47, %v2315_v13  ;;  %v4645_v44 = vpop.permute.xlu1 %1676  ;;  %2304 = vrot.lane.b32.xlu1 %v4491_v58, %s3766_s21  ;;  %v348_v47 = vsel %vm347_vm3, %v4275_v50, %v4525_v21  ;;  %v452_v50 = vsel %vm451_vm2, %v4303_v60, %v4546_v22 }
 0x1e5   : > { %v4643_v18 = vpop.permute.xlu0 %1428  ;;  %v2319_v10 = vcombine.high %v2317_v26, %v2317_v26  ;;  %v2322_v63 = vsel %vm2321_vm1, %v2317_v26, 0.0  ;;  %v3640_v58 = vpop.eup %3639  ;;  %vm5553_vm1 = vcmask 1039360  }
 0x1e6   : > { %v2323_v55 = vrot.slane %v2322_v63, 4  ;;  %v3642_v12 = vpop.eup %3641  ;;  %v296_v46 = vsel %vm5553_vm1, %v4259_v4, %v4516_v33  ;;  %v400_v4 = vsel %vm399_vm13, %v4290_v11, %v4537_v45  ;;  %v504_v11 = vsel %vm5537_vm6, %v4320_v32, %v4554_v27 }
 0x1e7   : > { %2299 = vrot.lane.b32.xlu0 %v4487_v14, %s3765_s23  ;;  %v2330_v54 = vsel %vm2329_vm4, %v2319_v10, 0.0  ;;  %v4655_v20 = vpop.permute.xlu1 %1726  ;;  %v300_v0 = vadd.f32 %v3642_v12, %v4516_v33  ;;  %v3644_v48 = vpop.eup %3643  ;;  %vm555_vm4 = vcmask 654336   ;;  %vm5544_vm6 = vcmask 318464  }
 0x1e8   : > { %v2324_v57 = vadd.f32 %v2323_v55, %v2322_v63  ;;  %v2331_v52 = vrot.slane %v2330_v54, 4  ;;  %v299_v26 = vadd.f32 %v3644_v48, %v296_v46  ;;  %v556_v60 = vsel %vm555_vm4, %v4339_v2, %v4568_v49  ;;  %v5580_v48 = vld [vmem:[#allocation6_spill] sm:$0xff] }
 0x1e9   : > { %v4651_v43 = vpop.permute.xlu0 %1480  ;;  %v352_v28 = vadd.f32 %v4525_v21, %v300_v0 }
 0x1ea   : > { %v2325_v61 = vrot.slane %v2324_v57, 2  ;;  %v2332_v42 = vadd.f32 %v2331_v52, %v2330_v54  ;;  %v351_v55 = vadd.f32 %v348_v47, %v299_v26 }
 0x1eb   : > { %2306 = vrot.lane.b32.xlu0 %v4500_v41, %s3766_s21  ;;  %v1624_v41 = vadd.f32 1.0, %v3640_v58  ;;  %v4665_v13 = vpop.permute.xlu1 %1777  ;;  %v404_v54 = vadd.f32 %v4537_v45, %v352_v28  ;;  %v608_v58 = vsel %vm607_vm11, %v4362_v34, %v4581_v25  ;;  %v5579_v34 = vld [vmem:[#allocation20_spill] sm:$0xff] }
 0x1ec   : > { %v2326_v8 = vadd.f32 %v2325_v61, %v2324_v57  ;;  %v2333_v30 = vrot.slane %v2332_v42, 2  ;;  %v403_v52 = vadd.f32 %v400_v4, %v351_v55  ;;  %v660_v47 = vsel %vm5554_vm14, %v5580_v48, %v5579_v34 }
 0x1ed   : > { %v4657_v3 = vpop.permute.xlu0 %1530  ;;  %3645 = vrcp.f32 %v1624_v41  ;;  %v456_v21 = vadd.f32 %v4546_v22, %v404_v54 }
 0x1ee   : > { %v2327_v14 = vrot.slane %v2326_v8, 1  ;;  %v2334_v39 = vadd.f32 %v2333_v30, %v2332_v42 }
 0x1ef   : > { %v508_v45 = vadd.f32 %v4554_v27, %v456_v21 }
 0x1f0   : > { %v2328_v17 = vadd.f32 %v2327_v14, %v2326_v8  ;;  %v2335_v59 = vrot.slane %v2334_v39, 1  ;;  %v455_v8 = vadd.f32 %v452_v50, %v403_v52 }
 0x1f1   : > { %v4662_v19 = vpop.permute.xlu0 %1581  ;;  %v560_v22 = vadd.f32 %v4568_v49, %v508_v45  ;;  %v5582_v45 = vld [vmem:[#allocation21_spill] sm:$0xff] }
 0x1f2   : > { %v2336_v7 = vadd.f32 %v2335_v59, %v2334_v39  ;;  %v3180_v24 = vmul.f32 -0.25, %v2328_v17  ;;  %v4679_v61 = vpop.permute.xlu1 %1828  ;;  %v507_v30 = vadd.f32 %v504_v11, %v455_v8 }
 0x1f3   : > { %v612_v32 = vadd.f32 %v4581_v25, %v560_v22 }
 0x1f4   : > { %v3181_v10 = vmul.f32 -0.25, %v2336_v7  ;;  %v2341_v63 = vmul.f32 1.442695, %v3180_v24  ;;  %v559_v39 = vadd.f32 %v556_v60, %v507_v30 }
 0x1f5   : > { %v1675_v33 = vpop.permute.xlu0 %1674  ;;  %v664_v24 = vadd.f32 %v5579_v34, %v612_v32 }
 0x1f6   : > { %3647 = vpow2.f32 %v2341_v63  ;;  %v2343_v57 = vmul.f32 1.442695, %v3181_v10  ;;  %v1678_v17 = vsel %vm5553_vm1, %v1675_v33, %v4645_v44  ;;  %v4695_v27 = vpop.permute.xlu1 %1837  ;;  %v611_v46 = vadd.f32 %v608_v58, %v559_v39  ;;  %v5581_v33 = vld [vmem:[#allocation10_spill] sm:$0xff]  ;;  %v5583_v58 = vld [vmem:[#allocation8_spill] sm:$0xff] }
 0x1f7   : > { %v3646_v59 = vpop.eup %3645  ;;  %v712_v55 = vsel %vm5544_vm6, %v5581_v33, %v4594_v31  ;;  %v716_v50 = vadd.f32 %v4594_v31, %v664_v24  ;;  %v5586_v24 = vld [vmem:[#allocation3_spill] sm:$0xff]  ;;  %v5590_v33 = vld [vmem:[#allocation4_spill] sm:$0xff] }
 0x1f8   : > { %3649 = vpow2.f32 %v2343_v57  ;;  %v1681_v41 = vadd.f32 %v3646_v59, %v1678_v17  ;;  %v663_v10 = vadd.f32 %v660_v47, %v611_v46  ;;  %v5584_v17 = vld [vmem:[#allocation14_spill] sm:$0xff]  ;;  %v5588_v47 = vld [vmem:[#allocation7_spill] sm:$0xff] }
 0x1f9   : > { %v1725_v42 = vpop.permute.xlu0 %1724  ;;  %v768_v60 = vadd.f32 %v5582_v45, %v716_v50  ;;  %v816_v59 = vsel %vm815_vm0, %v5584_v17, %v4608_v51  ;;  %v5592_v50 = vld [vmem:[#allocation11_spill] sm:$0xff]  ;;  %v5597_v17 = vld [vmem:[#allocation25_spill] sm:$0xff]  ;;  %vm1047_vm0 = vcmask 175104  }
 0x1fa   : > { %v1728_v2 = vsel %vm347_vm3, %v1725_v42, %v4655_v20  ;;  %v4705_v63 = vpop.permute.xlu1 %1846  ;;  %v715_v11 = vadd.f32 %v712_v55, %v663_v10  ;;  %v5591_v55 = vld [vmem:[#allocation13_spill] sm:$0xff] }
 0x1fb   : > { %v1731_v28 = vadd.f32 %v1728_v2, %v1681_v41  ;;  %v820_v46 = vadd.f32 %v4608_v51, %v768_v60  ;;  %v5587_v51 = vld [vmem:[#allocation9_spill] sm:$0xff] }
 0x1fd   : > { %v1776_v14 = vpop.permute.xlu0 %1775 }
 0x1fe   : > { %v1779_v25 = vsel %vm399_vm13, %v1776_v14, %v4665_v13  ;;  %v4716_v30 = vpop.permute.xlu1 %1855  ;;  %v764_v14 = vsel %vm763_vm15, %v5583_v58, %v5582_v45  ;;  %vm5545_vm15 = vcmask 867328   ;;  %v5595_v45 = vld [vmem:[#allocation16_spill] sm:$0xff] }
 0x1ff   : > { %v1782_v54 = vadd.f32 %v1779_v25, %v1731_v28  ;;  %v767_v31 = vadd.f32 %v764_v14, %v715_v11  ;;  %v5589_v28 = vld [vmem:[#allocation23_spill] sm:$0xff]  ;;  %v5593_v11 = vld [vmem:[#allocation24_spill] sm:$0xff] }
 0x200   : > { %v3648_v12 = vpop.eup %3647  ;;  %v970_v60 = vsel %vm304_vm5, %v5595_v45, %v5593_v11  ;;  %v5596_v58 = vld [vmem:[#allocation12_spill] sm:$0xff]  ;;  %v3670_v45 = vld [vmem:[%s3846_s25] sm:$0xff] }
 0x201   : > { %v2345_v49 = vadd.f32 1.0, %v3648_v12  ;;  %v1827_v0 = vpop.permute.xlu0 %1826 }
 0x202   : > { %v3650_v7 = vpop.eup %3649  ;;  %v1830_v4 = vsel %vm451_vm2, %v1827_v0, %v4679_v61  ;;  %v4732_v41 = vpop.permute.xlu1 %1899 }
 0x203   : > { %v2346_v26 = vadd.f32 1.0, %v3650_v7  ;;  %3651 = vrcp.f32 %v2345_v49  ;;  %v1833_v21 = vadd.f32 %v1830_v4, %v1782_v54  ;;  %v819_v49 = vadd.f32 %v816_v59, %v767_v31  ;;  %v5585_v7 = vld [vmem:[#allocation22_spill] sm:$0xff] }
 0x204   : > { %v872_v34 = vadd.f32 %v5585_v7, %v820_v46  ;;  %v920_v54 = vsel %vm5545_vm15, %v5591_v55, %v5589_v28  ;;  %v5598_v46 = vld [vmem:[#allocation17_spill] sm:$0xff] }
 0x205   : > { %3653 = vrcp.f32 %v2346_v26  ;;  %v1836_v57 = vpop.permute.xlu0 %1835 }
 0x206   : > { %v1839_v52 = vsel %vm555_vm4, %v1836_v57, %v4695_v27  ;;  %v924_v10 = vadd.f32 %v5589_v28, %v872_v34  ;;  %v5599_v28 = vld [vmem:[#allocation15_spill] sm:$0xff]  ;;  %vm1430_vm4 = vcmask 277504  }
 0x207   : > { %v1842_v42 = vadd.f32 %v1839_v52, %v1833_v21  ;;  %v4760_v21 = vld [vmem:[%s3846_s25] sm:$0xff] }
 0x208   : > { %v4774_v14 = vcombine.high %v4760_v21, %v4760_v21 }
 0x209   : > { %v1845_v8 = vpop.permute.xlu0 %1844 }
 0x20a   : > { %v1848_v22 = vsel %vm607_vm11, %v1845_v8, %v4705_v63  ;;  %vm867_vm11 = vcmask 293888   ;;  %v5594_v8 = vld [vmem:[#allocation5_spill] sm:$0xff] }
 0x20b   : > { %v4723_v39 = vadd.f32 %v1848_v22, %v1842_v42  ;;  %v868_v25 = vsel %vm867_vm11, %v5587_v51, %v5585_v7  ;;  %v974_v42 = vadd.f32 %v5593_v11, %v924_v10  ;;  %v1037_v10 = vcombine.high %v5599_v28, %v5599_v28 }
 0x20c   : > { %v871_v48 = vadd.f32 %v868_v25, %v819_v49  ;;  %v5542_v25 = vmov 0  }
 0x20d   : > { %v3652_v32 = vpop.eup %3651  ;;  %v4728_v12 = vpop.permute.xlu0 %1853  ;;  %v1026_v59 = vadd.f32 %v5597_v17, %v974_v42  ;;  %3347 = vset.pattern.permute.xlu0 %v5542_v25 }
 0x20e   : > { %2353 = vrot.lane.b32.xlu1 %v3652_v32, %s3767_s22  ;;  %v4748_v4 = vpop.permute.xlu1 %1950  ;;  %v923_v57 = vadd.f32 %v920_v54, %v871_v48  ;;  %v1048_v54 = vsel %vm1047_vm0, %v1037_v10, 0.0 }
 0x20f   : > { %v3654_v2 = vpop.eup %3653  ;;  %v1028_v34 = vmul.f32 0.0625, %v1026_v59 }
 0x210   : > { %2355 = vrot.lane.b32.xlu0 %v3654_v2, %s3767_s22  ;;  %v973_v31 = vadd.f32 %v970_v60, %v923_v57  ;;  %v1022_v2 = vsel %vm1021_vm12, %v5598_v46, %v5597_v17  ;;  %v2519_v60 = vcombine.high %v3670_v45, %v3670_v45 }
 0x211   : > { %v4735_v0 = vpop.permute.xlu0 %1897 }
 0x212   : > { %2361 = vrot.lane.b32.xlu1 %v5586_v24, %s3714_s29  ;;  %v4768_v22 = vpop.permute.xlu1 %2000  ;;  %v1025_v49 = vadd.f32 %v1022_v2, %v973_v31 }
 0x214   : > { %2363 = vrot.lane.b32.xlu0 %v5588_v47, %s3714_s29  ;;  %v1027_v51 = vmul.f32 0.0625, %v1025_v49 }
 0x215   : > { %v4745_v26 = vpop.permute.xlu0 %1948 }
 0x216   : > { %2368 = vrot.lane.b32.xlu1 %v5590_v33, %s3738_s9 }
 0x218   : > { %2370 = vrot.lane.b32.xlu0 %v5592_v50, %s3738_s9  ;;  %v4786_v7 = vpop.permute.xlu1 %2051  ;;  %v1049_v50 = vrot.slane %v1048_v54, 4 }
 0x219   : > { %v4757_v52 = vpop.permute.xlu0 %2143 }
 0x21a   : > { %2375 = vrot.lane.b32.xlu1 %v5594_v8, %s5540_s10  ;;  %v1050_v42 = vadd.f32 %v1049_v50, %v1048_v54 }
 0x21c   : > { %2377 = vrot.lane.b32.xlu0 %v5596_v58, %s5540_s10  ;;  %s3768_s10 = smov 105   ;;  %v1051_v31 = vrot.slane %v1050_v42, 2 }
 0x21d   : > { %v4776_v32 = vpop.permute.xlu0 %2002  ;;  %v4794_v48 = vpop.permute.xlu1 %2103 }
 0x21e   : > { %2535 = vrot.lane.b32.xlu1 %v4760_v21, %s3756_s26  ;;  %v1052_v59 = vadd.f32 %v1051_v31, %v1050_v42 }
 0x220   : > { %2537 = vrot.lane.b32.xlu0 %v4774_v14, %s3756_s26  ;;  %v1053_v2 = vrot.slane %v1052_v59, 1  ;;  %s3775_s26 = smov 17  }
 0x221   : > { %v4789_v24 = vpop.permute.xlu0 %2053  ;;  %v4805_v33 = vpop.permute.xlu1 %2113 }
 0x222   : > { %2541 = vrot.lane.b32.xlu1 %v4760_v21, %s3768_s10 }
 0x224   : > { %2387 = vrot.lane.b32.xlu0 %v1028_v34, %s3746_s28 }
 0x225   : > { %v4797_v47 = vpop.permute.xlu0 %2105  ;;  %v4815_v57 = vpop.permute.xlu1 %2122 }
 0x226   : > { %2385 = vrot.lane.b32.xlu1 %v1027_v51, %s3746_s28  ;;  %v1054_v51 = vadd.f32 %v1053_v2, %v1052_v59 }
 0x228   : > { %2543 = vrot.lane.b32.xlu0 %v4774_v14, %s3768_s10  ;;  %s5600_s10 = smov 104   ;;  %v3136_v10 = vmul.f32 -0.25, %v1054_v51 }
 0x229   : > { %v4809_v55 = vpop.permute.xlu0 %2115  ;;  %v4825_v8 = vpop.permute.xlu1 %2131 }
 0x22a   : > { %2556 = vrot.lane.b32.xlu1 %v4760_v21, %s3746_s28  ;;  %v1061_v50 = vmul.f32 1.442695, %v3136_v10 }
 0x22c   : > { %2558 = vrot.lane.b32.xlu0 %v4774_v14, %s3746_s28  ;;  %3655 = vpow2.f32 %v1061_v50 }
 0x22d   : > { %v4819_v11 = vpop.permute.xlu0 %2124  ;;  %v4835_v17 = vpop.permute.xlu1 %2166 }
 0x22e   : > { %2576 = vrot.lane.b32.xlu1 %v4760_v21, %s3723_s11 }
 0x230   : > { %2578 = vrot.lane.b32.xlu0 %v4774_v14, %s3723_s11  ;;  %s5601_s11 = smov 103  }
 0x231   : > { %v4830_v58 = vpop.permute.xlu0 %2133  ;;  %v4844_v49 = vpop.permute.xlu1 %2173 }
 0x232   : > { %2582 = vrot.lane.b32.xlu1 %v4760_v21, %s5600_s10 }
 0x234   : > { %2584 = vrot.lane.b32.xlu0 %v4774_v14, %s5600_s10  ;;  %s5644_s10 = smov 39  }
 0x235   : > { %v4839_v46 = vpop.permute.xlu0 %2168  ;;  %v4853_v28 = vpop.permute.xlu1 %2180 }
 0x236   : > { %2594 = vrot.lane.b32.xlu1 %v4760_v21, %s3734_s5  ;;  %v3656_v2 = vpop.eup %3655 }
 0x237   : > { %v1064_v10 = vadd.f32 1.0, %v3656_v2 }
 0x238   : > { %2596 = vrot.lane.b32.xlu0 %v4774_v14, %s3734_s5  ;;  %s3770_s5 = smov 101  }
 0x239   : > { %v4847_v34 = vpop.permute.xlu0 %2175  ;;  %v4861_v42 = vpop.permute.xlu1 %2221  ;;  %3657 = vrcp.f32 %v1064_v10 }
 0x23a   : > { %2600 = vrot.lane.b32.xlu1 %v4760_v21, %s5601_s11 }
 0x23c   : > { %2602 = vrot.lane.b32.xlu0 %v4774_v14, %s5601_s11 }
 0x23d   : > { %v4856_v54 = vpop.permute.xlu0 %2182 }
 0x23e   : > { %2520 = vrot.lane.b32.xlu1 %v2519_v60, %s3764_s20  ;;  %v4869_v60 = vpop.permute.xlu1 %2228  ;;  %s3780_s20 = smov 12  }
 0x23f   : > { %5602 = vst [vmem:[#allocation20_spill] sm:$0xff] %v4869_v60 }
 0x240   : > { %2630 = vrot.lane.b32.xlu0 %v4760_v21, %s3759_s4 }
 0x241   : > { %v4865_v45 = vpop.permute.xlu0 %2223 }
 0x242   : > { %2632 = vrot.lane.b32.xlu1 %v4774_v14, %s3759_s4  ;;  %s3771_s4 = smov 79   ;;  %v4879_v59 = vpop.permute.xlu1 %2235 }
 0x243   : > { %5604 = vst [vmem:[#allocation10_spill] sm:$0xff] %v4879_v59  ;;  %v3658_v10 = vpop.eup %3657 }
 0x244   : > { %2636 = vrot.lane.b32.xlu0 %v4760_v21, %s3770_s5 }
 0x245   : > { %v4873_v31 = vpop.permute.xlu0 %2230 }
 0x246   : > { %2638 = vrot.lane.b32.xlu1 %v4774_v14, %s3770_s5  ;;  %5603 = vst [vmem:[#allocation6_spill] sm:$0xff] %v4873_v31  ;;  %v4889_v50 = vpop.permute.xlu1 %2242 }
 0x247   : > { %5606 = vst [vmem:[#allocation8_spill] sm:$0xff] %v4889_v50 }
 0x248   : > { %2662 = vrot.lane.b32.xlu0 %v4760_v21, %s3760_s19 }
 0x249   : > { %v4883_v51 = vpop.permute.xlu0 %2237 }
 0x24a   : > { %2664 = vrot.lane.b32.xlu1 %v4774_v14, %s3760_s19  ;;  %s3772_s19 = smov 57   ;;  %5605 = vst [vmem:[#allocation21_spill] sm:$0xff] %v4883_v51  ;;  %v4899_v59 = vpop.permute.xlu1 %2283 }
 0x24b   : > { %5608 = vst [vmem:[#allocation22_spill] sm:$0xff] %v4899_v59 }
 0x24c   : > { %2668 = vrot.lane.b32.xlu0 %v4760_v21, %s3771_s4 }
 0x24d   : > { %v4893_v25 = vpop.permute.xlu0 %2244 }
 0x24e   : > { %2670 = vrot.lane.b32.xlu1 %v4774_v14, %s3771_s4  ;;  %5607 = vst [vmem:[#allocation14_spill] sm:$0xff] %v4893_v25  ;;  %v4907_v50 = vpop.permute.xlu1 %2290  ;;  %v1079_v25 = vadd.f32 %v3658_v10, %v4514_v35  ;;  %s3230_s4 = smul.u32 3, %s5709_s13 }
 0x24f   : > { %5610 = vst [vmem:[#allocation9_spill] sm:$0xff] %v4907_v50 }
 0x250   : > { %2682 = vrot.lane.b32.xlu0 %v4760_v21, %s3761_s8  ;;  %v1088_v59 = vadd.f32 %v4523_v23, %v1079_v25 }
 0x251   : > { %v4903_v2 = vpop.permute.xlu0 %2285 }
 0x252   : > { %2684 = vrot.lane.b32.xlu1 %v4774_v14, %s3761_s8  ;;  %5609 = vst [vmem:[#allocation3_spill] sm:$0xff] %v4903_v2  ;;  %s3773_s8 = smov 35   ;;  %v4916_v2 = vld [vmem:[%s3846_s25 + $0x4] sm:$0xff]  ;;  %v1097_v60 = vadd.f32 %v4532_v40, %v1088_v59  ;;  %v4920_v31 = vpop.permute.xlu1 %2297 }
 0x253   : > { %5612 = vst [vmem:[#allocation23_spill] sm:$0xff] %v4920_v31  ;;  %v4925_v35 = vcombine.high %v4916_v2, %v4916_v2 }
 0x254   : > { %2688 = vrot.lane.b32.xlu0 %v4760_v21, %s3772_s19  ;;  %v1149_v10 = vadd.f32 %v4543_v9, %v1097_v60 }
 0x255   : > { %v4911_v51 = vpop.permute.xlu0 %2292 }
 0x256   : > { %2690 = vrot.lane.b32.xlu1 %v4774_v14, %s3772_s19  ;;  %5611 = vst [vmem:[#allocation7_spill] sm:$0xff] %v4911_v51  ;;  %v1201_v23 = vadd.f32 %v4552_v36, %v1149_v10  ;;  %v4936_v25 = vpop.permute.xlu1 %2304  ;;  %s202_s19 = sadd.s32 %s3230_s4, %s5711_s12 }
 0x258   : > { %2612 = vrot.lane.b32.xlu0 %v4760_v21, %s3747_s30  ;;  %v1253_v40 = vadd.f32 %v4563_v37, %v1201_v23 }
 0x259   : > { %v4928_v50 = vpop.permute.xlu0 %2299 }
 0x25a   : > { %2614 = vrot.lane.b32.xlu1 %v4774_v14, %s3747_s30  ;;  %5613 = vst [vmem:[#allocation4_spill] sm:$0xff] %v4928_v50  ;;  %v1305_v59 = vadd.f32 %v4576_v15, %v1253_v40  ;;  %v5617_v15 = vld [vmem:[#allocation18_spill] sm:$0xff] }
 0x25b   : > { %v1379_v40 = vsel %vm867_vm11, %v5617_v15, %v4636_v62 }
 0x25c   : > { %2618 = vrot.lane.b32.xlu0 %v4760_v21, %s3748_s6  ;;  %v1356_v9 = vadd.f32 %v4589_v29, %v1305_v59 }
 0x25d   : > { %v4939_v31 = vpop.permute.xlu0 %2306 }
 0x25e   : > { %2620 = vrot.lane.b32.xlu1 %v4774_v14, %s3748_s6  ;;  %s3774_s6 = smov 18   ;;  %v1365_v51 = vadd.f32 %v4616_v38, %v1356_v9 }
 0x260   : > { %2644 = vrot.lane.b32.xlu0 %v4760_v21, %s3763_s7  ;;  %v1374_v37 = vadd.f32 %v4626_v16, %v1365_v51  ;;  %v1482_v51 = vsel %vm5545_vm15, %v4603_v53, %v4651_v43  ;;  %vm1608_vm15 = vcmask 3072  }
 0x262   : > { %2646 = vrot.lane.b32.xlu1 %v4774_v14, %s3763_s7  ;;  %v1383_v29 = vadd.f32 %v4636_v62, %v1374_v37  ;;  %v1532_v37 = vsel %vm304_vm5, %v4614_v56, %v4657_v3 }
 0x264   : > { %2651 = vrot.lane.b32.xlu0 %v4760_v21, %s3758_s27  ;;  %v1435_v9 = vadd.f32 %v4643_v18, %v1383_v29 }
 0x266   : > { %2653 = vrot.lane.b32.xlu1 %v4774_v14, %s3758_s27  ;;  %v1486_v15 = vadd.f32 %v4651_v43, %v1435_v9 }
 0x268   : > { %2702 = vrot.lane.b32.xlu0 %v4760_v21, %s5561_s24 }
 0x26a   : > { %2704 = vrot.lane.b32.xlu1 %v4774_v14, %s5561_s24  ;;  %s3776_s24 = smov 107  }
 0x26c   : > { %2708 = vrot.lane.b32.xlu0 %v4760_v21, %s3773_s8 }
 0x26e   : > { %2710 = vrot.lane.b32.xlu1 %v4774_v14, %s3773_s8  ;;  %s3102_s8 = sshll.u32 %s202_s19, 3 }
 0x270   : > { %2722 = vrot.lane.b32.xlu0 %v4760_v21, %s3774_s6 }
 0x272   : > { %2724 = vrot.lane.b32.xlu1 %v4774_v14, %s3774_s6 }
 0x274   : > { %2729 = vrot.lane.b32.xlu0 %v4760_v21, %s3775_s26 }
 0x276   : > { %2731 = vrot.lane.b32.xlu1 %v4774_v14, %s3775_s26 }
 0x278   : > { %2740 = vrot.lane.b32.xlu0 %v4916_v2, %s3763_s7 }
 0x27a   : > { %2742 = vrot.lane.b32.xlu1 %v4925_v35, %s3763_s7  ;;  %s3779_s7 = smov 15  }
 0x280   : > { %v4942_v60 = vpop.permute.xlu1 %2353 }
 0x281   : > { %5614 = vst [vmem:[#allocation13_spill] sm:$0xff] %v4942_v60  ;;  %v5618_v60 = vld [vmem:[#allocation19_spill] sm:$0xff] }
 0x282   : > { %v4944_v50 = vpop.permute.xlu0 %2355  ;;  %v1431_v38 = vsel %vm1430_vm4, %v5618_v60, %v4643_v18  ;;  %v1536_v60 = vadd.f32 %v4657_v3, %v1486_v15 }
 0x284   : > { %v4947_v36 = vpop.permute.xlu1 %2361  ;;  %v1587_v53 = vadd.f32 %v4662_v19, %v1536_v60 }
 0x285   : > { %5615 = vst [vmem:[#allocation11_spill] sm:$0xff] %v4947_v36  ;;  %v1382_v36 = vadd.f32 %v1379_v40, %v4633_v5  ;;  %v1583_v5 = vsel %vm1021_vm12, %v4624_v1, %v4662_v19 }
 0x286   : > { %v4949_v10 = vpop.permute.xlu0 %2363  ;;  %v1589_v9 = vmul.f32 0.0625, %v1587_v53 }
 0x288   : > { %v4952_v23 = vpop.permute.xlu1 %2368 }
 0x289   : > { %5616 = vst [vmem:[#allocation24_spill] sm:$0xff] %v4952_v23  ;;  %v1434_v23 = vadd.f32 %v1431_v38, %v1382_v36 }
 0x28a   : > { %v4958_v59 = vpop.permute.xlu0 %2370 }
 0x28b   : > { %v1485_v18 = vadd.f32 %v1482_v51, %v1434_v23 }
 0x28c   : > { %v4965_v16 = vpop.permute.xlu1 %2375 }
 0x28d   : > { %5619 = vst [vmem:[#allocation5_spill] sm:$0xff] %v4965_v16  ;;  %v1535_v40 = vadd.f32 %v1532_v37, %v1485_v18 }
 0x28e   : > { %v4971_v62 = vpop.permute.xlu0 %2377 }
 0x28f   : > { %v1586_v36 = vadd.f32 %v1583_v5, %v1535_v40 }
 0x290   : > { %v4977_v29 = vpop.permute.xlu1 %2535 }
 0x291   : > { %v1588_v56 = vmul.f32 0.0625, %v1586_v36 }
 0x292   : > { %v4983_v43 = vpop.permute.xlu0 %2537 }
 0x294   : > { %v4985_v38 = vpop.permute.xlu1 %2541 }
 0x295   : > { %5620 = vst [vmem:[#allocation16_spill] sm:$0xff] %v4985_v38 }
 0x296   : > { %v2388_v16 = vpop.permute.xlu0 %2387 }
 0x297   : > { %vm2393_vm0 = vcmp.lt.f32.partialorder %v1589_v9, %v2388_v16 }
 0x298   : > { %v2386_v3 = vpop.permute.xlu1 %2385  ;;  %v2395_v23 = vsel %vm2393_vm0, %v1589_v9, %v2388_v16  ;;  %v2397_v37 = vsel %vm2393_vm0, %v2388_v16, %v1589_v9 }
 0x299   : > { %v2389_v51 = vsel %vm5553_vm1, %v2386_v3, %v2388_v16  ;;  %2406 = vrot.lane.b32.xlu0 %v2395_v23, %s3776_s24  ;;  %v5624_v23 = vmov 0  }
 0x29a   : > { %vm2392_vm6 = vcmp.lt.f32.partialorder %v1588_v56, %v2389_v51  ;;  %v4990_v1 = vpop.permute.xlu0 %2543 }
 0x29b   : > { %5621 = vst [vmem:[#allocation12_spill] sm:$0xff] %v4990_v1  ;;  %v2394_v19 = vsel %vm2392_vm6, %v1588_v56, %v2389_v51  ;;  %v2396_v18 = vsel %vm2392_vm6, %v2389_v51, %v1588_v56 }
 0x29c   : > { %v2557_v15 = vpop.permute.xlu1 %2556  ;;  %2404 = vrot.lane.b32.xlu1 %v2394_v19, %s3776_s24  ;;  %v2399_v19 = vsel %vm2393_vm0, 1, %v5624_v23 }
 0x29d   : > { %2449 = vrot.lane.b32.xlu0 %v2397_v37, %s3776_s24  ;;  %v1598_v37 = vcombine.high %v4535_v6, %v4535_v6 }
 0x29e   : > { %v2559_v60 = vpop.permute.xlu0 %2558 }
 0x29f   : > { %v4998_v5 = vsel %vm5553_vm1, %v2557_v15, %v2559_v60  ;;  %v2398_v60 = vsel %vm2392_vm6, 1, %v5624_v23  ;;  %vm2150_vm1 = vcmask 1043456  }
 0x2a0   : > { %5622 = vst [vmem:[#allocation25_spill] sm:$0xff] %v4998_v5  ;;  %v2577_v53 = vpop.permute.xlu1 %2576  ;;  %2447 = vrot.lane.b32.xlu1 %v2396_v18, %s3776_s24  ;;  %v1609_v5 = vsel %vm1608_vm15, %v1598_v37, 0.0  ;;  %vm2692_vm15 = vcmask 465920  }
 0x2a1   : > { %2759 = vrot.lane.b32.xlu0 %v4916_v2, %s3758_s27 }
 0x2a2   : > { %v2579_v40 = vpop.permute.xlu0 %2578 }
 0x2a3   : > { %v5004_v36 = vsel %vm347_vm3, %v2577_v53, %v2579_v40  ;;  %v3777_v40 = vmov 1  }
 0x2a4   : > { %5623 = vst [vmem:[#allocation17_spill] sm:$0xff] %v5004_v36  ;;  %v2583_v3 = vpop.permute.xlu1 %2582  ;;  %2761 = vrot.lane.b32.xlu1 %v4925_v35, %s3758_s27  ;;  %v2401_v36 = vsel %vm2393_vm0, 0, %v3777_v40  ;;  %v2400_v38 = vsel %vm2392_vm6, 0, %v3777_v40  ;;  %s3778_s27 = smov 16   ;;  %vm5630_vm6 = vcmask 457728   ;;  %vm5635_vm0 = vcmask 834560  }
 0x2a5   : > { %2420 = vrot.lane.b32.xlu0 %v2399_v19, %s3776_s24 }
 0x2a6   : > { %v2585_v15 = vpop.permute.xlu0 %2584 }
 0x2a7   : > { %v5016_v18 = vsel %vm876_vm8, %v2583_v3, %v2585_v15  ;;  %v1610_v3 = vrot.slane %v1609_v5, 4  ;;  %vm2146_vm8 = vcmask 482304  }
 0x2a8   : > { %5625 = vst [vmem:[#allocation15_spill] sm:$0xff] %v5016_v18  ;;  %v2595_v53 = vpop.permute.xlu1 %2594  ;;  %2418 = vrot.lane.b32.xlu1 %v2398_v60, %s3776_s24 }
 0x2a9   : > { %2462 = vrot.lane.b32.xlu0 %v2401_v36, %s3776_s24  ;;  %v1611_v51 = vadd.f32 %v1610_v3, %v1609_v5 }
 0x2aa   : > { %v2597_v19 = vpop.permute.xlu0 %2596 }
 0x2ab   : > { %v5023_v6 = vsel %vm399_vm13, %v2595_v53, %v2597_v19  ;;  %v1612_v37 = vrot.slane %v1611_v51, 2 }
 0x2ac   : > { %5626 = vst [vmem:[#allocation18_spill] sm:$0xff] %v5023_v6  ;;  %v2601_v1 = vpop.permute.xlu1 %2600  ;;  %2460 = vrot.lane.b32.xlu1 %v2400_v38, %s3776_s24  ;;  %s204_s24 = scalar_lea.vmem %s5509_s3, %s3102_s8 }
 0x2ad   : > { %2767 = vrot.lane.b32.xlu0 %v4760_v21, %s3778_s27  ;;  %v1613_v5 = vadd.f32 %v1612_v37, %v1611_v51 }
 0x2ae   : > { %v2603_v15 = vpop.permute.xlu0 %2602 }
 0x2af   : > { %v5028_v16 = vsel %vm1439_vm10, %v2601_v1, %v2603_v15  ;;  %vm2640_vm10 = vcmask 826368  }
 0x2b0   : > { %5627 = vst [vmem:[#allocation19_spill] sm:$0xff] %v5028_v16  ;;  %v2521_v9 = vpop.permute.xlu1 %2520  ;;  %2769 = vrot.lane.b32.xlu1 %v4774_v14, %s3778_s27 }
 0x2b1   : > { %v2522_v56 = vsel %vm2146_vm8, %v4757_v52, %v2521_v9  ;;  %2781 = vrot.lane.b32.xlu0 %v4916_v2, %s3765_s23  ;;  %v1614_v9 = vrot.slane %v1613_v5, 1 }
 0x2b2   : > { %2524 = vst [vmem:[#allocation2] sm:$0xf] %v2522_v56  ;;  %v2631_v38 = vpop.permute.xlu0 %2630 }
 0x2b3   : > { %v1615_v51 = vadd.f32 %v1614_v9, %v1613_v5 }
 0x2b4   : > { %v2633_v36 = vpop.permute.xlu1 %2632  ;;  %2783 = vrot.lane.b32.xlu1 %v4925_v35, %s3765_s23  ;;  %s3781_s23 = smov 13  }
 0x2b5   : > { %v5038_v1 = vsel %vm1196_vm7, %v2631_v38, %v2633_v36  ;;  %2789 = vrot.lane.b32.xlu0 %v4760_v21, %s3779_s7  ;;  %vm2672_vm7 = vcmask 646144  }
 0x2b6   : > { %v2637_v60 = vpop.permute.xlu0 %2636 }
 0x2b8   : > { %v2639_v53 = vpop.permute.xlu1 %2638  ;;  %2791 = vrot.lane.b32.xlu1 %v4774_v14, %s3779_s7 }
 0x2b9   : > { %v5042_v40 = vsel %vm2640_vm10, %v2637_v60, %v2639_v53  ;;  %2747 = vrot.lane.b32.xlu0 %v4916_v2, %s3747_s30  ;;  %vm1952_vm10 = vcmask 1006592  }
 0x2ba   : > { %v2663_v19 = vpop.permute.xlu0 %2662 }
 0x2bc   : > { %v2665_v3 = vpop.permute.xlu1 %2664  ;;  %2749 = vrot.lane.b32.xlu1 %v4925_v35, %s3747_s30  ;;  %s5633_s30 = smov 83  }
 0x2bd   : > { %v5049_v15 = vsel %vm1248_vm9, %v2663_v19, %v2665_v3  ;;  %2824 = vrot.lane.b32.xlu0 %v4760_v21, %s3780_s20  ;;  %v3156_v19 = vmul.f32 -0.25, %v1615_v51 }
 0x2be   : > { %5628 = vst [vmem:[#allocation26_spill] sm:$0xff] %v5049_v15  ;;  %v2669_v56 = vpop.permute.xlu0 %2668 }
 0x2bf   : > { %v1622_v5 = vmul.f32 1.442695, %v3156_v19 }
 0x2c0   : > { %v2671_v38 = vpop.permute.xlu1 %2670  ;;  %2826 = vrot.lane.b32.xlu1 %v4774_v14, %s3780_s20 }
 0x2c1   : > { %v5053_v36 = vsel %vm2672_vm7, %v2669_v56, %v2671_v38  ;;  %2831 = vrot.lane.b32.xlu0 %v4760_v21, %s3781_s23  ;;  %3659 = vpow2.f32 %v1622_v5  ;;  %vm5638_vm7 = vcmask 998400  }
 0x2c2   : > { %5629 = vst [vmem:[#allocation27_spill] sm:$0xff] %v5053_v36  ;;  %v2683_v37 = vpop.permute.xlu0 %2682 }
 0x2c4   : > { %v2685_v60 = vpop.permute.xlu1 %2684  ;;  %2833 = vrot.lane.b32.xlu1 %v4774_v14, %s3781_s23 }
 0x2c5   : > { %v5058_v53 = vsel %vm5630_vm6, %v2683_v37, %v2685_v60  ;;  %2861 = vrot.lane.b32.xlu0 %v4760_v21, %s3714_s29  ;;  %vm2712_vm6 = vcmask 285696  }
 0x2c6   : > { %5631 = vst [vmem:[#allocation28_spill] sm:$0xff] %v5058_v53  ;;  %v2689_v3 = vpop.permute.xlu0 %2688 }
 0x2c8   : > { %v2691_v6 = vpop.permute.xlu1 %2690  ;;  %2863 = vrot.lane.b32.xlu1 %v4774_v14, %s3714_s29  ;;  %s5642_s29 = smov 61  }
 0x2c9   : > { %v5064_v56 = vsel %vm2692_vm15, %v2689_v3, %v2691_v6  ;;  %2867 = vrot.lane.b32.xlu0 %v4760_v21, %s5633_s30  ;;  %vm2726_vm15 = vcmask 146432  }
 0x2ca   : > { %5632 = vst [vmem:[#allocation29_spill] sm:$0xff] %v5064_v56  ;;  %v2613_v9 = vpop.permute.xlu0 %2612 }
 0x2cc   : > { %v2615_v38 = vpop.permute.xlu1 %2614  ;;  %2869 = vrot.lane.b32.xlu1 %v4774_v14, %s5633_s30 }
 0x2cd   : > { %v5071_v37 = vsel %vm451_vm2, %v2613_v9, %v2615_v38  ;;  %2880 = vrot.lane.b32.xlu0 %v4760_v21, %s3738_s9  ;;  %v3660_v38 = vpop.eup %3659 }
 0x2ce   : > { %5634 = vst [vmem:[#allocation30_spill] sm:$0xff] %v5071_v37  ;;  %v2619_v51 = vpop.permute.xlu0 %2618  ;;  %v1625_v53 = vadd.f32 1.0, %v3660_v38 }
 0x2d0   : > { %v2621_v60 = vpop.permute.xlu1 %2620  ;;  %2882 = vrot.lane.b32.xlu1 %v4774_v14, %s3738_s9  ;;  %3661 = vrcp.f32 %v1625_v53  ;;  %s3782_s9 = smov 14  }
 0x2d1   : > { %v5078_v6 = vsel %vm5635_vm0, %v2619_v51, %v2621_v60  ;;  %vm2733_vm0 = vcmask 138240  }
 0x2d2   : > { %5636 = vst [vmem:[#allocation31_spill] sm:$0xff] %v5078_v6  ;;  %v2645_v19 = vpop.permute.xlu0 %2644 }
 0x2d4   : > { %v2647_v3 = vpop.permute.xlu1 %2646 }
 0x2d5   : > { %v5081_v16 = vsel %vm1952_vm10, %v2645_v19, %v2647_v3 }
 0x2d6   : > { %5637 = vst [vmem:[#allocation32_spill] sm:$0xff] %v5081_v16  ;;  %v2652_v9 = vpop.permute.xlu0 %2651 }
 0x2d8   : > { %v2654_v37 = vpop.permute.xlu1 %2653 }
 0x2d9   : > { %v5084_v18 = vsel %vm5638_vm7, %v2652_v9, %v2654_v37  ;;  %vm2055_vm7 = vcmask 990208  }
 0x2da   : > { %5639 = vst [vmem:[#allocation33_spill] sm:$0xff] %v5084_v18  ;;  %v2703_v5 = vpop.permute.xlu0 %2702  ;;  %v3662_v9 = vpop.eup %3661 }
 0x2dc   : > { %v2705_v56 = vpop.permute.xlu1 %2704 }
 0x2dd   : > { %v5087_v15 = vsel %vm1430_vm4, %v2703_v5, %v2705_v56  ;;  %v1682_v56 = vadd.f32 %v3662_v9, %v4645_v44  ;;  %v1857_v44 = vsel %vm867_vm11, %v4728_v12, %v4716_v30  ;;  %vm5641_vm11 = vcmask 998400  }
 0x2de   : > { %v2709_v51 = vpop.permute.xlu0 %2708 }
 0x2df   : > { %v1732_v5 = vadd.f32 %v4655_v20, %v1682_v56 }
 0x2e0   : > { %v2711_v60 = vpop.permute.xlu1 %2710 }
 0x2e1   : > { %v5089_v6 = vsel %vm2712_vm6, %v2709_v51, %v2711_v60  ;;  %v1783_v60 = vadd.f32 %v4665_v13, %v1732_v5  ;;  %vm2107_vm6 = vcmask 982016  }
 0x2e2   : > { %v2723_v19 = vpop.permute.xlu0 %2722 }
 0x2e4   : > { %v2725_v3 = vpop.permute.xlu1 %2724 }
 0x2e5   : > { %v5091_v16 = vsel %vm2726_vm15, %v2723_v19, %v2725_v3  ;;  %v1834_v19 = vadd.f32 %v4679_v61, %v1783_v60  ;;  %v1860_v61 = vadd.f32 %v1857_v44, %v4723_v39  ;;  %v2056_v39 = vsel %vm2055_vm7, %v4786_v7, %v4789_v24 }
 0x2e6   : > { %5640 = vst [vmem:[#allocation34_spill] sm:$0xff] %v5091_v16  ;;  %v2730_v36 = vpop.permute.xlu0 %2729  ;;  %v2126_v7 = vsel %vm1021_vm12, %v4815_v57, %v4819_v11  ;;  %vm2408_vm15 = vcmask 875520  }
 0x2e7   : > { %v1843_v3 = vadd.f32 %v4695_v27, %v1834_v19  ;;  %v1953_v27 = vsel %vm1952_vm10, %v4745_v26, %v4748_v4  ;;  %v2108_v26 = vsel %vm2107_vm6, %v4794_v48, %v4797_v47  ;;  %v2135_v48 = vsel %vm5554_vm14, %v4825_v8, %v4830_v58 }
 0x2e8   : > { %v2732_v37 = vpop.permute.xlu1 %2731 }
 0x2e9   : > { %v5093_v38 = vsel %vm2733_vm0, %v2730_v36, %v2732_v37  ;;  %v1852_v16 = vadd.f32 %v4705_v63, %v1843_v3 }
 0x2ea   : > { %v2741_v18 = vpop.permute.xlu0 %2740 }
 0x2eb   : > { %v1861_v36 = vadd.f32 %v4716_v30, %v1852_v16  ;;  %v2004_v30 = vsel %vm5641_vm11, %v4768_v22, %v4776_v32  ;;  %v2117_v22 = vsel %vm304_vm5, %v4805_v33, %v4809_v55 }
 0x2ec   : > { %v2743_v53 = vpop.permute.xlu1 %2742 }
 0x2ed   : > { %v5098_v51 = vsel %vm1952_vm10, %v2741_v18, %v2743_v53  ;;  %v1905_v20 = vadd.f32 %v4732_v41, %v1861_v36  ;;  %v1901_v18 = vsel %vm451_vm2, %v4735_v0, %v4732_v41  ;;  %v2145_v36 = vrot.slane %v4757_v52, 4 }
 0x2ee   : > { %v1904_v63 = vadd.f32 %v1901_v18, %v1860_v61 }
 0x2ef   : > { %v1957_v13 = vadd.f32 %v4748_v4, %v1905_v20  ;;  %v2142_v20 = vld [vmem:[%s3846_s25] sm:$0xf]  ;;  %v2147_v18 = vsel %vm2146_vm8, %v4757_v52, %v2145_v36 }
 0x2f0   : > { %v1956_v12 = vadd.f32 %v1953_v27, %v1904_v63  ;;  %v2149_v63 = vmul.f32 %v2147_v18, %v2142_v20 }
 0x2f1   : > { %v2008_v16 = vadd.f32 %v4776_v32, %v1957_v13 }
 0x2f2   : > { %v2007_v41 = vadd.f32 %v2004_v30, %v1956_v12 }
 0x2f3   : > { %v2060_v37 = vadd.f32 %v4789_v24, %v2008_v16 }
 0x2f4   : > { %v2059_v4 = vadd.f32 %v2056_v39, %v2007_v41  ;;  %v2151_v41 = vsel %vm2150_vm1, %v2149_v63, 0.0  ;;  %vm2793_vm1 = vcmask 121856  }
 0x2f5   : > { %v2112_v0 = vadd.f32 %v4797_v47, %v2060_v37 }
 0x2f6   : > { %v2111_v32 = vadd.f32 %v2108_v26, %v2059_v4 }
 0x2f7   : > { %v2121_v9 = vadd.f32 %v4809_v55, %v2112_v0 }
 0x2f8   : > { %v2120_v24 = vadd.f32 %v2117_v22, %v2111_v32  ;;  %v2152_v22 = vrot.slane %v2151_v41, 4 }
 0x2f9   : > { %v2130_v56 = vadd.f32 %v4819_v11, %v2121_v9 }
 0x2fa   : > { %v2129_v47 = vadd.f32 %v2126_v7, %v2120_v24 }
 0x2fb   : > { %v2139_v5 = vadd.f32 %v4830_v58, %v2130_v56 }
 0x2fc   : > { %v2138_v53 = vadd.f32 %v2135_v48, %v2129_v47 }
 0x2fd   : > { %v2141_v60 = vmul.f32 0.0625, %v2139_v5  ;;  %v2153_v5 = vadd.f32 %v2152_v22, %v2151_v41 }
 0x2fe   : > { %v2140_v55 = vmul.f32 0.0625, %v2138_v53 }
 0x30b   : > { %v2407_v19 = vpop.permute.xlu0 %2406 }
 0x30c   : > { %vm2413_vm10 = vcmp.lt.f32.partialorder %v2141_v60, %v2407_v19 }
 0x30d   : > { %v2415_v33 = vsel %vm2413_vm10, %v2141_v60, %v2407_v19  ;;  %v2417_v16 = vsel %vm2413_vm10, %v2407_v19, %v2141_v60 }
 0x30e   : > { %2431 = vrot.lane.b32.xlu0 %v2415_v33, %s3746_s28  ;;  %v2405_v57 = vpop.permute.xlu1 %2404 }
 0x30f   : > { %v2409_v11 = vsel %vm2408_vm15, %v2405_v57, %v2407_v19  ;;  %v2450_v3 = vpop.permute.xlu0 %2449 }
 0x310   : > { %vm2412_vm0 = vcmp.lt.f32.partialorder %v2140_v55, %v2409_v11  ;;  %vm2455_vm14 = vcmp.lt.f32.partialorder %v2417_v16, %v2450_v3 }
 0x311   : > { %v2414_v8 = vsel %vm2412_vm0, %v2140_v55, %v2409_v11  ;;  %v2416_v0 = vsel %vm2412_vm0, %v2409_v11, %v2140_v55  ;;  %v2457_v4 = vsel %vm2455_vm14, %v2417_v16, %v2450_v3  ;;  %v2459_v56 = vsel %vm2455_vm14, %v2450_v3, %v2417_v16 }
 0x312   : > { %2429 = vrot.lane.b32.xlu1 %v2414_v8, %s3746_s28  ;;  %v2448_v58 = vpop.permute.xlu1 %2447 }
 0x313   : > { %v2760_v44 = vpop.permute.xlu0 %2759  ;;  %v2451_v12 = vsel %vm2408_vm15, %v2448_v58, %v2450_v3  ;;  %v2154_v58 = vrot.slane %v2153_v5, 2 }
 0x314   : > { %vm2454_vm8 = vcmp.lt.f32.partialorder %v2416_v0, %v2451_v12 }
 0x315   : > { %v2456_v7 = vsel %vm2454_vm8, %v2416_v0, %v2451_v12  ;;  %v2458_v33 = vsel %vm2454_vm8, %v2451_v12, %v2416_v0 }
 0x316   : > { %v2762_v13 = vpop.permute.xlu1 %2761 }
 0x317   : > { %v5151_v61 = vsel %vm5641_vm11, %v2760_v44, %v2762_v13  ;;  %v2421_v27 = vpop.permute.xlu0 %2420  ;;  %vm2771_vm11 = vcmask 130048  }
 0x318   : > { %v2424_v30 = vsel %vm2413_vm10, 2, %v2421_v27  ;;  %v2426_v48 = vsel %vm2413_vm10, %v2421_v27, 2  ;;  %vm5645_vm10 = vcmask 998400  }
 0x319   : > { %2440 = vrot.lane.b32.xlu0 %v2424_v30, %s3746_s28  ;;  %v3783_v30 = vmov 0.0|0.0  }
 0x31a   : > { %v2419_v37 = vpop.permute.xlu1 %2418  ;;  %3216 = vmatprep.subr.bf16.mxu0 %v3783_v30 }
 0x31b   : > { %v2422_v39 = vsel %vm2408_vm15, %v2419_v37, %v2421_v27  ;;  %v2463_v52 = vpop.permute.xlu0 %2462  ;;  %v2155_v27 = vadd.f32 %v2154_v58, %v2153_v5  ;;  %v3785_v37 = vmov 0.0   ;;  %v5653_v58 = vld [vmem:[#allocation3_spill] sm:$0xff] }
 0x31c   : > { %v2423_v26 = vsel %vm2412_vm0, 2, %v2422_v39  ;;  %v2466_v53 = vsel %vm2455_vm14, %v2426_v48, %v2463_v52  ;;  %v2425_v44 = vsel %vm2412_vm0, %v2422_v39, 2  ;;  %v2468_v19 = vsel %vm2455_vm14, %v2463_v52, %v2426_v48  ;;  %2915 = vst [vmem:[#allocation2 + $0x44] sm:$0xf] %v3785_v37 }
 0x31d   : > { %2473 = vrot.lane.b32.xlu0 %v2457_v4, %s3746_s28  ;;  %2438 = vrot.lane.b32.xlu1 %v2423_v26, %s3746_s28  ;;  %v2156_v11 = vrot.slane %v2155_v27, 1  ;;  %vm3786_vm14 = vmmov 0   ;;  %v2184_v4 = vsel %vm451_vm2, %v4853_v28, %v4856_v54  ;;  %v5648_v28 = vld [vmem:[#allocation21_spill] sm:$0xff]  ;;  %v5649_v54 = vld [vmem:[#allocation10_spill] sm:$0xff] }
 0x31e   : > { %v2461_v9 = vpop.permute.xlu1 %2460  ;;  %3213 = vmatprep.mubr.msk.f32.mxu0 %vm3786_vm14, %v3785_v37 }
 0x31f   : > { %v2768_v32 = vpop.permute.xlu0 %2767  ;;  %v2464_v36 = vsel %vm2408_vm15, %v2461_v9, %v2463_v52  ;;  %v2157_v3 = vadd.f32 %v2156_v11, %v2155_v27  ;;  %v5656_v27 = vld [vmem:[#allocation9_spill] sm:$0xff] }
 0x320   : > { %v2465_v20 = vsel %vm2454_vm8, %v2425_v44, %v2464_v36  ;;  %v2467_v55 = vsel %vm2454_vm8, %v2464_v36, %v2425_v44  ;;  %v5654_v44 = vld [vmem:[#allocation22_spill] sm:$0xff] }
 0x321   : > { %2491 = vrot.lane.b32.xlu0 %v2459_v56, %s3746_s28  ;;  %2471 = vrot.lane.b32.xlu1 %v2456_v7, %s3746_s28  ;;  %v3175_v16 = vmul.f32 -0.25, %v2157_v3  ;;  %v5646_v56 = vld [vmem:[#allocation6_spill] sm:$0xff]  ;;  %v5647_v7 = vld [vmem:[#allocation20_spill] sm:$0xff] }
 0x322   : > { %v2770_v24 = vpop.permute.xlu1 %2769 }
 0x323   : > { %v5168_v47 = vsel %vm2771_vm11, %v2768_v32, %v2770_v24  ;;  %v2782_v57 = vpop.permute.xlu0 %2781  ;;  %v2160_v12 = vmul.f32 1.442695, %v3175_v16  ;;  %v2225_v32 = vsel %vm5645_vm10, %v4861_v42, %v4865_v45  ;;  %v5651_v42 = vld [vmem:[#allocation14_spill] sm:$0xff]  ;;  %v5652_v45 = vld [vmem:[#allocation8_spill] sm:$0xff] }
 0x324   : > { %v5658_v16 = vld [vmem:[#allocation4_spill] sm:$0xff] }
 0x325   : > { %2482 = vrot.lane.b32.xlu0 %v2466_v53, %s3746_s28  ;;  %2489 = vrot.lane.b32.xlu1 %v2458_v33, %s3746_s28  ;;  %3663 = vpow2.f32 %v2160_v12  ;;  %v5659_v12 = vld [vmem:[#allocation23_spill] sm:$0xff] }
 0x326   : > { %v2784_v8 = vpop.permute.xlu1 %2783 }
 0x327   : > { %v5177_v60 = vsel %vm2055_vm7, %v2782_v57, %v2784_v8  ;;  %v2790_v18 = vpop.permute.xlu0 %2789  ;;  %v2246_v57 = vsel %vm1430_vm4, %v5652_v45, %v5651_v42  ;;  %vm5664_vm4 = vcmask 326656  }
 0x329   : > { %2500 = vrot.lane.b32.xlu0 %v2468_v19, %s3746_s28  ;;  %2480 = vrot.lane.b32.xlu1 %v2465_v20, %s3746_s28  ;;  %v2287_v19 = vsel %vm451_vm2, %v5654_v44, %v5653_v58 }
 0x32a   : > { %v2792_v13 = vpop.permute.xlu1 %2791 }
 0x32b   : > { %v5183_v63 = vsel %vm2793_vm1, %v2790_v18, %v2792_v13  ;;  %v5223_v26 = vpop.permute.xlu0 %2747  ;;  %v5655_v13 = vld [vmem:[#allocation7_spill] sm:$0xff] }
 0x32d   : > { %2498 = vrot.lane.b32.xlu1 %v2467_v55, %s3746_s28  ;;  %2886 = vrot.lane.b32.xlu0 %v4760_v21, %s5642_s29  ;;  %s3784_s28 = smov 119  }
 0x32e   : > { %v5228_v22 = vpop.permute.xlu1 %2749 }
 0x32f   : > { %v3664_v39 = vpop.eup %3663 }
 0x331   : > { %2888 = vrot.lane.b32.xlu1 %v4774_v14, %s5642_s29  ;;  %2803 = vrot.lane.b32.xlu0 %v4916_v2, %s3766_s21 }
 0x332   : > { %v5238_v24 = vpop.permute.xlu1 %2826 }
 0x335   : > { %2805 = vrot.lane.b32.xlu1 %v4925_v35, %s3766_s21  ;;  %2811 = vrot.lane.b32.xlu0 %v4760_v21, %s3782_s9  ;;  %s5643_s21 = smov 40  }
 0x336   : > { %v5245_v33 = vpop.permute.xlu1 %2833 }
 0x339   : > { %2813 = vrot.lane.b32.xlu1 %v4774_v14, %s3782_s9  ;;  %2842 = vrot.lane.b32.xlu0 %v4916_v2, %s3784_s28 }
 0x33a   : > { %v5255_v18 = vpop.permute.xlu1 %2863 }
 0x33d   : > { %2844 = vrot.lane.b32.xlu1 %v4925_v35, %s3784_s28  ;;  %2850 = vrot.lane.b32.xlu0 %v4916_v2, %s3767_s22  ;;  %v2162_v2 = vadd.f32 1.0, %v3664_v39  ;;  %v2301_v39 = vsel %vm2055_vm7, %v5659_v12, %v5658_v16  ;;  %vm5665_vm7 = vcmask 1039360  }
 0x33e   : > { %vm5666_vm0 = vmmov %vm5665_vm7 }
 0x33f   : > { %3665 = vrcp.f32 %v2162_v2  ;;  %v5265_v2 = vpop.permute.xlu1 %2869  ;;  %vm5667_vm11 = vmmov %vm5666_vm0 }
 0x340   : > { %vm5668_vm14 = vmmov %vm5666_vm0 }
 0x341   : > { %2852 = vrot.lane.b32.xlu1 %v4925_v35, %s3767_s22  ;;  %2899 = vrot.lane.b32.xlu0 %v4760_v21, %s5643_s21  ;;  %v2926_v35 = vld [vmem:[%s5508_s2] sm:$0xff] }
 0x345   : > { %2901 = vrot.lane.b32.xlu1 %v4774_v14, %s5643_s21  ;;  %2905 = vrot.lane.b32.xlu0 %v4760_v21, %s5644_s10  ;;  %v2170_v21 = vsel %vm347_vm3, %v4835_v17, %v4839_v46  ;;  %v5233_v46 = vpop.permute.xlu0 %2824  ;;  %vm5650_vm3 = vcmask 457728  }
 0x346   : > { %v2239_v48 = vsel %vm5650_vm3, %v5649_v54, %v5648_v28  ;;  %vm5669_vm3 = vmmov %vm5666_vm0 }
 0x349   : > { %2907 = vrot.lane.b32.xlu1 %v4774_v14, %s5644_s10  ;;  %2929 = vperm.xlu0 %3347, %v2926_v35   ;;  %v3666_v52 = vpop.eup %3665  ;;  %v2177_v14 = vsel %vm399_vm13, %v4844_v49, %v4847_v34  ;;  %v2232_v49 = vsel %vm1248_vm9, %v5647_v7, %v5646_v56  ;;  %v5240_v5 = vpop.permute.xlu0 %2831  ;;  %vm5657_vm13 = vmmov %vm5645_vm10  ;;  %vm2357_vm9 = vcmask 965632   ;;  %v2308_v35 = vsel %vm2107_vm6, %v4936_v25, %v4939_v31  ;;  %v5662_v56 = vld [vmem:[#allocation24_spill] sm:$0xff] }
 0x34a   : > { %v2172_v41 = vadd.f32 %v3666_v52, %v2170_v21  ;;  %v2294_v55 = vsel %vm5657_vm13, %v5656_v27, %v5655_v13  ;;  %v2372_v7 = vsel %vm1021_vm12, %v5662_v56, %v4958_v59  ;;  %vm2545_vm13 = vcmask 859136  }
 0x34c   : > { %v2179_v0 = vadd.f32 %v2177_v14, %v2172_v41  ;;  %v5660_v41 = vld [vmem:[#allocation13_spill] sm:$0xff] }
 0x34d   : > { %v5250_v8 = vpop.permute.xlu0 %2861  ;;  %v2358_v14 = vsel %vm2357_vm9, %v5660_v41, %v4944_v50 }
 0x34e   : > { %v2186_v9 = vadd.f32 %v2184_v4, %v2179_v0  ;;  %v5661_v4 = vld [vmem:[#allocation11_spill] sm:$0xff] }
 0x350   : > { %v2227_v17 = vadd.f32 %v2225_v32, %v2186_v9  ;;  %v2365_v9 = vsel %vm304_vm5, %v5661_v4, %v4949_v10 }
 0x351   : > { %v5260_v11 = vpop.permute.xlu0 %2867 }
 0x352   : > { %v2234_v34 = vadd.f32 %v2232_v49, %v2227_v17  ;;  %v5278_v17 = vpop.permute.xlu1 %2882  ;;  %v5663_v49 = vld [vmem:[#allocation5_spill] sm:$0xff] }
 0x354   : > { %v2241_v53 = vadd.f32 %v2239_v48, %v2234_v34  ;;  %v2379_v34 = vsel %vm5664_vm4, %v5663_v49, %v4971_v62 }
 0x355   : > { %v5270_v21 = vpop.permute.xlu0 %2880 }
 0x356   : > { %v2248_v36 = vadd.f32 %v2246_v57, %v2241_v53 }
 0x358   : > { %v2289_v20 = vadd.f32 %v2287_v19, %v2248_v36 }
 0x35a   : > { %v2296_v3 = vadd.f32 %v2294_v55, %v2289_v20 }
 0x35c   : > { %v2303_v52 = vadd.f32 %v2301_v39, %v2296_v3 }
 0x35e   : > { %v2310_v0 = vadd.f32 %v2308_v35, %v2303_v52  ;;  %v2528_v52 = vlaneseq }
 0x360   : > { %v2360_v32 = vadd.f32 %v2358_v14, %v2310_v0 }
 0x362   : > { %v2367_v31 = vadd.f32 %v2365_v9, %v2360_v32 }
 0x364   : > { %v2374_v28 = vadd.f32 %v2372_v7, %v2367_v31  ;;  %v2529_v7 = vshrl.u32 %v2528_v52, 7  ;;  %v5683_v52 = vld [vmem:[#allocation28_spill] sm:$0xff] }
 0x366   : > { %v2381_v50 = vadd.f32 %v2379_v34, %v2374_v28 }
 0x368   : > { %v2382_v10 = vmul.f32 0.0625, %v2381_v50 }
 0x380   : > { %v2432_v25 = vpop.permute.xlu0 %2431 }
 0x384   : > { %v2430_v54 = vpop.permute.xlu1 %2429 }
 0x385   : > { %v2433_v53 = vsel %vm5665_vm7, %v2430_v54, %v2432_v25  ;;  %vm5670_vm7 = vmmov %vm5666_vm0 }
 0x386   : > { %vm2435_vm15 = vcmp.lt.f32.partialorder %v2382_v10, %v2433_v53 }
 0x387   : > { %v2437_v59 = vsel %vm2435_vm15, %v2433_v53, %v2382_v10  ;;  %v2436_v27 = vsel %vm2435_vm15, %v2382_v10, %v2433_v53  ;;  %v2530_v10 = vsub.s32 0, %v2529_v7 }
 0x38b   : > { %v2441_v48 = vpop.permute.xlu0 %2440 }
 0x38f   : > { %v2474_v42 = vpop.permute.xlu0 %2473  ;;  %v2439_v45 = vpop.permute.xlu1 %2438 }
 0x390   : > { %v2442_v41 = vsel %vm5668_vm14, %v2439_v45, %v2441_v48 }
 0x391   : > { %v2443_v32 = vsel %vm2435_vm15, 3, %v2442_v41  ;;  %v2444_v56 = vsel %vm2435_vm15, %v2442_v41, 3  ;;  %vm5671_vm15 = vcmask 867328  }
 0x392   : > { %v2539_v53 = vsel %vm5671_vm15, %v4977_v29, %v4983_v43  ;;  %vm5679_vm15 = vcmask 498688  }
 0x393   : > { %v2492_v57 = vpop.permute.xlu0 %2491  ;;  %v2472_v36 = vpop.permute.xlu1 %2471 }
 0x394   : > { %v2475_v58 = vsel %vm5666_vm0, %v2472_v36, %v2474_v42 }
 0x395   : > { %vm2477_vm8 = vcmp.lt.f32.partialorder %v2437_v59, %v2475_v58 }
 0x396   : > { %v2478_v62 = vsel %vm2477_vm8, %v2437_v59, %v2475_v58  ;;  %v2479_v20 = vsel %vm2477_vm8, %v2475_v58, %v2437_v59  ;;  %v5313_v58 = vsel %vm451_vm2, %v5223_v26, %v5228_v22  ;;  %vm2846_vm2 = vcmask 973824  }
 0x397   : > { %v2483_v44 = vpop.permute.xlu0 %2482  ;;  %v2490_v19 = vpop.permute.xlu1 %2489  ;;  %v2504_v16 = vsub.f32 %v2478_v62, %v2436_v27  ;;  %v5325_v26 = vsel %vm304_vm5, %v5250_v8, %v5255_v18 }
 0x398   : > { %v2493_v13 = vsel %vm5667_vm11, %v2490_v19, %v2492_v57  ;;  %v5673_v19 = vld [vmem:[#allocation16_spill] sm:$0xff] }
 0x399   : > { %vm2495_vm1 = vcmp.lt.f32.partialorder %v2479_v20, %v2493_v13 }
 0x39a   : > { %v2496_v55 = vsel %vm2495_vm1, %v2479_v20, %v2493_v13  ;;  %v2497_v3 = vsel %vm2495_vm1, %v2493_v13, %v2479_v20 }
 0x39b   : > { %v2505_v12 = vsub.f32 %v2496_v55, %v2478_v62  ;;  %v2501_v39 = vpop.permute.xlu0 %2500  ;;  %v2481_v35 = vpop.permute.xlu1 %2480  ;;  %v2509_v14 = vsub.f32 %v2497_v3, %v2496_v55 }
 0x39c   : > { %v2484_v0 = vsel %vm5669_vm3, %v2481_v35, %v2483_v44  ;;  %v5672_v44 = vld [vmem:[#allocation12_spill] sm:$0xff]  ;;  %vm2835_vm3 = vcmask 105472   ;;  %v5682_v35 = vld [vmem:[#allocation29_spill] sm:$0xff] }
 0x39d   : > { %vm2506_vm10 = vcmp.gt.f32.partialorder %v2505_v12, %v2504_v16  ;;  %v2486_v34 = vsel %vm2477_vm8, %v2484_v0, %v2444_v56  ;;  %v2485_v54 = vsel %vm2477_vm8, %v2444_v56, %v2484_v0  ;;  %v2546_v62 = vsel %vm2545_vm13, %v5673_v19, %v5672_v44  ;;  %v5691_v19 = vld [vmem:[#allocation19_spill] sm:$0xff]  ;;  %v2916_v56 = vld [vmem:[%s5507_s1] sm:$0xff] }
 0x39e   : > { %v2507_v4 = vsel %vm2506_vm10, %v2505_v12, %v2504_v16  ;;  %v2508_v9 = vsel %vm2506_vm10, 1, %v5624_v23  ;;  %vm2828_vm10 = vcmask 97280   ;;  %vm5674_vm13 = vcmask 678912  }
 0x39f   : > { %vm2510_vm4 = vcmp.gt.f32.partialorder %v2509_v14, %v2507_v4  ;;  %v2499_v31 = vpop.permute.xlu1 %2498  ;;  %v2887_v25 = vpop.permute.xlu0 %2886  ;;  %v5320_v13 = vsel %vm2828_vm10, %v5233_v46, %v5238_v24  ;;  %v2871_v22 = vsel %vm5674_vm13, %v5260_v11, %v5265_v2 }
 0x3a0   : > { %v2512_v49 = vsel %vm2510_vm4, 2, %v2508_v9  ;;  %v2511_v28 = vsel %vm2510_vm4, %v2509_v14, %v2507_v4  ;;  %v2502_v50 = vsel %vm5670_vm7, %v2499_v31, %v2501_v39  ;;  %vm2815_vm7 = vcmask 113664   ;;  %v5684_v14 = vld [vmem:[#allocation32_spill] sm:$0xff]  ;;  %v5687_v31 = vld [vmem:[#allocation34_spill] sm:$0xff] }
 0x3a1   : > { %vm2513_vm0 = vcmp.eq.s32.totalorder %v2512_v49, 1  ;;  %vm2515_vm11 = vcmp.eq.s32.totalorder %v2512_v49, 2  ;;  %v2503_v48 = vsel %vm2495_vm1, %v2486_v34, %v2502_v50  ;;  %vm2517_vm14 = vcmp.ge.f32.partialorder %v2511_v28, 0.5  ;;  %v2564_v34 = vld [vmem:[%s3846_s25] sm:$0xf] }
 0x3a2   : > { %v2514_v42 = vsel %vm2513_vm0, %v2485_v54, %v2443_v32 }
 0x3a3   : > { %v2516_v45 = vsel %vm2515_vm11, %v2503_v48, %v2514_v42  ;;  %v2889_v57 = vpop.permute.xlu1 %2888  ;;  %v2804_v36 = vpop.permute.xlu0 %2803 }
 0x3a4   : > { %v2518_v59 = vsel %vm2517_vm14, %v2516_v45, 0  ;;  %v2890_v8 = vsel %vm5679_vm15, %v2887_v25, %v2889_v57 }
 0x3a5   : > { %vm2526_vm8 = vcmp.eq.s32.totalorder %v2518_v59, 1  ;;  %vm2549_vm1 = vcmp.eq.s32.totalorder %v2518_v59, 2  ;;  %vm2563_vm4 = vcmp.eq.s32.totalorder %v2518_v59, 3 }
 0x3a6   : > { %v2527_v29 = vsel %vm2526_vm8, 1, %v5624_v23  ;;  %v2550_v43 = vsel %vm2549_vm1, 1, %v5624_v23  ;;  %v2565_v20 = vsel %vm2563_vm4, 1, %v5624_v23  ;;  %v2884_v23 = vsel %vm1021_vm12, %v5270_v21, %v5278_v17  ;;  %v5680_v21 = vld [vmem:[#allocation27_spill] sm:$0xff]  ;;  %v5681_v17 = vld [vmem:[#allocation26_spill] sm:$0xff] }
 0x3a7   : > { %v2531_v27 = vrot.slane %v2527_v29, %v2530_v10  ;;  %v2554_v55 = vrot.slane %v2550_v43, %v2530_v10  ;;  %v2806_v3 = vpop.permute.xlu1 %2805  ;;  %v2812_v16 = vpop.permute.xlu0 %2811  ;;  %v2569_v46 = vrot.slane %v2565_v20, %v2530_v10  ;;  %vm5696_vm12 = vcmask 326656  }
 0x3a8   : > { %v2807_v18 = vsel %vm2107_vm6, %v2804_v36, %v2806_v3  ;;  %vm5697_vm6 = vcmask 318464  }
 0x3a9   : > { %vm5333_vm0 = vcmp.eq.s32.totalorder %v2531_v27, 1  ;;  %vm5337_vm11 = vcmp.eq.s32.totalorder %v2554_v55, 1  ;;  %vm5370_vm5 = vcmp.eq.s32.totalorder %v2569_v46, 1  ;;  %v5693_v27 = vld [vmem:[#allocation31_spill] sm:$0xff]  ;;  %v5694_v55 = vld [vmem:[#allocation30_spill] sm:$0xff] }
 0x3aa   : > { %v2548_v11 = vsel %vm5333_vm0, %v2539_v53, %v2546_v62  ;;  %v2643_v2 = vsel %vm5333_vm0, %v5038_v1, %v5042_v40  ;;  %v2675_v39 = vsel %vm5333_vm0, %v5681_v17, %v5680_v21  ;;  %v2695_v41 = vsel %vm5333_vm0, %v5683_v52, %v5682_v35  ;;  %v5692_v62 = vld [vmem:[#allocation18_spill] sm:$0xff] }
 0x3ab   : > { %v2650_v0 = vsel %vm5337_vm11, %v5684_v14, %v2643_v2  ;;  %v2676_v4 = vsel %vm5337_vm11, %v5680_v21, %v2675_v39  ;;  %v2696_v1 = vsel %vm5337_vm11, %v5682_v35, %v2695_v41  ;;  %v2715_v40 = vsel %vm5333_vm0, %v5087_v15, %v5089_v6  ;;  %v2814_v9 = vpop.permute.xlu1 %2813  ;;  %v2843_v32 = vpop.permute.xlu0 %2842 }
 0x3ac   : > { %v2716_v7 = vsel %vm5337_vm11, %v5089_v6, %v2715_v40  ;;  %v2736_v25 = vsel %vm5333_vm0, %v5687_v31, %v5093_v38  ;;  %v2892_v49 = vsel %vm5333_vm0, %v2884_v23, %v2890_v8  ;;  %v2873_v50 = vsel %vm5333_vm0, %v5325_v26, %v2871_v22 }
 0x3ad   : > { %v2746_v28 = vsel %vm5337_vm11, %v5098_v51, %v2736_v25  ;;  %v2893_v6 = vsel %vm5337_vm11, %v2890_v8, %v2892_v49  ;;  %v2816_v54 = vsel %vm2815_vm7, %v2812_v16, %v2814_v9  ;;  %v2836_v38 = vsel %vm2835_vm3, %v5240_v5, %v5245_v33  ;;  %v5688_v51 = vld [vmem:[#allocation25_spill] sm:$0xff]  ;;  %v5689_v5 = vld [vmem:[#allocation15_spill] sm:$0xff] }
 0x3ae   : > { %v2894_v48 = vsel %vm5370_vm5, %v2884_v23, %v2893_v6  ;;  %v2818_v42 = vsel %vm5337_vm11, %v2807_v18, %v2816_v54  ;;  %v2562_v53 = vsel %vm5337_vm11, %v5688_v51, %v2548_v11  ;;  %v5690_v33 = vld [vmem:[#allocation17_spill] sm:$0xff]  ;;  %v2606_v59 = vsel %vm5337_vm11, %v5692_v62, %v5691_v19 }
 0x3af   : > { %2895 = vst [vmem:[#allocation2 + $0x3c] sm:$0xf] %v2894_v48  ;;  %v2819_v10 = vsel %vm5370_vm5, %v2807_v18, %v2818_v42  ;;  %v2845_v45 = vpop.permute.xlu1 %2844  ;;  %v2851_v57 = vpop.permute.xlu0 %2850  ;;  %v2571_v36 = vsel %vm5370_vm5, %v2564_v34, %v2562_v53  ;;  %v2588_v44 = vsel %vm5337_vm11, %v5690_v33, %v5689_v5  ;;  %v2874_v29 = vsel %vm5337_vm11, %v2871_v22, %v2873_v50  ;;  %v5695_v23 = vld [vmem:[#allocation33_spill] sm:$0xff] }
 0x3b0   : > { %2820 = vst [vmem:[#allocation2 + $0x30] sm:$0xf] %v2819_v10  ;;  %2572 = vst [vmem:[#allocation2 + $0x4] sm:$0xf] %v2571_v36  ;;  %v2589_v43 = vsel %vm5370_vm5, %v5690_v33, %v2588_v44  ;;  %v2607_v20 = vsel %vm5370_vm5, %v5692_v62, %v2606_v59  ;;  %v2624_v3 = vsel %vm5337_vm11, %v5694_v55, %v5693_v27 }
 0x3b1   : > { %v2847_v16 = vsel %vm2846_vm2, %v2843_v32, %v2845_v45  ;;  %2590 = vst [vmem:[#allocation2 + $0x8] sm:$0xf] %v2589_v43  ;;  %2608 = vst [vmem:[#allocation2 + $0xc] sm:$0xf] %v2607_v20  ;;  %v2625_v22 = vsel %vm5370_vm5, %v5694_v55, %v2624_v3  ;;  %v2657_v46 = vsel %vm5370_vm5, %v5695_v23, %v2650_v0 }
 0x3b2   : > { %v2677_v8 = vsel %vm5370_vm5, %v5681_v17, %v2676_v4  ;;  %2626 = vst [vmem:[#allocation2 + $0x10] sm:$0xf] %v2625_v22  ;;  %2658 = vst [vmem:[#allocation2 + $0x14] sm:$0xf] %v2657_v46  ;;  %v2697_v18 = vsel %vm5370_vm5, %v5683_v52, %v2696_v1  ;;  %v2717_v11 = vsel %vm5370_vm5, %v5087_v15, %v2716_v7 }
 0x3b3   : > { %2678 = vst [vmem:[#allocation2 + $0x18] sm:$0xf] %v2677_v8  ;;  %v2753_v2 = vsel %vm5370_vm5, %v5313_v58, %v2746_v28  ;;  %v2774_v21 = vsel %vm5337_vm11, %v5151_v61, %v5168_v47  ;;  %v2838_v17 = vsel %vm5333_vm0, %v5320_v13, %v2836_v38  ;;  %v2853_v39 = vpop.permute.xlu1 %2852  ;;  %v2900_v35 = vpop.permute.xlu0 %2899  ;;  %2698 = vst [vmem:[#allocation2 + $0x1c] sm:$0xf] %v2697_v18 }
 0x3b4   : > { %2718 = vst [vmem:[#allocation2 + $0x20] sm:$0xf] %v2717_v11  ;;  %2754 = vst [vmem:[#allocation2 + $0x24] sm:$0xf] %v2753_v2  ;;  %v2775_v15 = vsel %vm5370_vm5, %v5151_v61, %v2774_v21  ;;  %v2796_v58 = vsel %vm5337_vm11, %v5177_v60, %v5183_v63  ;;  %v2875_v47 = vsel %vm5370_vm5, %v5325_v26, %v2874_v29 }
 0x3b5   : > { %v2849_v13 = vsel %vm5337_vm11, %v2847_v16, %v2838_v17  ;;  %v2854_v52 = vsel %vm2357_vm9, %v2851_v57, %v2853_v39  ;;  %2776 = vst [vmem:[#allocation2 + $0x28] sm:$0xf] %v2775_v15  ;;  %v2797_v41 = vsel %vm5370_vm5, %v5177_v60, %v2796_v58  ;;  %2876 = vst [vmem:[#allocation2 + $0x38] sm:$0xf] %v2875_v47  ;;  %vm2932_vm9 = vcmask 588800  }
 0x3b6   : > { %v2856_v61 = vsel %vm5370_vm5, %v2854_v52, %v2849_v13  ;;  %2798 = vst [vmem:[#allocation2 + $0x2c] sm:$0xf] %v2797_v41 }
 0x3b7   : > { %2857 = vst [vmem:[#allocation2 + $0x34] sm:$0xf] %v2856_v61  ;;  %v2917_v63 = vld [vmem:[#allocation2] sm:$0xff]  ;;  %v2902_v14 = vpop.permute.xlu1 %2901  ;;  %v2906_v4 = vpop.permute.xlu0 %2905 }
 0x3b8   : > { %v2918_v0 = vld [vmem:[#allocation2 + $0x8] sm:$0xff]  ;;  %v2903_v32 = vsel %vm5696_vm12, %v2900_v35, %v2902_v14 }
 0x3b9   : > { %v3217_v26 = vpack.c.bf16 %v2918_v0, %v2917_v63  ;;  %v2919_v1 = vld [vmem:[#allocation2 + $0x10] sm:$0xff] }
 0x3ba   : > { %v2920_v40 = vld [vmem:[#allocation2 + $0x18] sm:$0xff] }
 0x3bb   : > { %3218 = vmatpush3.bf16.msra.mxu0 %v3217_v26  ;;  %v2908_v9 = vpop.permute.xlu1 %2907  ;;  %v3220_v7 = vpack.c.bf16 %v2920_v40, %v2919_v1  ;;  %v2921_v49 = vld [vmem:[#allocation2 + $0x20] sm:$0xff] }
 0x3bc   : > { %3219 = vmatprep.subr.bf16.mxu0 %v3783_v30  ;;  %v2909_v60 = vsel %vm5697_vm6, %v2906_v4, %v2908_v9  ;;  %v2924_v24 = vld [vmem:[#allocation2 + $0x38] sm:$0xff] }
 0x3bd   : > { %v2911_v31 = vsel %vm5333_vm0, %v2903_v32, %v2909_v60  ;;  %v2922_v34 = vld [vmem:[#allocation2 + $0x28] sm:$0xff] }
 0x3be   : > { %v2912_v25 = vsel %vm5337_vm11, %v2909_v60, %v2911_v31  ;;  %v3223_v50 = vpack.c.bf16 %v2922_v34, %v2921_v49  ;;  %v2923_v6 = vld [vmem:[#allocation2 + $0x30] sm:$0xff] }
 0x3bf   : > { %3221 = vmatpush3.bf16.msra.mxu0 %v3220_v7  ;;  %v2913_v28 = vsel %vm5370_vm5, %v2903_v32, %v2912_v25  ;;  %v3226_v54 = vpack.c.bf16 %v2924_v24, %v2923_v6 }
 0x3c0   : > { %2914 = vst [vmem:[#allocation2 + $0x40] sm:$0xf] %v2913_v28  ;;  %3222 = vmatprep.subr.bf16.mxu0 %v3783_v30 }
 0x3c3   : > { %3224 = vmatpush3.bf16.msra.mxu0 %v3223_v50 }
 0x3c4   : > { %3225 = vmatprep.subr.bf16.mxu0 %v3783_v30 }
 0x3c7   : > { %3227 = vmatpush3.bf16.msra.mxu0 %v3226_v54  ;;  %v2925_v12 = vld [vmem:[#allocation2 + $0x40] sm:$0xff] }
 0x3c8   : > { %3211 = vmatprep.subr.mxu0 %v3785_v37  ;;  %v2930_v38 = vpop.permute.xlu0 %2929 }
 0x3cb   : > { %3212 = vmatpush3.msra.mxu0 %v2925_v12 }
 0x3cc   : > { %3214 = vmatmul.mubr.msk.f32.vlgmr.msra.gmra.mrb[0].mxu0 %vm2932_vm9, %v2916_v56 }
 0x49f   : > { %v3002_v30 = vpop.f32.mrb[0].mxu0 }
 0x4a0   : > { %v3003_v48 = vadd.f32 %v3002_v30, %v2930_v38  ;;  %v3215_v42 = vpop.f32.mrb[1].mxu0 }
 0x4a2   : > { %3006 = vst [vmem:[%s204_s24] sm:$0xff] %v3003_v48 }
 0x4a3 PF: > { %s13_s16 = sadd.s32 1, %s3709_s16   ;;  %s5698_s12 = smov %s3701_s14 }
 0x4a4   : > { %p10_p7 = scmp.ge.s32.totalorder %s13_s16, 8   ;;  %s5699_s13 = smov %s3705_s15 }
 0x4a5   : > { %s5700_s14 = smov %s5703_s17  ;;  %s5701_s15 = smov %s5707_s18 }
 0x4a6   :  { %12 = sbr.rel (!%p10_p7) target bundleno = 3 (0x3), region = 62 }

</bundles_post_ra>
